<compile_context>
chip_gen: v5e
topology: v5e:2x2
jax: 0.10.0
libtpu: 0.0.40
codegen_flags: <defaults>
</compile_context>

<pallas_src>
import jax
import jax.numpy as jnp
from jax import lax
from jax.experimental import pallas as pl
from jax.experimental.pallas import tpu as pltpu


def _head_kernel(x_ref, w_ref, b_ref, o_ref):
    # x_ref: (N, C, HW)  NCHW features flattened over spatial; C on sublanes, HW on lanes
    # w_ref: (K, C)      lane-dense fc weight, pre-scaled by 1/HW (folds the GAP mean)
    # b_ref: (1, K)      fc bias
    # o_ref: (N, K)      logits for the whole batch
    x = x_ref[...].astype(jnp.float32)                    # (N, C, HW)
    pooled = jnp.sum(x, axis=-1)                          # (N, C)  spatial sum (XLU lane-reduce)
    w = w_ref[...].astype(jnp.float32)                    # (K, C)
    logits = lax.dot_general(                             # (N, C) x (K, C)^T -> (N, K)
        pooled, w,
        dimension_numbers=(((1,), (1,)), ((), ())),
        preferred_element_type=jnp.float32)
    o_ref[...] = (logits + b_ref[...].astype(jnp.float32)).astype(o_ref.dtype)


def regnety32_head_forward(feat_nchw, w_fc, b_fc):
    """Classifier head of MyRegnety32.

    feat_nchw: (N, C, H, W) pre-head backbone features (PyTorch NCHW layout).
    w_fc:      (K, C) PyTorch nn.Linear weight.
    b_fc:      (K,)   nn.Linear bias.
    Returns (N, K) logits, matching GAP -> flatten -> linear.
    """
    N, C, H, W = feat_nchw.shape
    K = w_fc.shape[0]
    HW = H * W

    # Zero-cost reshape: NCHW stays in place in HBM, no transpose pass.
    x = feat_nchw.reshape(N, C, HW)
    # Fold the 1/HW GAP scale into the (tiny) weight; keep it lane-dense (K, C).
    w = w_fc.astype(jnp.float32) * jnp.float32(1.0 / HW)
    b = b_fc.reshape(1, K).astype(jnp.float32)

    # Whole batch in a single grid step (N=2 here: ~0.6 MiB of features, far
    # below VMEM limits on v5e/v6e/v7x). For large N, tile the batch axis with
    # a multiple-of-8 Bt and a ("parallel",) grid instead.
    return pl.pallas_call(
        _head_kernel,
        out_shape=jax.ShapeDtypeStruct((N, K), jnp.float32),
        grid_spec=pltpu.PrefetchScalarGridSpec(
            num_scalar_prefetch=0,
            grid=(1,),
            in_specs=[
                pl.BlockSpec((N, C, HW), lambda i: (0, 0, 0)),
                pl.BlockSpec((K, C), lambda i: (0, 0)),
                pl.BlockSpec((1, K), lambda i: (0, 0)),
            ],
            out_specs=pl.BlockSpec((N, K), lambda i: (0, 0)),
        ),
        compiler_params=pltpu.CompilerParams(
            dimension_semantics=("arbitrary",)),
    )(x, w, b)


def reference_head_forward(feat_nchw, w_fc, b_fc):
    # Pure-JAX reference mirroring PyTorch: GAP -> flatten -> linear.
    pooled = jnp.mean(feat_nchw.astype(jnp.float32), axis=(2, 3))   # (N, C)
    return pooled @ jnp.transpose(w_fc.astype(jnp.float32)) + b_fc.astype(jnp.float32)


if __name__ == "__main__":
    # Shapes consistent with the module: n_feat_conv=1512 (from __init__),
    # num_class=8, batch=2, 7x7 pre-pool spatial extent.
    N, C, H, W = 2, 1512, 7, 7
    NUM_CLASS = 8

    key = jax.random.PRNGKey(0)
    k_feat, k_w, k_b = jax.random.split(key, 3)

    feat = jax.random.normal(k_feat, (N, C, H, W), dtype=jnp.float32)

    # Deterministic init of the replaced head: nn.Linear(n_feat_conv, num_class)
    # (PyTorch default: uniform(-1/sqrt(fan_in), 1/sqrt(fan_in))).
    bound = 1.0 / jnp.sqrt(jnp.float32(C))
    w_fc = jax.random.uniform(k_w, (NUM_CLASS, C), jnp.float32, -bound, bound)
    b_fc = jax.random.uniform(k_b, (NUM_CLASS,), jnp.float32, -bound, bound)

    out = regnety32_head_forward(feat, w_fc, b_fc)
    out = jax.block_until_ready(out)

    ref = reference_head_forward(feat, w_fc, b_fc)
    assert out.shape == (N, NUM_CLASS)
    assert jnp.allclose(out, ref, atol=1e-4, rtol=1e-4), "Pallas head mismatch vs reference"

    print("KERNEL_OK")
</pallas_src>

<mosaic_0001>
module attributes {stable_mosaic.version = 11 : i64} {
  func.func @_head_kernel(%arg0: i32, %arg1: memref<2x1512x49xf32, #tpu.memory_space<vmem>>, %arg2: memref<8x1512xf32, #tpu.memory_space<vmem>>, %arg3: memref<1x8xf32, #tpu.memory_space<vmem>>, %arg4: memref<2x8xf32, #tpu.memory_space<vmem>>) attributes {dimension_semantics = [#tpu.dimension_semantics<arbitrary>], iteration_bounds = array<i64: 1>, scalar_prefetch = 0 : i64, scratch_operands = 0 : i64, tpu.core_type = #tpu.core_type<tc>, window_params = [{pipeline_mode = #tpu.pipeline_mode<synchronous>, transform_indices = @transform_0, window_bounds = array<i64: 2, 1512, 49>}, {pipeline_mode = #tpu.pipeline_mode<synchronous>, transform_indices = @transform_1, window_bounds = array<i64: 8, 1512>}, {pipeline_mode = #tpu.pipeline_mode<synchronous>, transform_indices = @transform_2, window_bounds = array<i64: 1, 8>}, {pipeline_mode = #tpu.pipeline_mode<synchronous>, transform_indices = @transform_3, window_bounds = array<i64: 2, 8>}]} {
    %c0 = arith.constant 0 : index
    %c0_0 = arith.constant 0 : index
    %c0_1 = arith.constant 0 : index
    %0 = vector.load %arg1[%c0, %c0_0, %c0_1] : memref<2x1512x49xf32, #tpu.memory_space<vmem>>, vector<2x1512x49xf32>
    %cst = arith.constant dense<0.000000e+00> : vector<2x1512xf32>
    %1 = vector.multi_reduction <add>, %0, %cst [2] : vector<2x1512x49xf32> to vector<2x1512xf32>
    %c0_2 = arith.constant 0 : index
    %c0_3 = arith.constant 0 : index
    %2 = vector.load %arg2[%c0_2, %c0_3] : memref<8x1512xf32, #tpu.memory_space<vmem>>, vector<8x1512xf32>
    %cst_4 = arith.constant dense<0.000000e+00> : vector<2x8xf32>
    %3 = tpu.matmul %1, %2, %cst_4 {dimension_numbers = #tpu.dot_dimension_numbers<[1], [1], [0], [0], [0, 0, 1, 0], [], []>} : vector<2x1512xf32>, vector<8x1512xf32>, vector<2x8xf32> -> vector<2x8xf32>
    %c0_5 = arith.constant 0 : index
    %c0_6 = arith.constant 0 : index
    %4 = vector.load %arg3[%c0_5, %c0_6] : memref<1x8xf32, #tpu.memory_space<vmem>>, vector<1x8xf32>
    %5 = vector.broadcast %4 : vector<1x8xf32> to vector<2x8xf32>
    %6 = arith.addf %3, %5 : vector<2x8xf32>
    %c0_7 = arith.constant 0 : index
    %c0_8 = arith.constant 0 : index
    %7 = vector.load %arg4[%c0_7, %c0_8] : memref<2x8xf32, #tpu.memory_space<vmem>>, vector<2x8xf32>
    tpu.vector_store %arg4[%c0_7, %c0_8], %6 {strides = array<i32>} : memref<2x8xf32, #tpu.memory_space<vmem>>, vector<2x8xf32>,
    return
  }
  func.func @transform_0(%arg0: i32) -> (i32, i32, i32) {
    %c0_i32 = arith.constant 0 : i32
    %c0_i32_0 = arith.constant 0 : i32
    %c0_i32_1 = arith.constant 0 : i32
    %c0_i32_2 = arith.constant 0 : i32
    return %c0_i32, %c0_i32_0, %c0_i32_1 : i32, i32, i32
  }
  func.func @transform_1(%arg0: i32) -> (i32, i32) {
    %c0_i32 = arith.constant 0 : i32
    %c0_i32_0 = arith.constant 0 : i32
    %c0_i32_1 = arith.constant 0 : i32
    return %c0_i32, %c0_i32_0 : i32, i32
  }
  func.func @transform_2(%arg0: i32) -> (i32, i32) {
    %c0_i32 = arith.constant 0 : i32
    %c0_i32_0 = arith.constant 0 : i32
    %c0_i32_1 = arith.constant 0 : i32
    return %c0_i32, %c0_i32_0 : i32, i32
  }
  func.func @transform_3(%arg0: i32) -> (i32, i32) {
    %c0_i32 = arith.constant 0 : i32
    %c0_i32_0 = arith.constant 0 : i32
    %c0_i32_1 = arith.constant 0 : i32
    return %c0_i32, %c0_i32_0 : i32, i32
  }
}

</mosaic_0001>

<bundles_post_ra>
// kernel: tpu_custom_call.1
= control target key start
LH: loop header
LB: loop body
LE: loop exit
PB: predicated region body
PF: predicated region fallthrough
CT: control target
= control target key end

     0   :  { %vm393_vm0 = vcmask 400384   ;;  %s6017_s0 = inlined_call_operand.vmem [shape: f32[2,1512,49], index: 0, kind: input, shape index: {}]   ;;  %s6018_s1 = inlined_call_operand.vmem [shape: f32[8,1512], index: 1, kind: input, shape index: {}]   ;;  %s6019_s2 = inlined_call_operand.vmem [shape: f32[1,8], index: 2, kind: input, shape index: {}]   ;;  %s6020_s3 = inlined_call_operand.hbm [shape: f32[2,8], index: 3, kind: output, shape index: {}]  }
   0x1   :  { %v19_v0 = vld [vmem:[%s6017_s0 + $0x20] sm:$0xff]  ;;  %v17_v1 = vld [vmem:[%s6017_s0 + $0x10] sm:$0xff]  ;;  %v20_v6 = vld [vmem:[%s6017_s0 + $0x28] sm:$0xff] }
   0x2   :  { %v15_v2 = vld [vmem:[%s6017_s0] sm:$0xff]  ;;  %v406_v3 = vsel %vm393_vm0, %v19_v0, 0.0  ;;  %v400_v4 = vsel %vm393_vm0, %v17_v1, 0.0  ;;  %v18_v7 = vld [vmem:[%s6017_s0 + $0x18] sm:$0xff]  ;;  %v16_v8 = vld [vmem:[%s6017_s0 + $0x8] sm:$0xff] }
   0x3   :  { %v394_v5 = vsel %vm393_vm0, %v15_v2, 0.0  ;;  %407 = vadd.xlane.f32.xlu2 %v406_v3  ;;  %401 = vadd.xlane.f32.xlu1 %v400_v4 }
   0x4   :  { %395 = vadd.xlane.f32.xlu0 %v394_v5 }
   0x5   :  { %8 = vsyncpa [#allocation3], 0  ;;  %v409_v9 = vsel %vm393_vm0, %v20_v6, 0.0  ;;  %v403_v10 = vsel %vm393_vm0, %v18_v7, 0.0  ;;  %v397_v11 = vsel %vm393_vm0, %v16_v8, 0.0  ;;  %v23_v12 = vld [vmem:[%s6017_s0 + $0x40] sm:$0xff] }
   0x6   :  { %v22_v13 = vld [vmem:[%s6017_s0 + $0x38] sm:$0xff]  ;;  %v21_v14 = vld [vmem:[%s6017_s0 + $0x30] sm:$0xff]  ;;  %v418_v15 = vsel %vm393_vm0, %v23_v12, 0.0  ;;  %v24_v20 = vld [vmem:[%s6017_s0 + $0x48] sm:$0xff]  ;;  %vm1927_vm1 = vcmask 130112   ;;  %vm1931_vm2 = vcmask 195712  }
   0x7   :  { %v415_v16 = vsel %vm393_vm0, %v22_v13, 0.0  ;;  %v412_v17 = vsel %vm393_vm0, %v21_v14, 0.0  ;;  %v26_v18 = vld [vmem:[%s6017_s0 + $0x58] sm:$0xff]  ;;  %v25_v19 = vld [vmem:[%s6017_s0 + $0x50] sm:$0xff]  ;;  %v421_v23 = vsel %vm393_vm0, %v24_v20, 0.0  ;;  %v28_v25 = vld [vmem:[%s6017_s0 + $0x68] sm:$0xff] }
   0x8   :  { %v427_v21 = vsel %vm393_vm0, %v26_v18, 0.0  ;;  %v424_v22 = vsel %vm393_vm0, %v25_v19, 0.0  ;;  %v29_v24 = vld [vmem:[%s6017_s0 + $0x70] sm:$0xff]  ;;  %v27_v26 = vld [vmem:[%s6017_s0 + $0x60] sm:$0xff]  ;;  %v433_v28 = vsel %vm393_vm0, %v28_v25, 0.0  ;;  %v32_v30 = vld [vmem:[%s6017_s0 + $0x88] sm:$0xff] }
   0x9   :  { %v436_v27 = vsel %vm393_vm0, %v29_v24, 0.0  ;;  %v430_v29 = vsel %vm393_vm0, %v27_v26, 0.0  ;;  %v31_v31 = vld [vmem:[%s6017_s0 + $0x80] sm:$0xff]  ;;  %v30_v32 = vld [vmem:[%s6017_s0 + $0x78] sm:$0xff]  ;;  %v445_v33 = vsel %vm393_vm0, %v32_v30, 0.0  ;;  %v33_v38 = vld [vmem:[%s6017_s0 + $0x90] sm:$0xff] }
   0xa   :  { %v442_v34 = vsel %vm393_vm0, %v31_v31, 0.0  ;;  %v439_v35 = vsel %vm393_vm0, %v30_v32, 0.0  ;;  %v35_v36 = vld [vmem:[%s6017_s0 + $0xa0] sm:$0xff]  ;;  %v34_v37 = vld [vmem:[%s6017_s0 + $0x98] sm:$0xff]  ;;  %v448_v41 = vsel %vm393_vm0, %v33_v38, 0.0  ;;  %v37_v43 = vld [vmem:[%s6017_s0 + $0xb0] sm:$0xff] }
   0xb   :  { %410 = vadd.xlane.f32.xlu2 %v409_v9  ;;  %404 = vadd.xlane.f32.xlu1 %v403_v10  ;;  %v454_v39 = vsel %vm393_vm0, %v35_v36, 0.0  ;;  %v451_v40 = vsel %vm393_vm0, %v34_v37, 0.0  ;;  %v38_v42 = vld [vmem:[%s6017_s0 + $0xb8] sm:$0xff]  ;;  %v36_v44 = vld [vmem:[%s6017_s0 + $0xa8] sm:$0xff]  ;;  %v460_v46 = vsel %vm393_vm0, %v37_v43, 0.0  ;;  %v41_v48 = vld [vmem:[%s6017_s0 + $0xd0] sm:$0xff] }
   0xc   :  { %398 = vadd.xlane.f32.xlu0 %v397_v11  ;;  %v463_v45 = vsel %vm393_vm0, %v38_v42, 0.0  ;;  %v457_v47 = vsel %vm393_vm0, %v36_v44, 0.0  ;;  %v40_v49 = vld [vmem:[%s6017_s0 + $0xc8] sm:$0xff]  ;;  %v39_v50 = vld [vmem:[%s6017_s0 + $0xc0] sm:$0xff]  ;;  %v472_v51 = vsel %vm393_vm0, %v41_v48, 0.0  ;;  %v42_v56 = vld [vmem:[%s6017_s0 + $0xd8] sm:$0xff] }
   0xd   :  { %v469_v52 = vsel %vm393_vm0, %v40_v49, 0.0  ;;  %v466_v53 = vsel %vm393_vm0, %v39_v50, 0.0  ;;  %v44_v54 = vld [vmem:[%s6017_s0 + $0xe8] sm:$0xff]  ;;  %v43_v55 = vld [vmem:[%s6017_s0 + $0xe0] sm:$0xff]  ;;  %v475_v59 = vsel %vm393_vm0, %v42_v56, 0.0  ;;  %v46_v61 = vld [vmem:[%s6017_s0 + $0xf8] sm:$0xff] }
   0xe   :  { %v481_v57 = vsel %vm393_vm0, %v44_v54, 0.0  ;;  %v478_v58 = vsel %vm393_vm0, %v43_v55, 0.0  ;;  %v47_v60 = vld [vmem:[%s6017_s0 + $0x100] sm:$0xff]  ;;  %v45_v62 = vld [vmem:[%s6017_s0 + $0xf0] sm:$0xff]  ;;  %v487_v0 = vsel %vm393_vm0, %v46_v61, 0.0  ;;  %v50_v2 = vld [vmem:[%s6017_s0 + $0x118] sm:$0xff] }
   0xf   :  { %v490_v63 = vsel %vm393_vm0, %v47_v60, 0.0  ;;  %v484_v1 = vsel %vm393_vm0, %v45_v62, 0.0  ;;  %v49_v3 = vld [vmem:[%s6017_s0 + $0x110] sm:$0xff]  ;;  %v48_v4 = vld [vmem:[%s6017_s0 + $0x108] sm:$0xff]  ;;  %v499_v5 = vsel %vm393_vm0, %v50_v2, 0.0  ;;  %v51_v10 = vld [vmem:[%s6017_s0 + $0x120] sm:$0xff] }
  0x10   :  { %v496_v6 = vsel %vm393_vm0, %v49_v3, 0.0  ;;  %v493_v7 = vsel %vm393_vm0, %v48_v4, 0.0  ;;  %v53_v8 = vld [vmem:[%s6017_s0 + $0x130] sm:$0xff]  ;;  %v52_v9 = vld [vmem:[%s6017_s0 + $0x128] sm:$0xff]  ;;  %v502_v13 = vsel %vm393_vm0, %v51_v10, 0.0  ;;  %v59_v20 = vld [vmem:[%s6017_s0 + $0x160] sm:$0xff] }
  0x11   :  { %v508_v11 = vsel %vm393_vm0, %v53_v8, 0.0  ;;  %v505_v12 = vsel %vm393_vm0, %v52_v9, 0.0  ;;  %v56_v14 = vld [vmem:[%s6017_s0 + $0x148] sm:$0xff]  ;;  %v62_v26 = vld [vmem:[%s6017_s0 + $0x178] sm:$0xff]  ;;  %vm1935_vm3 = vcmask 261312   ;;  %vm1939_vm4 = vcmask 326912  }
  0x12   :  { %v60_v30 = vld [vmem:[%s6017_s0 + $0x168] sm:$0xff]  ;;  %v535_v32 = vsel %vm393_vm0, %v62_v26, 0.0  ;;  %v66_v48 = vld [vmem:[%s6017_s0 + $0x198] sm:$0xff]  ;;  %vm1943_vm5 = vcmask 392512   ;;  %vm1947_vm6 = vcmask 458112   ;;  %vm6025_vm7 = vcmask 523712  }
  0x13   :  { %419 = vadd.xlane.f32.xlu2 %v418_v15  ;;  %416 = vadd.xlane.f32.xlu1 %v415_v16  ;;  %v55_v15 = vld [vmem:[%s6017_s0 + $0x140] sm:$0xff]  ;;  %v54_v16 = vld [vmem:[%s6017_s0 + $0x138] sm:$0xff]  ;;  %v64_v36 = vld [vmem:[%s6017_s0 + $0x188] sm:$0xff]  ;;  %vm6024_vm8 = vcmask 589312   ;;  %vm6022_vm9 = vcmask 654912   ;;  %vm6023_vm10 = vcmask 720512  }
  0x14   :  { %413 = vadd.xlane.f32.xlu0 %v412_v17  ;;  %v517_v17 = vsel %vm393_vm0, %v56_v14, 0.0  ;;  %v514_v18 = vsel %vm393_vm0, %v55_v15, 0.0  ;;  %v511_v19 = vsel %vm393_vm0, %v54_v16, 0.0  ;;  %v541_v42 = vsel %vm393_vm0, %v64_v36, 0.0  ;;  %v68_v44 = vld [vmem:[%s6017_s0 + $0x1a8] sm:$0xff]  ;;  %v70_v54 = vld [vmem:[%s6017_s0 + $0x1b8] sm:$0xff] }
  0x15   :  { %v553_v50 = vsel %vm393_vm0, %v68_v44, 0.0  ;;  %v559_v60 = vsel %vm393_vm0, %v70_v54, 0.0  ;;  %v74_v62 = vld [vmem:[%s6017_s0 + $0x1d8] sm:$0xff]  ;;  %v72_v2 = vld [vmem:[%s6017_s0 + $0x1c8] sm:$0xff]  ;;  %vm1967_vm11 = vcmask 786112   ;;  %vm6021_vm12 = vcmask 851712  }
  0x16   :  { %v571_v4 = vsel %vm393_vm0, %v74_v62, 0.0  ;;  %v76_v8 = vld [vmem:[%s6017_s0 + $0x1e8] sm:$0xff]  ;;  %v82_v26 = vld [vmem:[%s6017_s0 + $0x218] sm:$0xff]  ;;  %vm1975_vm13 = vcmask 917312   ;;  %vm1979_vm14 = vcmask 982912   ;;  %vm1983_vm15 = vcmask 1048512  }
  0x17   :  { %v577_v14 = vsel %vm393_vm0, %v76_v8, 0.0  ;;  %v80_v16 = vld [vmem:[%s6017_s0 + $0x208] sm:$0xff]  ;;  %s2965_s12 = sshll.u32 %s6020_s3, 4  ;;  %s2966_s12 = int_to_ptr.hbm [resolvable:$true] %s2965_s12 }
  0x18   :  { %v84_v44 = vld [vmem:[%s6017_s0 + $0x228] sm:$0xff] }
  0x1b   :  { %428 = vadd.xlane.f32.xlu2 %v427_v21  ;;  %425 = vadd.xlane.f32.xlu1 %v424_v22  ;;  %v58_v21 = vld [vmem:[%s6017_s0 + $0x158] sm:$0xff]  ;;  %v57_v22 = vld [vmem:[%s6017_s0 + $0x150] sm:$0xff] }
  0x1c   :  { %422 = vadd.xlane.f32.xlu0 %v421_v23  ;;  %v526_v23 = vsel %vm393_vm0, %v59_v20, 0.0  ;;  %v523_v24 = vsel %vm393_vm0, %v58_v21, 0.0  ;;  %v520_v25 = vsel %vm393_vm0, %v57_v22, 0.0  ;;  %v78_v20 = vld [vmem:[%s6017_s0 + $0x1f8] sm:$0xff]  ;;  %v589_v22 = vsel %vm393_vm0, %v80_v16, 0.0 }
  0x1d   :  { %v94_v16 = vld [vmem:[%s6017_s0 + $0x278] sm:$0xff] }
  0x23   :  { %437 = vadd.xlane.f32.xlu2 %v436_v27  ;;  %434 = vadd.xlane.f32.xlu1 %v433_v28  ;;  %v61_v27 = vld [vmem:[%s6017_s0 + $0x170] sm:$0xff] }
  0x24   :  { %431 = vadd.xlane.f32.xlu0 %v430_v29 }
  0x2b   :  { %446 = vadd.xlane.f32.xlu2 %v445_v33  ;;  %443 = vadd.xlane.f32.xlu1 %v442_v34  ;;  %v532_v33 = vsel %vm393_vm0, %v61_v27, 0.0  ;;  %v529_v34 = vsel %vm393_vm0, %v60_v30, 0.0 }
  0x2c   :  { %440 = vadd.xlane.f32.xlu0 %v439_v35  ;;  %v65_v35 = vld [vmem:[%s6017_s0 + $0x190] sm:$0xff] }
  0x33   :  { %455 = vadd.xlane.f32.xlu2 %v454_v39  ;;  %452 = vadd.xlane.f32.xlu1 %v451_v40  ;;  %v63_v39 = vld [vmem:[%s6017_s0 + $0x180] sm:$0xff] }
  0x34   :  { %449 = vadd.xlane.f32.xlu0 %v448_v41  ;;  %v544_v41 = vsel %vm393_vm0, %v65_v35, 0.0  ;;  %v538_v43 = vsel %vm393_vm0, %v63_v39, 0.0  ;;  %v595_v35 = vsel %vm393_vm0, %v82_v26, 0.0  ;;  %v86_v39 = vld [vmem:[%s6017_s0 + $0x238] sm:$0xff] }
  0x3b   :  { %464 = vadd.xlane.f32.xlu2 %v463_v45  ;;  %461 = vadd.xlane.f32.xlu1 %v460_v46  ;;  %v67_v45 = vld [vmem:[%s6017_s0 + $0x1a0] sm:$0xff] }
  0x3c   :  { %458 = vadd.xlane.f32.xlu0 %v457_v47 }
  0x43   :  { %473 = vadd.xlane.f32.xlu2 %v472_v51  ;;  %470 = vadd.xlane.f32.xlu1 %v469_v52  ;;  %v550_v51 = vsel %vm393_vm0, %v67_v45, 0.0  ;;  %v547_v52 = vsel %vm393_vm0, %v66_v48, 0.0  ;;  %v607_v48 = vsel %vm393_vm0, %v86_v39, 0.0  ;;  %v96_v39 = vld [vmem:[%s6017_s0 + $0x288] sm:$0xff] }
  0x44   :  { %467 = vadd.xlane.f32.xlu0 %v466_v53  ;;  %v71_v53 = vld [vmem:[%s6017_s0 + $0x1c0] sm:$0xff] }
  0x4b   :  { %482 = vadd.xlane.f32.xlu2 %v481_v57  ;;  %479 = vadd.xlane.f32.xlu1 %v478_v58  ;;  %v69_v57 = vld [vmem:[%s6017_s0 + $0x1b0] sm:$0xff] }
  0x4c   :  { %476 = vadd.xlane.f32.xlu0 %v475_v59  ;;  %v562_v59 = vsel %vm393_vm0, %v71_v53, 0.0  ;;  %v556_v61 = vsel %vm393_vm0, %v69_v57, 0.0  ;;  %v88_v53 = vld [vmem:[%s6017_s0 + $0x248] sm:$0xff] }
  0x4d   :  { %v613_v62 = vsel %vm393_vm0, %v88_v53, 0.0 }
  0x53   :  { %491 = vadd.xlane.f32.xlu2 %v490_v63  ;;  %488 = vadd.xlane.f32.xlu1 %v487_v0  ;;  %v73_v63 = vld [vmem:[%s6017_s0 + $0x1d0] sm:$0xff] }
  0x54   :  { %485 = vadd.xlane.f32.xlu0 %v484_v1 }
  0x5b   :  { %500 = vadd.xlane.f32.xlu2 %v499_v5  ;;  %497 = vadd.xlane.f32.xlu1 %v496_v6  ;;  %v568_v5 = vsel %vm393_vm0, %v73_v63, 0.0  ;;  %v565_v6 = vsel %vm393_vm0, %v72_v2, 0.0  ;;  %v92_v2 = vld [vmem:[%s6017_s0 + $0x268] sm:$0xff] }
  0x5c   :  { %494 = vadd.xlane.f32.xlu0 %v493_v7  ;;  %v77_v7 = vld [vmem:[%s6017_s0 + $0x1f0] sm:$0xff] }
  0x63   :  { %509 = vadd.xlane.f32.xlu2 %v508_v11  ;;  %506 = vadd.xlane.f32.xlu1 %v505_v12  ;;  %v75_v11 = vld [vmem:[%s6017_s0 + $0x1e0] sm:$0xff] }
  0x64   :  { %503 = vadd.xlane.f32.xlu0 %v502_v13  ;;  %v580_v13 = vsel %vm393_vm0, %v77_v7, 0.0  ;;  %v574_v15 = vsel %vm393_vm0, %v75_v11, 0.0  ;;  %v90_v7 = vld [vmem:[%s6017_s0 + $0x258] sm:$0xff]  ;;  %v625_v11 = vsel %vm393_vm0, %v92_v2, 0.0 }
  0x6b   :  { %518 = vadd.xlane.f32.xlu2 %v517_v17  ;;  %515 = vadd.xlane.f32.xlu1 %v514_v18  ;;  %v79_v17 = vld [vmem:[%s6017_s0 + $0x200] sm:$0xff] }
  0x6c   :  { %512 = vadd.xlane.f32.xlu0 %v511_v19 }
  0x73   :  { %527 = vadd.xlane.f32.xlu2 %v526_v23  ;;  %524 = vadd.xlane.f32.xlu1 %v523_v24  ;;  %v586_v23 = vsel %vm393_vm0, %v79_v17, 0.0  ;;  %v583_v24 = vsel %vm393_vm0, %v78_v20, 0.0 }
  0x74   :  { %521 = vadd.xlane.f32.xlu0 %v520_v25  ;;  %v83_v25 = vld [vmem:[%s6017_s0 + $0x220] sm:$0xff] }
  0x76   :  { %v3211_v28 = vpop.xlane.xlu2 %407  ;;  %v3213_v29 = vpop.xlane.xlu1 %401 }
  0x77   :  { %v3218_v31 = vpop.xlane.xlu0 %395 }
  0x7b   :  { %536 = vadd.xlane.f32.xlu2 %v535_v32  ;;  %533 = vadd.xlane.f32.xlu1 %v532_v33  ;;  %v81_v32 = vld [vmem:[%s6017_s0 + $0x210] sm:$0xff] }
  0x7c   :  { %530 = vadd.xlane.f32.xlu0 %v529_v34  ;;  %v598_v34 = vsel %vm393_vm0, %v83_v25, 0.0  ;;  %v592_v36 = vsel %vm393_vm0, %v81_v32, 0.0  ;;  %v631_v25 = vsel %vm393_vm0, %v94_v16, 0.0  ;;  %v98_v32 = vld [vmem:[%s6017_s0 + $0x298] sm:$0xff] }
  0x7e   :  { %v3229_v37 = vpop.xlane.xlu2 %410  ;;  %v3231_v38 = vpop.xlane.xlu1 %404 }
  0x7f   :  { %v3236_v40 = vpop.xlane.xlu0 %398 }
  0x83   :  { %545 = vadd.xlane.f32.xlu2 %v544_v41  ;;  %542 = vadd.xlane.f32.xlu1 %v541_v42  ;;  %v85_v41 = vld [vmem:[%s6017_s0 + $0x230] sm:$0xff] }
  0x84   :  { %539 = vadd.xlane.f32.xlu0 %v538_v43 }
  0x86   :  { %v3247_v46 = vpop.xlane.xlu2 %419  ;;  %v3249_v47 = vpop.xlane.xlu1 %416 }
  0x87   :  { %v3254_v49 = vpop.xlane.xlu0 %413 }
  0x8b   :  { %554 = vadd.xlane.f32.xlu2 %v553_v50  ;;  %551 = vadd.xlane.f32.xlu1 %v550_v51  ;;  %v604_v50 = vsel %vm393_vm0, %v85_v41, 0.0  ;;  %v601_v51 = vsel %vm393_vm0, %v84_v44, 0.0  ;;  %v643_v44 = vsel %vm393_vm0, %v98_v32, 0.0  ;;  %v106_v32 = vld [vmem:[%s6017_s0 + $0x2d8] sm:$0xff] }
  0x8c   :  { %548 = vadd.xlane.f32.xlu0 %v547_v52  ;;  %v89_v52 = vld [vmem:[%s6017_s0 + $0x250] sm:$0xff] }
  0x8e   :  { %v3265_v55 = vpop.xlane.xlu2 %428  ;;  %v3267_v56 = vpop.xlane.xlu1 %425 }
  0x8f   :  { %v3272_v58 = vpop.xlane.xlu0 %422 }
  0x93   :  { %563 = vadd.xlane.f32.xlu2 %v562_v59  ;;  %560 = vadd.xlane.f32.xlu1 %v559_v60  ;;  %v87_v59 = vld [vmem:[%s6017_s0 + $0x240] sm:$0xff] }
  0x94   :  { %557 = vadd.xlane.f32.xlu0 %v556_v61  ;;  %v616_v61 = vsel %vm393_vm0, %v89_v52, 0.0  ;;  %v610_v63 = vsel %vm393_vm0, %v87_v59, 0.0  ;;  %v100_v52 = vld [vmem:[%s6017_s0 + $0x2a8] sm:$0xff] }
  0x95   :  { %v649_v2 = vsel %vm393_vm0, %v100_v52, 0.0 }
  0x96   :  { %v3283_v0 = vpop.xlane.xlu2 %437  ;;  %v3285_v1 = vpop.xlane.xlu1 %434 }
  0x97   :  { %v3290_v3 = vpop.xlane.xlu0 %431 }
  0x9b   :  { %572 = vadd.xlane.f32.xlu2 %v571_v4  ;;  %569 = vadd.xlane.f32.xlu1 %v568_v5  ;;  %v91_v4 = vld [vmem:[%s6017_s0 + $0x260] sm:$0xff] }
  0x9c   :  { %566 = vadd.xlane.f32.xlu0 %v565_v6 }
  0x9e   :  { %v3301_v9 = vpop.xlane.xlu2 %446  ;;  %v3303_v10 = vpop.xlane.xlu1 %443 }
  0x9f   :  { %v3308_v12 = vpop.xlane.xlu0 %440 }
  0xa3   :  { %581 = vadd.xlane.f32.xlu2 %v580_v13  ;;  %578 = vadd.xlane.f32.xlu1 %v577_v14  ;;  %v622_v13 = vsel %vm393_vm0, %v91_v4, 0.0  ;;  %v619_v14 = vsel %vm393_vm0, %v90_v7, 0.0  ;;  %v104_v7 = vld [vmem:[%s6017_s0 + $0x2c8] sm:$0xff] }
  0xa4   :  { %575 = vadd.xlane.f32.xlu0 %v574_v15  ;;  %v95_v15 = vld [vmem:[%s6017_s0 + $0x280] sm:$0xff] }
  0xa6   :  { %v3319_v18 = vpop.xlane.xlu2 %455  ;;  %v3321_v19 = vpop.xlane.xlu1 %452 }
  0xa7   :  { %v3326_v21 = vpop.xlane.xlu0 %449 }
  0xab   :  { %590 = vadd.xlane.f32.xlu2 %v589_v22  ;;  %587 = vadd.xlane.f32.xlu1 %v586_v23  ;;  %v93_v22 = vld [vmem:[%s6017_s0 + $0x270] sm:$0xff] }
  0xac   :  { %584 = vadd.xlane.f32.xlu0 %v583_v24  ;;  %v634_v24 = vsel %vm393_vm0, %v95_v15, 0.0  ;;  %v628_v26 = vsel %vm393_vm0, %v93_v22, 0.0  ;;  %v102_v15 = vld [vmem:[%s6017_s0 + $0x2b8] sm:$0xff]  ;;  %v661_v22 = vsel %vm393_vm0, %v104_v7, 0.0  ;;  %v108_v7 = vld [vmem:[%s6017_s0 + $0x2e8] sm:$0xff] }
  0xae   :  { %v3337_v27 = vpop.xlane.xlu2 %464  ;;  %v3339_v30 = vpop.xlane.xlu1 %461 }
  0xaf   :  { %v3344_v33 = vpop.xlane.xlu0 %458 }
  0xb3   :  { %599 = vadd.xlane.f32.xlu2 %v598_v34  ;;  %596 = vadd.xlane.f32.xlu1 %v595_v35  ;;  %v97_v34 = vld [vmem:[%s6017_s0 + $0x290] sm:$0xff] }
  0xb4   :  { %593 = vadd.xlane.f32.xlu0 %v592_v36 }
  0xb6   :  { %v3355_v42 = vpop.xlane.xlu2 %473  ;;  %v3357_v43 = vpop.xlane.xlu1 %470 }
  0xb7   :  { %v3362_v45 = vpop.xlane.xlu0 %467 }
  0xbb   :  { %608 = vadd.xlane.f32.xlu2 %v607_v48  ;;  %605 = vadd.xlane.f32.xlu1 %v604_v50  ;;  %v640_v48 = vsel %vm393_vm0, %v97_v34, 0.0  ;;  %v637_v50 = vsel %vm393_vm0, %v96_v39, 0.0 }
  0xbc   :  { %602 = vadd.xlane.f32.xlu0 %v601_v51  ;;  %v101_v51 = vld [vmem:[%s6017_s0 + $0x2b0] sm:$0xff] }
  0xbe   :  { %v3373_v54 = vpop.xlane.xlu2 %482  ;;  %v3375_v57 = vpop.xlane.xlu1 %479 }
  0xbf   :  { %v3380_v60 = vpop.xlane.xlu0 %476 }
  0xc3   :  { %617 = vadd.xlane.f32.xlu2 %v616_v61  ;;  %614 = vadd.xlane.f32.xlu1 %v613_v62  ;;  %v99_v61 = vld [vmem:[%s6017_s0 + $0x2a0] sm:$0xff] }
  0xc4   :  { %611 = vadd.xlane.f32.xlu0 %v610_v63  ;;  %v652_v63 = vsel %vm393_vm0, %v101_v51, 0.0  ;;  %v646_v4 = vsel %vm393_vm0, %v99_v61, 0.0  ;;  %v667_v51 = vsel %vm393_vm0, %v106_v32, 0.0  ;;  %v110_v61 = vld [vmem:[%s6017_s0 + $0x2f8] sm:$0xff] }
  0xc6   :  { %v3391_v5 = vpop.xlane.xlu2 %491  ;;  %v3393_v6 = vpop.xlane.xlu1 %488 }
  0xc7   :  { %v3398_v8 = vpop.xlane.xlu0 %485 }
  0xcb   :  { %626 = vadd.xlane.f32.xlu2 %v625_v11  ;;  %623 = vadd.xlane.f32.xlu1 %v622_v13  ;;  %v103_v11 = vld [vmem:[%s6017_s0 + $0x2c0] sm:$0xff] }
  0xcc   :  { %620 = vadd.xlane.f32.xlu0 %v619_v14 }
  0xce   :  { %v3409_v17 = vpop.xlane.xlu2 %500  ;;  %v3411_v20 = vpop.xlane.xlu1 %497 }
  0xcf   :  { %v3416_v23 = vpop.xlane.xlu0 %494 }
  0xd3   :  { %635 = vadd.xlane.f32.xlu2 %v634_v24  ;;  %632 = vadd.xlane.f32.xlu1 %v631_v25  ;;  %v658_v24 = vsel %vm393_vm0, %v103_v11, 0.0  ;;  %v655_v25 = vsel %vm393_vm0, %v102_v15, 0.0  ;;  %v679_v15 = vsel %vm393_vm0, %v110_v61, 0.0 }
  0xd4   :  { %629 = vadd.xlane.f32.xlu0 %v628_v26  ;;  %v107_v26 = vld [vmem:[%s6017_s0 + $0x2e0] sm:$0xff] }
  0xd6   :  { %v3427_v35 = vpop.xlane.xlu2 %509  ;;  %v3429_v36 = vpop.xlane.xlu1 %506 }
  0xd7   :  { %v3434_v41 = vpop.xlane.xlu0 %503 }
  0xdb   :  { %644 = vadd.xlane.f32.xlu2 %v643_v44  ;;  %641 = vadd.xlane.f32.xlu1 %v640_v48  ;;  %v105_v44 = vld [vmem:[%s6017_s0 + $0x2d0] sm:$0xff] }
  0xdc   :  { %638 = vadd.xlane.f32.xlu0 %v637_v50  ;;  %v670_v50 = vsel %vm393_vm0, %v107_v26, 0.0  ;;  %v664_v52 = vsel %vm393_vm0, %v105_v44, 0.0  ;;  %v112_v26 = vld [vmem:[%s6017_s0 + $0x308] sm:$0xff] }
  0xdd   :  { %v685_v61 = vsel %vm393_vm0, %v112_v26, 0.0 }
  0xde   :  { %v3445_v53 = vpop.xlane.xlu2 %518  ;;  %v3447_v59 = vpop.xlane.xlu1 %515 }
  0xdf   :  { %v3452_v62 = vpop.xlane.xlu0 %512 }
  0xe3   :  { %653 = vadd.xlane.f32.xlu2 %v652_v63  ;;  %650 = vadd.xlane.f32.xlu1 %v649_v2  ;;  %v109_v63 = vld [vmem:[%s6017_s0 + $0x2f0] sm:$0xff] }
  0xe4   :  { %647 = vadd.xlane.f32.xlu0 %v646_v4 }
  0xe6   :  { %v3463_v13 = vpop.xlane.xlu2 %527  ;;  %v3465_v14 = vpop.xlane.xlu1 %524 }
  0xe7   :  { %6026 = vst [vmem:[#allocation5_spill] sm:$0xff] %v3463_v13  ;;  %v3470_v16 = vpop.xlane.xlu0 %521 }
  0xe8   :  { %6027 = vst [vmem:[#allocation6_spill] sm:$0xff] %v3465_v14 }
  0xe9   :  { %6028 = vst [vmem:[#allocation7_spill] sm:$0xff] %v3470_v16 }
  0xeb   :  { %662 = vadd.xlane.f32.xlu2 %v661_v22  ;;  %659 = vadd.xlane.f32.xlu1 %v658_v24  ;;  %v676_v22 = vsel %vm393_vm0, %v109_v63, 0.0  ;;  %v673_v24 = vsel %vm393_vm0, %v108_v7, 0.0  ;;  %v116_v7 = vld [vmem:[%s6017_s0 + $0x328] sm:$0xff] }
  0xec   :  { %656 = vadd.xlane.f32.xlu0 %v655_v25  ;;  %v113_v25 = vld [vmem:[%s6017_s0 + $0x310] sm:$0xff] }
  0xee   :  { %v3481_v34 = vpop.xlane.xlu2 %536  ;;  %v3483_v39 = vpop.xlane.xlu1 %533 }
  0xef   :  { %6029 = vst [vmem:[#allocation8_spill] sm:$0xff] %v3481_v34  ;;  %v3488_v48 = vpop.xlane.xlu0 %530 }
  0xf0   :  { %6030 = vst [vmem:[#allocation9_spill] sm:$0xff] %v3483_v39 }
  0xf1   :  { %6031 = vst [vmem:[#allocation10_spill] sm:$0xff] %v3488_v48 }
  0xf3   :  { %671 = vadd.xlane.f32.xlu2 %v670_v50  ;;  %668 = vadd.xlane.f32.xlu1 %v667_v51  ;;  %v111_v50 = vld [vmem:[%s6017_s0 + $0x300] sm:$0xff] }
  0xf4   :  { %665 = vadd.xlane.f32.xlu0 %v664_v52  ;;  %v688_v52 = vsel %vm393_vm0, %v113_v25, 0.0  ;;  %v682_v63 = vsel %vm393_vm0, %v111_v50, 0.0  ;;  %v114_v25 = vld [vmem:[%s6017_s0 + $0x318] sm:$0xff]  ;;  %v697_v50 = vsel %vm393_vm0, %v116_v7, 0.0  ;;  %v117_v7 = vld [vmem:[%s6017_s0 + $0x330] sm:$0xff] }
  0xf6   :  { %v3499_v2 = vpop.xlane.xlu2 %545  ;;  %v3501_v4 = vpop.xlane.xlu1 %542 }
  0xf7   :  { %6032 = vst [vmem:[#allocation11_spill] sm:$0xff] %v3499_v2  ;;  %v3506_v11 = vpop.xlane.xlu0 %539 }
  0xf8   :  { %6033 = vst [vmem:[#allocation12_spill] sm:$0xff] %v3501_v4 }
  0xf9   :  { %6034 = vst [vmem:[#allocation13_spill] sm:$0xff] %v3506_v11 }
  0xfb   :  { %680 = vadd.xlane.f32.xlu2 %v679_v15  ;;  %677 = vadd.xlane.f32.xlu1 %v676_v22  ;;  %v115_v15 = vld [vmem:[%s6017_s0 + $0x320] sm:$0xff] }
  0xfc   :  { %674 = vadd.xlane.f32.xlu0 %v673_v24 }
  0xfe   :  { %v3517_v32 = vpop.xlane.xlu2 %554  ;;  %v3519_v44 = vpop.xlane.xlu1 %551 }
  0xff   :  { %6035 = vst [vmem:[#allocation14_spill] sm:$0xff] %v3517_v32  ;;  %v3524_v51 = vpop.xlane.xlu0 %548 }
 0x100   :  { %6036 = vst [vmem:[#allocation15_spill] sm:$0xff] %v3519_v44 }
 0x101   :  { %6037 = vst [vmem:[#allocation16_spill] sm:$0xff] %v3524_v51 }
 0x103   :  { %689 = vadd.xlane.f32.xlu2 %v688_v52  ;;  %686 = vadd.xlane.f32.xlu1 %v685_v61  ;;  %v694_v52 = vsel %vm393_vm0, %v115_v15, 0.0  ;;  %v691_v61 = vsel %vm393_vm0, %v114_v25, 0.0 }
 0x104   :  { %683 = vadd.xlane.f32.xlu0 %v682_v63  ;;  %v119_v63 = vld [vmem:[%s6017_s0 + $0x340] sm:$0xff] }
 0x105   :  { %v706_v25 = vsel %vm393_vm0, %v119_v63, 0.0 }
 0x106   :  { %v3535_v22 = vpop.xlane.xlu2 %563  ;;  %v3537_v24 = vpop.xlane.xlu1 %560 }
 0x107   :  { %6038 = vst [vmem:[#allocation17_spill] sm:$0xff] %v3535_v22  ;;  %v3542_v26 = vpop.xlane.xlu0 %557  ;;  %v118_v22 = vld [vmem:[%s6017_s0 + $0x338] sm:$0xff] }
 0x108   :  { %6039 = vst [vmem:[#allocation18_spill] sm:$0xff] %v3537_v24 }
 0x109   :  { %6040 = vst [vmem:[#allocation19_spill] sm:$0xff] %v3542_v26 }
 0x10b   :  { %698 = vadd.xlane.f32.xlu2 %v697_v50  ;;  %695 = vadd.xlane.f32.xlu1 %v694_v52  ;;  %v703_v50 = vsel %vm393_vm0, %v118_v22, 0.0  ;;  %v700_v52 = vsel %vm393_vm0, %v117_v7, 0.0  ;;  %v120_v22 = vld [vmem:[%s6017_s0 + $0x348] sm:$0xff] }
 0x10c   :  { %692 = vadd.xlane.f32.xlu0 %v691_v61  ;;  %v122_v61 = vld [vmem:[%s6017_s0 + $0x358] sm:$0xff] }
 0x10d   :  { %v715_v7 = vsel %vm393_vm0, %v122_v61, 0.0 }
 0x10e   :  { %v3553_v24 = vpop.xlane.xlu2 %572  ;;  %v3555_v26 = vpop.xlane.xlu1 %569 }
 0x10f   :  { %6041 = vst [vmem:[#allocation20_spill] sm:$0xff] %v3553_v24  ;;  %v3560_v15 = vpop.xlane.xlu0 %566  ;;  %v121_v24 = vld [vmem:[%s6017_s0 + $0x350] sm:$0xff] }
 0x110   :  { %6042 = vst [vmem:[#allocation21_spill] sm:$0xff] %v3555_v26 }
 0x111   :  { %6043 = vst [vmem:[#allocation22_spill] sm:$0xff] %v3560_v15 }
 0x113   :  { %707 = vadd.xlane.f32.xlu2 %v706_v25  ;;  %704 = vadd.xlane.f32.xlu1 %v703_v50  ;;  %v712_v25 = vsel %vm393_vm0, %v121_v24, 0.0  ;;  %v709_v50 = vsel %vm393_vm0, %v120_v22, 0.0  ;;  %v123_v24 = vld [vmem:[%s6017_s0 + $0x360] sm:$0xff] }
 0x114   :  { %701 = vadd.xlane.f32.xlu0 %v700_v52  ;;  %v125_v52 = vld [vmem:[%s6017_s0 + $0x370] sm:$0xff] }
 0x115   :  { %v724_v22 = vsel %vm393_vm0, %v125_v52, 0.0 }
 0x116   :  { %v3571_v26 = vpop.xlane.xlu2 %581  ;;  %v3573_v15 = vpop.xlane.xlu1 %578 }
 0x117   :  { %6044 = vst [vmem:[#allocation23_spill] sm:$0xff] %v3571_v26  ;;  %v3578_v63 = vpop.xlane.xlu0 %575  ;;  %v124_v26 = vld [vmem:[%s6017_s0 + $0x368] sm:$0xff] }
 0x118   :  { %6045 = vst [vmem:[#allocation24_spill] sm:$0xff] %v3573_v15 }
 0x119   :  { %6046 = vst [vmem:[#allocation25_spill] sm:$0xff] %v3578_v63 }
 0x11b   :  { %716 = vadd.xlane.f32.xlu2 %v715_v7  ;;  %713 = vadd.xlane.f32.xlu1 %v712_v25  ;;  %v721_v7 = vsel %vm393_vm0, %v124_v26, 0.0  ;;  %v718_v25 = vsel %vm393_vm0, %v123_v24, 0.0  ;;  %v126_v26 = vld [vmem:[%s6017_s0 + $0x378] sm:$0xff] }
 0x11c   :  { %710 = vadd.xlane.f32.xlu0 %v709_v50  ;;  %v128_v50 = vld [vmem:[%s6017_s0 + $0x388] sm:$0xff] }
 0x11d   :  { %v733_v24 = vsel %vm393_vm0, %v128_v50, 0.0 }
 0x11e   :  { %v3589_v15 = vpop.xlane.xlu2 %590  ;;  %v3591_v63 = vpop.xlane.xlu1 %587 }
 0x11f   :  { %6047 = vst [vmem:[#allocation26_spill] sm:$0xff] %v3589_v15  ;;  %v3596_v61 = vpop.xlane.xlu0 %584 }
 0x120   :  { %6048 = vst [vmem:[#allocation27_spill] sm:$0xff] %v3591_v63  ;;  %v127_v63 = vld [vmem:[%s6017_s0 + $0x380] sm:$0xff] }
 0x121   :  { %6049 = vst [vmem:[#allocation28_spill] sm:$0xff] %v3596_v61 }
 0x123   :  { %725 = vadd.xlane.f32.xlu2 %v724_v22  ;;  %722 = vadd.xlane.f32.xlu1 %v721_v7  ;;  %v730_v22 = vsel %vm393_vm0, %v127_v63, 0.0  ;;  %v727_v7 = vsel %vm393_vm0, %v126_v26, 0.0  ;;  %v129_v63 = vld [vmem:[%s6017_s0 + $0x390] sm:$0xff] }
 0x124   :  { %719 = vadd.xlane.f32.xlu0 %v718_v25  ;;  %v131_v25 = vld [vmem:[%s6017_s0 + $0x3a0] sm:$0xff] }
 0x125   :  { %v742_v26 = vsel %vm393_vm0, %v131_v25, 0.0 }
 0x126   :  { %v3607_v15 = vpop.xlane.xlu2 %599  ;;  %v3609_v61 = vpop.xlane.xlu1 %596 }
 0x127   :  { %6050 = vst [vmem:[#allocation29_spill] sm:$0xff] %v3607_v15  ;;  %v3614_v52 = vpop.xlane.xlu0 %593  ;;  %v130_v15 = vld [vmem:[%s6017_s0 + $0x398] sm:$0xff] }
 0x128   :  { %6051 = vst [vmem:[#allocation30_spill] sm:$0xff] %v3609_v61 }
 0x129   :  { %6052 = vst [vmem:[#allocation31_spill] sm:$0xff] %v3614_v52 }
 0x12b   :  { %734 = vadd.xlane.f32.xlu2 %v733_v24  ;;  %731 = vadd.xlane.f32.xlu1 %v730_v22  ;;  %v739_v24 = vsel %vm393_vm0, %v130_v15, 0.0  ;;  %v736_v22 = vsel %vm393_vm0, %v129_v63, 0.0  ;;  %v132_v15 = vld [vmem:[%s6017_s0 + $0x3a8] sm:$0xff] }
 0x12c   :  { %728 = vadd.xlane.f32.xlu0 %v727_v7  ;;  %v134_v7 = vld [vmem:[%s6017_s0 + $0x3b8] sm:$0xff] }
 0x12d   :  { %v751_v63 = vsel %vm393_vm0, %v134_v7, 0.0 }
 0x12e   :  { %v3625_v61 = vpop.xlane.xlu2 %608  ;;  %v3627_v52 = vpop.xlane.xlu1 %605 }
 0x12f   :  { %6053 = vst [vmem:[#allocation32_spill] sm:$0xff] %v3625_v61  ;;  %v3632_v50 = vpop.xlane.xlu0 %602  ;;  %v133_v61 = vld [vmem:[%s6017_s0 + $0x3b0] sm:$0xff] }
 0x130   :  { %6054 = vst [vmem:[#allocation33_spill] sm:$0xff] %v3627_v52 }
 0x131   :  { %6055 = vst [vmem:[#allocation34_spill] sm:$0xff] %v3632_v50 }
 0x133   :  { %743 = vadd.xlane.f32.xlu2 %v742_v26  ;;  %740 = vadd.xlane.f32.xlu1 %v739_v24  ;;  %v748_v26 = vsel %vm393_vm0, %v133_v61, 0.0  ;;  %v745_v24 = vsel %vm393_vm0, %v132_v15, 0.0  ;;  %v135_v61 = vld [vmem:[%s6017_s0 + $0x3c0] sm:$0xff] }
 0x134   :  { %737 = vadd.xlane.f32.xlu0 %v736_v22  ;;  %v137_v22 = vld [vmem:[%s6017_s0 + $0x3d0] sm:$0xff] }
 0x135   :  { %v760_v15 = vsel %vm393_vm0, %v137_v22, 0.0 }
 0x136   :  { %v3643_v52 = vpop.xlane.xlu2 %617  ;;  %v3645_v50 = vpop.xlane.xlu1 %614 }
 0x137   :  { %6056 = vst [vmem:[#allocation35_spill] sm:$0xff] %v3643_v52  ;;  %v3650_v25 = vpop.xlane.xlu0 %611  ;;  %v136_v52 = vld [vmem:[%s6017_s0 + $0x3c8] sm:$0xff] }
 0x138   :  { %6057 = vst [vmem:[#allocation36_spill] sm:$0xff] %v3645_v50 }
 0x139   :  { %6058 = vst [vmem:[#allocation37_spill] sm:$0xff] %v3650_v25 }
 0x13b   :  { %752 = vadd.xlane.f32.xlu2 %v751_v63  ;;  %749 = vadd.xlane.f32.xlu1 %v748_v26  ;;  %v757_v63 = vsel %vm393_vm0, %v136_v52, 0.0  ;;  %v754_v26 = vsel %vm393_vm0, %v135_v61, 0.0  ;;  %v138_v52 = vld [vmem:[%s6017_s0 + $0x3d8] sm:$0xff] }
 0x13c   :  { %746 = vadd.xlane.f32.xlu0 %v745_v24  ;;  %v140_v24 = vld [vmem:[%s6017_s0 + $0x3e8] sm:$0xff] }
 0x13d   :  { %v769_v61 = vsel %vm393_vm0, %v140_v24, 0.0 }
 0x13e   :  { %v3661_v50 = vpop.xlane.xlu2 %626  ;;  %v3663_v25 = vpop.xlane.xlu1 %623 }
 0x13f   :  { %6059 = vst [vmem:[#allocation38_spill] sm:$0xff] %v3661_v50  ;;  %v3668_v7 = vpop.xlane.xlu0 %620  ;;  %v139_v50 = vld [vmem:[%s6017_s0 + $0x3e0] sm:$0xff] }
 0x140   :  { %6060 = vst [vmem:[#allocation39_spill] sm:$0xff] %v3663_v25 }
 0x141   :  { %6061 = vst [vmem:[#allocation40_spill] sm:$0xff] %v3668_v7 }
 0x143   :  { %761 = vadd.xlane.f32.xlu2 %v760_v15  ;;  %758 = vadd.xlane.f32.xlu1 %v757_v63  ;;  %v766_v15 = vsel %vm393_vm0, %v139_v50, 0.0  ;;  %v763_v63 = vsel %vm393_vm0, %v138_v52, 0.0  ;;  %v141_v50 = vld [vmem:[%s6017_s0 + $0x3f0] sm:$0xff] }
 0x144   :  { %755 = vadd.xlane.f32.xlu0 %v754_v26  ;;  %v143_v26 = vld [vmem:[%s6017_s0 + $0x400] sm:$0xff] }
 0x145   :  { %v778_v52 = vsel %vm393_vm0, %v143_v26, 0.0 }
 0x146   :  { %v3679_v25 = vpop.xlane.xlu2 %635  ;;  %v3681_v7 = vpop.xlane.xlu1 %632 }
 0x147   :  { %6062 = vst [vmem:[#allocation41_spill] sm:$0xff] %v3679_v25  ;;  %v3686_v22 = vpop.xlane.xlu0 %629  ;;  %v142_v25 = vld [vmem:[%s6017_s0 + $0x3f8] sm:$0xff] }
 0x148   :  { %6063 = vst [vmem:[#allocation42_spill] sm:$0xff] %v3681_v7 }
 0x149   :  { %6064 = vst [vmem:[#allocation43_spill] sm:$0xff] %v3686_v22 }
 0x14b   :  { %770 = vadd.xlane.f32.xlu2 %v769_v61  ;;  %767 = vadd.xlane.f32.xlu1 %v766_v15  ;;  %v775_v61 = vsel %vm393_vm0, %v142_v25, 0.0  ;;  %v772_v15 = vsel %vm393_vm0, %v141_v50, 0.0  ;;  %v144_v25 = vld [vmem:[%s6017_s0 + $0x408] sm:$0xff] }
 0x14c   :  { %764 = vadd.xlane.f32.xlu0 %v763_v63  ;;  %v146_v63 = vld [vmem:[%s6017_s0 + $0x418] sm:$0xff] }
 0x14d   :  { %v787_v50 = vsel %vm393_vm0, %v146_v63, 0.0 }
 0x14e   :  { %v3697_v7 = vpop.xlane.xlu2 %644  ;;  %v3699_v22 = vpop.xlane.xlu1 %641 }
 0x14f   :  { %6065 = vst [vmem:[#allocation44_spill] sm:$0xff] %v3697_v7  ;;  %v3704_v24 = vpop.xlane.xlu0 %638  ;;  %v145_v7 = vld [vmem:[%s6017_s0 + $0x410] sm:$0xff] }
 0x150   :  { %6066 = vst [vmem:[#allocation45_spill] sm:$0xff] %v3699_v22 }
 0x151   :  { %6067 = vst [vmem:[#allocation46_spill] sm:$0xff] %v3704_v24 }
 0x153   :  { %779 = vadd.xlane.f32.xlu2 %v778_v52  ;;  %776 = vadd.xlane.f32.xlu1 %v775_v61  ;;  %v784_v52 = vsel %vm393_vm0, %v145_v7, 0.0  ;;  %v781_v61 = vsel %vm393_vm0, %v144_v25, 0.0  ;;  %v147_v7 = vld [vmem:[%s6017_s0 + $0x420] sm:$0xff] }
 0x154   :  { %773 = vadd.xlane.f32.xlu0 %v772_v15  ;;  %v149_v15 = vld [vmem:[%s6017_s0 + $0x430] sm:$0xff] }
 0x155   :  { %v796_v25 = vsel %vm393_vm0, %v149_v15, 0.0 }
 0x156   :  { %v3715_v22 = vpop.xlane.xlu2 %653  ;;  %v3717_v24 = vpop.xlane.xlu1 %650 }
 0x157   :  { %6068 = vst [vmem:[#allocation47_spill] sm:$0xff] %v3715_v22  ;;  %v3722_v26 = vpop.xlane.xlu0 %647  ;;  %v148_v22 = vld [vmem:[%s6017_s0 + $0x428] sm:$0xff] }
 0x158   :  { %6069 = vst [vmem:[#allocation48_spill] sm:$0xff] %v3717_v24 }
 0x159   :  { %6070 = vst [vmem:[#allocation49_spill] sm:$0xff] %v3722_v26 }
 0x15b   :  { %788 = vadd.xlane.f32.xlu2 %v787_v50  ;;  %785 = vadd.xlane.f32.xlu1 %v784_v52  ;;  %v793_v50 = vsel %vm393_vm0, %v148_v22, 0.0  ;;  %v790_v52 = vsel %vm393_vm0, %v147_v7, 0.0  ;;  %v150_v22 = vld [vmem:[%s6017_s0 + $0x438] sm:$0xff] }
 0x15c   :  { %782 = vadd.xlane.f32.xlu0 %v781_v61  ;;  %v152_v61 = vld [vmem:[%s6017_s0 + $0x448] sm:$0xff] }
 0x15d   :  { %v805_v7 = vsel %vm393_vm0, %v152_v61, 0.0 }
 0x15e   :  { %v3733_v24 = vpop.xlane.xlu2 %662  ;;  %v3735_v26 = vpop.xlane.xlu1 %659 }
 0x15f   :  { %6071 = vst [vmem:[#allocation50_spill] sm:$0xff] %v3733_v24  ;;  %v3740_v63 = vpop.xlane.xlu0 %656  ;;  %v151_v24 = vld [vmem:[%s6017_s0 + $0x440] sm:$0xff] }
 0x160   :  { %6072 = vst [vmem:[#allocation51_spill] sm:$0xff] %v3735_v26 }
 0x161   :  { %6073 = vst [vmem:[#allocation52_spill] sm:$0xff] %v3740_v63 }
 0x163   :  { %797 = vadd.xlane.f32.xlu2 %v796_v25  ;;  %794 = vadd.xlane.f32.xlu1 %v793_v50  ;;  %v802_v25 = vsel %vm393_vm0, %v151_v24, 0.0  ;;  %v799_v50 = vsel %vm393_vm0, %v150_v22, 0.0  ;;  %v153_v24 = vld [vmem:[%s6017_s0 + $0x450] sm:$0xff] }
 0x164   :  { %791 = vadd.xlane.f32.xlu0 %v790_v52  ;;  %v155_v52 = vld [vmem:[%s6017_s0 + $0x460] sm:$0xff] }
 0x165   :  { %v814_v22 = vsel %vm393_vm0, %v155_v52, 0.0 }
 0x166   :  { %v3751_v26 = vpop.xlane.xlu2 %671  ;;  %v3753_v63 = vpop.xlane.xlu1 %668 }
 0x167   :  { %6074 = vst [vmem:[#allocation53_spill] sm:$0xff] %v3751_v26  ;;  %v3758_v15 = vpop.xlane.xlu0 %665  ;;  %v154_v26 = vld [vmem:[%s6017_s0 + $0x458] sm:$0xff] }
 0x168   :  { %6075 = vst [vmem:[#allocation54_spill] sm:$0xff] %v3753_v63 }
 0x169   :  { %6076 = vst [vmem:[#allocation55_spill] sm:$0xff] %v3758_v15 }
 0x16b   :  { %806 = vadd.xlane.f32.xlu2 %v805_v7  ;;  %803 = vadd.xlane.f32.xlu1 %v802_v25  ;;  %v811_v7 = vsel %vm393_vm0, %v154_v26, 0.0  ;;  %v808_v25 = vsel %vm393_vm0, %v153_v24, 0.0  ;;  %v156_v26 = vld [vmem:[%s6017_s0 + $0x468] sm:$0xff] }
 0x16c   :  { %800 = vadd.xlane.f32.xlu0 %v799_v50  ;;  %v158_v50 = vld [vmem:[%s6017_s0 + $0x478] sm:$0xff] }
 0x16d   :  { %v823_v24 = vsel %vm393_vm0, %v158_v50, 0.0 }
 0x16e   :  { %v3769_v63 = vpop.xlane.xlu2 %680  ;;  %v3771_v15 = vpop.xlane.xlu1 %677 }
 0x16f   :  { %6077 = vst [vmem:[#allocation56_spill] sm:$0xff] %v3769_v63  ;;  %v3776_v61 = vpop.xlane.xlu0 %674  ;;  %v157_v63 = vld [vmem:[%s6017_s0 + $0x470] sm:$0xff] }
 0x170   :  { %6078 = vst [vmem:[#allocation57_spill] sm:$0xff] %v3771_v15 }
 0x171   :  { %6079 = vst [vmem:[#allocation58_spill] sm:$0xff] %v3776_v61 }
 0x173   :  { %815 = vadd.xlane.f32.xlu2 %v814_v22  ;;  %812 = vadd.xlane.f32.xlu1 %v811_v7  ;;  %v820_v22 = vsel %vm393_vm0, %v157_v63, 0.0  ;;  %v817_v7 = vsel %vm393_vm0, %v156_v26, 0.0  ;;  %v159_v63 = vld [vmem:[%s6017_s0 + $0x480] sm:$0xff] }
 0x174   :  { %809 = vadd.xlane.f32.xlu0 %v808_v25  ;;  %v161_v25 = vld [vmem:[%s6017_s0 + $0x490] sm:$0xff] }
 0x175   :  { %v832_v26 = vsel %vm393_vm0, %v161_v25, 0.0 }
 0x176   :  { %v3787_v15 = vpop.xlane.xlu2 %689  ;;  %v3789_v61 = vpop.xlane.xlu1 %686 }
 0x177   :  { %6080 = vst [vmem:[#allocation59_spill] sm:$0xff] %v3787_v15  ;;  %v3794_v52 = vpop.xlane.xlu0 %683  ;;  %v160_v15 = vld [vmem:[%s6017_s0 + $0x488] sm:$0xff] }
 0x178   :  { %6081 = vst [vmem:[#allocation60_spill] sm:$0xff] %v3789_v61 }
 0x179   :  { %6082 = vst [vmem:[#allocation61_spill] sm:$0xff] %v3794_v52 }
 0x17b   :  { %824 = vadd.xlane.f32.xlu2 %v823_v24  ;;  %821 = vadd.xlane.f32.xlu1 %v820_v22  ;;  %v829_v24 = vsel %vm393_vm0, %v160_v15, 0.0  ;;  %v826_v22 = vsel %vm393_vm0, %v159_v63, 0.0  ;;  %v162_v15 = vld [vmem:[%s6017_s0 + $0x498] sm:$0xff] }
 0x17c   :  { %818 = vadd.xlane.f32.xlu0 %v817_v7  ;;  %v164_v7 = vld [vmem:[%s6017_s0 + $0x4a8] sm:$0xff] }
 0x17d   :  { %v841_v63 = vsel %vm393_vm0, %v164_v7, 0.0 }
 0x17e   :  { %v3805_v61 = vpop.xlane.xlu2 %698  ;;  %v3807_v52 = vpop.xlane.xlu1 %695 }
 0x17f   :  { %6083 = vst [vmem:[#allocation62_spill] sm:$0xff] %v3805_v61  ;;  %v3812_v50 = vpop.xlane.xlu0 %692  ;;  %v163_v61 = vld [vmem:[%s6017_s0 + $0x4a0] sm:$0xff] }
 0x180   :  { %6084 = vst [vmem:[#allocation63_spill] sm:$0xff] %v3807_v52 }
 0x181   :  { %6085 = vst [vmem:[#allocation64_spill] sm:$0xff] %v3812_v50 }
 0x183   :  { %833 = vadd.xlane.f32.xlu2 %v832_v26  ;;  %830 = vadd.xlane.f32.xlu1 %v829_v24  ;;  %v838_v26 = vsel %vm393_vm0, %v163_v61, 0.0  ;;  %v835_v24 = vsel %vm393_vm0, %v162_v15, 0.0  ;;  %v165_v61 = vld [vmem:[%s6017_s0 + $0x4b0] sm:$0xff] }
 0x184   :  { %827 = vadd.xlane.f32.xlu0 %v826_v22  ;;  %v167_v22 = vld [vmem:[%s6017_s0 + $0x4c0] sm:$0xff] }
 0x185   :  { %v850_v15 = vsel %vm393_vm0, %v167_v22, 0.0 }
 0x186   :  { %v3823_v52 = vpop.xlane.xlu2 %707  ;;  %v3825_v50 = vpop.xlane.xlu1 %704 }
 0x187   :  { %6086 = vst [vmem:[#allocation65_spill] sm:$0xff] %v3823_v52  ;;  %v3830_v25 = vpop.xlane.xlu0 %701  ;;  %v166_v52 = vld [vmem:[%s6017_s0 + $0x4b8] sm:$0xff] }
 0x188   :  { %6087 = vst [vmem:[#allocation66_spill] sm:$0xff] %v3825_v50 }
 0x189   :  { %6088 = vst [vmem:[#allocation67_spill] sm:$0xff] %v3830_v25 }
 0x18b   :  { %842 = vadd.xlane.f32.xlu2 %v841_v63  ;;  %839 = vadd.xlane.f32.xlu1 %v838_v26  ;;  %v847_v63 = vsel %vm393_vm0, %v166_v52, 0.0  ;;  %v844_v26 = vsel %vm393_vm0, %v165_v61, 0.0  ;;  %v168_v52 = vld [vmem:[%s6017_s0 + $0x4c8] sm:$0xff] }
 0x18c   :  { %836 = vadd.xlane.f32.xlu0 %v835_v24  ;;  %v170_v24 = vld [vmem:[%s6017_s0 + $0x4d8] sm:$0xff] }
 0x18d   :  { %v859_v61 = vsel %vm393_vm0, %v170_v24, 0.0 }
 0x18e   :  { %v3841_v50 = vpop.xlane.xlu2 %716  ;;  %v3843_v25 = vpop.xlane.xlu1 %713 }
 0x18f   :  { %6089 = vst [vmem:[#allocation68_spill] sm:$0xff] %v3841_v50  ;;  %v3848_v7 = vpop.xlane.xlu0 %710  ;;  %v169_v50 = vld [vmem:[%s6017_s0 + $0x4d0] sm:$0xff] }
 0x190   :  { %6090 = vst [vmem:[#allocation69_spill] sm:$0xff] %v3843_v25 }
 0x191   :  { %6091 = vst [vmem:[#allocation70_spill] sm:$0xff] %v3848_v7 }
 0x193   :  { %851 = vadd.xlane.f32.xlu2 %v850_v15  ;;  %848 = vadd.xlane.f32.xlu1 %v847_v63  ;;  %v856_v15 = vsel %vm393_vm0, %v169_v50, 0.0  ;;  %v853_v63 = vsel %vm393_vm0, %v168_v52, 0.0  ;;  %v171_v50 = vld [vmem:[%s6017_s0 + $0x4e0] sm:$0xff] }
 0x194   :  { %845 = vadd.xlane.f32.xlu0 %v844_v26  ;;  %v173_v26 = vld [vmem:[%s6017_s0 + $0x4f0] sm:$0xff] }
 0x195   :  { %v868_v52 = vsel %vm393_vm0, %v173_v26, 0.0 }
 0x196   :  { %v3859_v25 = vpop.xlane.xlu2 %725  ;;  %v3861_v7 = vpop.xlane.xlu1 %722 }
 0x197   :  { %6092 = vst [vmem:[#allocation71_spill] sm:$0xff] %v3859_v25  ;;  %v3866_v22 = vpop.xlane.xlu0 %719  ;;  %v172_v25 = vld [vmem:[%s6017_s0 + $0x4e8] sm:$0xff] }
 0x198   :  { %6093 = vst [vmem:[#allocation72_spill] sm:$0xff] %v3861_v7 }
 0x199   :  { %6094 = vst [vmem:[#allocation73_spill] sm:$0xff] %v3866_v22 }
 0x19b   :  { %860 = vadd.xlane.f32.xlu2 %v859_v61  ;;  %857 = vadd.xlane.f32.xlu1 %v856_v15  ;;  %v865_v61 = vsel %vm393_vm0, %v172_v25, 0.0  ;;  %v862_v15 = vsel %vm393_vm0, %v171_v50, 0.0  ;;  %v174_v25 = vld [vmem:[%s6017_s0 + $0x4f8] sm:$0xff] }
 0x19c   :  { %854 = vadd.xlane.f32.xlu0 %v853_v63  ;;  %v176_v63 = vld [vmem:[%s6017_s0 + $0x508] sm:$0xff] }
 0x19d   :  { %v877_v50 = vsel %vm393_vm0, %v176_v63, 0.0 }
 0x19e   :  { %v3877_v7 = vpop.xlane.xlu2 %734  ;;  %v3879_v22 = vpop.xlane.xlu1 %731 }
 0x19f   :  { %6095 = vst [vmem:[#allocation74_spill] sm:$0xff] %v3877_v7  ;;  %v3884_v24 = vpop.xlane.xlu0 %728 }
 0x1a0   :  { %6096 = vst [vmem:[#allocation75_spill] sm:$0xff] %v3879_v22  ;;  %v175_v22 = vld [vmem:[%s6017_s0 + $0x500] sm:$0xff] }
 0x1a1   :  { %6097 = vst [vmem:[#allocation76_spill] sm:$0xff] %v3884_v24 }
 0x1a3   :  { %869 = vadd.xlane.f32.xlu2 %v868_v52  ;;  %866 = vadd.xlane.f32.xlu1 %v865_v61  ;;  %v874_v52 = vsel %vm393_vm0, %v175_v22, 0.0  ;;  %v871_v61 = vsel %vm393_vm0, %v174_v25, 0.0  ;;  %v177_v22 = vld [vmem:[%s6017_s0 + $0x510] sm:$0xff] }
 0x1a4   :  { %863 = vadd.xlane.f32.xlu0 %v862_v15  ;;  %v179_v15 = vld [vmem:[%s6017_s0 + $0x520] sm:$0xff] }
 0x1a5   :  { %v886_v25 = vsel %vm393_vm0, %v179_v15, 0.0 }
 0x1a6   :  { %v3895_v7 = vpop.xlane.xlu2 %743  ;;  %v3897_v24 = vpop.xlane.xlu1 %740 }
 0x1a7   :  { %6098 = vst [vmem:[#allocation77_spill] sm:$0xff] %v3895_v7  ;;  %v3902_v26 = vpop.xlane.xlu0 %737  ;;  %v178_v7 = vld [vmem:[%s6017_s0 + $0x518] sm:$0xff] }
 0x1a8   :  { %6099 = vst [vmem:[#allocation78_spill] sm:$0xff] %v3897_v24 }
 0x1a9   :  { %6100 = vst [vmem:[#allocation79_spill] sm:$0xff] %v3902_v26 }
 0x1ab   :  { %878 = vadd.xlane.f32.xlu2 %v877_v50  ;;  %875 = vadd.xlane.f32.xlu1 %v874_v52  ;;  %v883_v50 = vsel %vm393_vm0, %v178_v7, 0.0  ;;  %v880_v52 = vsel %vm393_vm0, %v177_v22, 0.0  ;;  %v180_v7 = vld [vmem:[%s6017_s0 + $0x528] sm:$0xff] }
 0x1ac   :  { %872 = vadd.xlane.f32.xlu0 %v871_v61  ;;  %v182_v61 = vld [vmem:[%s6017_s0 + $0x538] sm:$0xff] }
 0x1ad   :  { %v895_v22 = vsel %vm393_vm0, %v182_v61, 0.0 }
 0x1ae   :  { %v3913_v24 = vpop.xlane.xlu2 %752  ;;  %v3915_v26 = vpop.xlane.xlu1 %749 }
 0x1af   :  { %6101 = vst [vmem:[#allocation80_spill] sm:$0xff] %v3913_v24  ;;  %v3920_v63 = vpop.xlane.xlu0 %746  ;;  %v181_v24 = vld [vmem:[%s6017_s0 + $0x530] sm:$0xff] }
 0x1b0   :  { %6102 = vst [vmem:[#allocation81_spill] sm:$0xff] %v3915_v26 }
 0x1b1   :  { %6103 = vst [vmem:[#allocation82_spill] sm:$0xff] %v3920_v63 }
 0x1b3   :  { %887 = vadd.xlane.f32.xlu2 %v886_v25  ;;  %884 = vadd.xlane.f32.xlu1 %v883_v50  ;;  %v892_v25 = vsel %vm393_vm0, %v181_v24, 0.0  ;;  %v889_v50 = vsel %vm393_vm0, %v180_v7, 0.0  ;;  %v183_v24 = vld [vmem:[%s6017_s0 + $0x540] sm:$0xff] }
 0x1b4   :  { %881 = vadd.xlane.f32.xlu0 %v880_v52  ;;  %v185_v52 = vld [vmem:[%s6017_s0 + $0x550] sm:$0xff] }
 0x1b5   :  { %v904_v7 = vsel %vm393_vm0, %v185_v52, 0.0 }
 0x1b6   :  { %v3931_v26 = vpop.xlane.xlu2 %761  ;;  %v3933_v63 = vpop.xlane.xlu1 %758 }
 0x1b7   :  { %6104 = vst [vmem:[#allocation83_spill] sm:$0xff] %v3931_v26  ;;  %v3938_v15 = vpop.xlane.xlu0 %755  ;;  %v184_v26 = vld [vmem:[%s6017_s0 + $0x548] sm:$0xff] }
 0x1b8   :  { %6105 = vst [vmem:[#allocation84_spill] sm:$0xff] %v3933_v63 }
 0x1b9   :  { %6106 = vst [vmem:[#allocation85_spill] sm:$0xff] %v3938_v15 }
 0x1bb   :  { %896 = vadd.xlane.f32.xlu2 %v895_v22  ;;  %893 = vadd.xlane.f32.xlu1 %v892_v25  ;;  %v901_v22 = vsel %vm393_vm0, %v184_v26, 0.0  ;;  %v898_v25 = vsel %vm393_vm0, %v183_v24, 0.0  ;;  %v186_v26 = vld [vmem:[%s6017_s0 + $0x558] sm:$0xff] }
 0x1bc   :  { %890 = vadd.xlane.f32.xlu0 %v889_v50  ;;  %v188_v50 = vld [vmem:[%s6017_s0 + $0x568] sm:$0xff] }
 0x1bd   :  { %v913_v24 = vsel %vm393_vm0, %v188_v50, 0.0 }
 0x1be   :  { %v3949_v63 = vpop.xlane.xlu2 %770  ;;  %v3951_v15 = vpop.xlane.xlu1 %767 }
 0x1bf   :  { %6107 = vst [vmem:[#allocation86_spill] sm:$0xff] %v3949_v63  ;;  %v3956_v61 = vpop.xlane.xlu0 %764  ;;  %v187_v63 = vld [vmem:[%s6017_s0 + $0x560] sm:$0xff] }
 0x1c0   :  { %6108 = vst [vmem:[#allocation87_spill] sm:$0xff] %v3951_v15 }
 0x1c1   :  { %6109 = vst [vmem:[#allocation88_spill] sm:$0xff] %v3956_v61 }
 0x1c3   :  { %905 = vadd.xlane.f32.xlu2 %v904_v7  ;;  %902 = vadd.xlane.f32.xlu1 %v901_v22  ;;  %v910_v7 = vsel %vm393_vm0, %v187_v63, 0.0  ;;  %v907_v22 = vsel %vm393_vm0, %v186_v26, 0.0  ;;  %v189_v63 = vld [vmem:[%s6017_s0 + $0x570] sm:$0xff] }
 0x1c4   :  { %899 = vadd.xlane.f32.xlu0 %v898_v25  ;;  %v191_v25 = vld [vmem:[%s6017_s0 + $0x580] sm:$0xff] }
 0x1c5   :  { %v922_v26 = vsel %vm393_vm0, %v191_v25, 0.0 }
 0x1c6   :  { %v3967_v15 = vpop.xlane.xlu2 %779  ;;  %v3969_v61 = vpop.xlane.xlu1 %776 }
 0x1c7   :  { %6110 = vst [vmem:[#allocation89_spill] sm:$0xff] %v3967_v15  ;;  %v3974_v52 = vpop.xlane.xlu0 %773  ;;  %v190_v15 = vld [vmem:[%s6017_s0 + $0x578] sm:$0xff] }
 0x1c8   :  { %6111 = vst [vmem:[#allocation90_spill] sm:$0xff] %v3969_v61 }
 0x1c9   :  { %6112 = vst [vmem:[#allocation91_spill] sm:$0xff] %v3974_v52 }
 0x1cb   :  { %914 = vadd.xlane.f32.xlu2 %v913_v24  ;;  %911 = vadd.xlane.f32.xlu1 %v910_v7  ;;  %v919_v24 = vsel %vm393_vm0, %v190_v15, 0.0  ;;  %v916_v7 = vsel %vm393_vm0, %v189_v63, 0.0  ;;  %v192_v15 = vld [vmem:[%s6017_s0 + $0x588] sm:$0xff] }
 0x1cc   :  { %908 = vadd.xlane.f32.xlu0 %v907_v22  ;;  %v194_v22 = vld [vmem:[%s6017_s0 + $0x598] sm:$0xff] }
 0x1cd   :  { %v931_v63 = vsel %vm393_vm0, %v194_v22, 0.0 }
 0x1ce   :  { %v3985_v61 = vpop.xlane.xlu2 %788  ;;  %v3987_v52 = vpop.xlane.xlu1 %785 }
 0x1cf   :  { %6113 = vst [vmem:[#allocation92_spill] sm:$0xff] %v3985_v61  ;;  %v3992_v50 = vpop.xlane.xlu0 %782  ;;  %v193_v61 = vld [vmem:[%s6017_s0 + $0x590] sm:$0xff] }
 0x1d0   :  { %6114 = vst [vmem:[#allocation93_spill] sm:$0xff] %v3987_v52 }
 0x1d1   :  { %6115 = vst [vmem:[#allocation94_spill] sm:$0xff] %v3992_v50 }
 0x1d3   :  { %923 = vadd.xlane.f32.xlu2 %v922_v26  ;;  %920 = vadd.xlane.f32.xlu1 %v919_v24  ;;  %v928_v26 = vsel %vm393_vm0, %v193_v61, 0.0  ;;  %v925_v24 = vsel %vm393_vm0, %v192_v15, 0.0  ;;  %v195_v61 = vld [vmem:[%s6017_s0 + $0x5a0] sm:$0xff] }
 0x1d4   :  { %917 = vadd.xlane.f32.xlu0 %v916_v7  ;;  %v197_v7 = vld [vmem:[%s6017_s0 + $0x5b0] sm:$0xff] }
 0x1d5   :  { %v940_v15 = vsel %vm393_vm0, %v197_v7, 0.0 }
 0x1d6   :  { %v4003_v52 = vpop.xlane.xlu2 %797  ;;  %v4005_v50 = vpop.xlane.xlu1 %794 }
 0x1d7   :  { %6116 = vst [vmem:[#allocation95_spill] sm:$0xff] %v4003_v52  ;;  %v4010_v25 = vpop.xlane.xlu0 %791  ;;  %v196_v52 = vld [vmem:[%s6017_s0 + $0x5a8] sm:$0xff] }
 0x1d8   :  { %6117 = vst [vmem:[#allocation96_spill] sm:$0xff] %v4005_v50 }
 0x1d9   :  { %6118 = vst [vmem:[#allocation97_spill] sm:$0xff] %v4010_v25 }
 0x1db   :  { %932 = vadd.xlane.f32.xlu2 %v931_v63  ;;  %929 = vadd.xlane.f32.xlu1 %v928_v26  ;;  %v937_v63 = vsel %vm393_vm0, %v196_v52, 0.0  ;;  %v934_v26 = vsel %vm393_vm0, %v195_v61, 0.0  ;;  %v198_v52 = vld [vmem:[%s6017_s0 + $0x5b8] sm:$0xff] }
 0x1dc   :  { %926 = vadd.xlane.f32.xlu0 %v925_v24  ;;  %v200_v24 = vld [vmem:[%s6017_s0 + $0x5c8] sm:$0xff] }
 0x1dd   :  { %v949_v61 = vsel %vm393_vm0, %v200_v24, 0.0 }
 0x1de   :  { %v4021_v50 = vpop.xlane.xlu2 %806  ;;  %v4023_v25 = vpop.xlane.xlu1 %803 }
 0x1df   :  { %6119 = vst [vmem:[#allocation98_spill] sm:$0xff] %v4021_v50  ;;  %v4028_v22 = vpop.xlane.xlu0 %800  ;;  %v199_v50 = vld [vmem:[%s6017_s0 + $0x5c0] sm:$0xff] }
 0x1e0   :  { %6120 = vst [vmem:[#allocation99_spill] sm:$0xff] %v4023_v25 }
 0x1e1   :  { %6121 = vst [vmem:[#allocation100_spill] sm:$0xff] %v4028_v22 }
 0x1e3   :  { %941 = vadd.xlane.f32.xlu2 %v940_v15  ;;  %938 = vadd.xlane.f32.xlu1 %v937_v63  ;;  %v946_v15 = vsel %vm393_vm0, %v199_v50, 0.0  ;;  %v943_v63 = vsel %vm393_vm0, %v198_v52, 0.0  ;;  %v201_v50 = vld [vmem:[%s6017_s0 + $0x5d0] sm:$0xff] }
 0x1e4   :  { %935 = vadd.xlane.f32.xlu0 %v934_v26  ;;  %v203_v26 = vld [vmem:[%s6017_s0 + $0x5e0] sm:$0xff] }
 0x1e5   :  { %v958_v52 = vsel %vm393_vm0, %v203_v26, 0.0 }
 0x1e6   :  { %v4039_v25 = vpop.xlane.xlu2 %815  ;;  %v4041_v22 = vpop.xlane.xlu1 %812 }
 0x1e7   :  { %6122 = vst [vmem:[#allocation101_spill] sm:$0xff] %v4039_v25  ;;  %v4046_v7 = vpop.xlane.xlu0 %809  ;;  %v202_v25 = vld [vmem:[%s6017_s0 + $0x5d8] sm:$0xff] }
 0x1e8   :  { %6123 = vst [vmem:[#allocation102_spill] sm:$0xff] %v4041_v22 }
 0x1e9   :  { %6124 = vst [vmem:[#allocation103_spill] sm:$0xff] %v4046_v7 }
 0x1eb   :  { %950 = vadd.xlane.f32.xlu2 %v949_v61  ;;  %947 = vadd.xlane.f32.xlu1 %v946_v15  ;;  %v955_v61 = vsel %vm393_vm0, %v202_v25, 0.0  ;;  %v952_v15 = vsel %vm393_vm0, %v201_v50, 0.0  ;;  %v204_v25 = vld [vmem:[%s6017_s0 + $0x5e8] sm:$0xff] }
 0x1ec   :  { %944 = vadd.xlane.f32.xlu0 %v943_v63  ;;  %v206_v63 = vld [vmem:[%s6017_s0 + $0x5f8] sm:$0xff] }
 0x1ed   :  { %v967_v50 = vsel %vm393_vm0, %v206_v63, 0.0 }
 0x1ee   :  { %v4057_v22 = vpop.xlane.xlu2 %824  ;;  %v4059_v7 = vpop.xlane.xlu1 %821 }
 0x1ef   :  { %6125 = vst [vmem:[#allocation104_spill] sm:$0xff] %v4057_v22  ;;  %v4064_v24 = vpop.xlane.xlu0 %818  ;;  %v205_v22 = vld [vmem:[%s6017_s0 + $0x5f0] sm:$0xff] }
 0x1f0   :  { %6126 = vst [vmem:[#allocation105_spill] sm:$0xff] %v4059_v7 }
 0x1f1   :  { %6127 = vst [vmem:[#allocation106_spill] sm:$0xff] %v4064_v24 }
 0x1f3   :  { %959 = vadd.xlane.f32.xlu2 %v958_v52  ;;  %956 = vadd.xlane.f32.xlu1 %v955_v61  ;;  %v964_v52 = vsel %vm393_vm0, %v205_v22, 0.0  ;;  %v961_v61 = vsel %vm393_vm0, %v204_v25, 0.0  ;;  %v207_v22 = vld [vmem:[%s6017_s0 + $0x600] sm:$0xff] }
 0x1f4   :  { %953 = vadd.xlane.f32.xlu0 %v952_v15  ;;  %v209_v15 = vld [vmem:[%s6017_s0 + $0x610] sm:$0xff] }
 0x1f5   :  { %v976_v25 = vsel %vm393_vm0, %v209_v15, 0.0 }
 0x1f6   :  { %v4075_v7 = vpop.xlane.xlu2 %833  ;;  %v4077_v24 = vpop.xlane.xlu1 %830 }
 0x1f7   :  { %6128 = vst [vmem:[#allocation107_spill] sm:$0xff] %v4075_v7  ;;  %v4082_v26 = vpop.xlane.xlu0 %827  ;;  %v208_v7 = vld [vmem:[%s6017_s0 + $0x608] sm:$0xff] }
 0x1f8   :  { %6129 = vst [vmem:[#allocation108_spill] sm:$0xff] %v4077_v24 }
 0x1f9   :  { %6130 = vst [vmem:[#allocation109_spill] sm:$0xff] %v4082_v26 }
 0x1fb   :  { %968 = vadd.xlane.f32.xlu2 %v967_v50  ;;  %965 = vadd.xlane.f32.xlu1 %v964_v52  ;;  %v973_v50 = vsel %vm393_vm0, %v208_v7, 0.0  ;;  %v970_v52 = vsel %vm393_vm0, %v207_v22, 0.0  ;;  %v210_v7 = vld [vmem:[%s6017_s0 + $0x618] sm:$0xff] }
 0x1fc   :  { %962 = vadd.xlane.f32.xlu0 %v961_v61  ;;  %v212_v61 = vld [vmem:[%s6017_s0 + $0x628] sm:$0xff] }
 0x1fd   :  { %v985_v22 = vsel %vm393_vm0, %v212_v61, 0.0 }
 0x1fe   :  { %v4093_v24 = vpop.xlane.xlu2 %842  ;;  %v4095_v26 = vpop.xlane.xlu1 %839 }
 0x1ff   :  { %6131 = vst [vmem:[#allocation110_spill] sm:$0xff] %v4093_v24  ;;  %v4100_v63 = vpop.xlane.xlu0 %836  ;;  %v211_v24 = vld [vmem:[%s6017_s0 + $0x620] sm:$0xff] }
 0x200   :  { %6132 = vst [vmem:[#allocation111_spill] sm:$0xff] %v4095_v26 }
 0x201   :  { %6133 = vst [vmem:[#allocation112_spill] sm:$0xff] %v4100_v63 }
 0x203   :  { %977 = vadd.xlane.f32.xlu2 %v976_v25  ;;  %974 = vadd.xlane.f32.xlu1 %v973_v50  ;;  %v982_v25 = vsel %vm393_vm0, %v211_v24, 0.0  ;;  %v979_v50 = vsel %vm393_vm0, %v210_v7, 0.0  ;;  %v213_v24 = vld [vmem:[%s6017_s0 + $0x630] sm:$0xff] }
 0x204   :  { %971 = vadd.xlane.f32.xlu0 %v970_v52  ;;  %v215_v52 = vld [vmem:[%s6017_s0 + $0x640] sm:$0xff] }
 0x205   :  { %v994_v7 = vsel %vm393_vm0, %v215_v52, 0.0 }
 0x206   :  { %v4111_v26 = vpop.xlane.xlu2 %851  ;;  %v4113_v63 = vpop.xlane.xlu1 %848 }
 0x207   :  { %6134 = vst [vmem:[#allocation113_spill] sm:$0xff] %v4111_v26  ;;  %v4118_v15 = vpop.xlane.xlu0 %845  ;;  %v214_v26 = vld [vmem:[%s6017_s0 + $0x638] sm:$0xff] }
 0x208   :  { %6135 = vst [vmem:[#allocation114_spill] sm:$0xff] %v4113_v63 }
 0x209   :  { %6136 = vst [vmem:[#allocation115_spill] sm:$0xff] %v4118_v15 }
 0x20b   :  { %986 = vadd.xlane.f32.xlu2 %v985_v22  ;;  %983 = vadd.xlane.f32.xlu1 %v982_v25  ;;  %v991_v22 = vsel %vm393_vm0, %v214_v26, 0.0  ;;  %v988_v25 = vsel %vm393_vm0, %v213_v24, 0.0  ;;  %v216_v26 = vld [vmem:[%s6017_s0 + $0x648] sm:$0xff] }
 0x20c   :  { %980 = vadd.xlane.f32.xlu0 %v979_v50  ;;  %v218_v50 = vld [vmem:[%s6017_s0 + $0x658] sm:$0xff] }
 0x20d   :  { %v1003_v24 = vsel %vm393_vm0, %v218_v50, 0.0 }
 0x20e   :  { %v4129_v63 = vpop.xlane.xlu2 %860  ;;  %v4131_v15 = vpop.xlane.xlu1 %857 }
 0x20f   :  { %6137 = vst [vmem:[#allocation116_spill] sm:$0xff] %v4129_v63  ;;  %v4136_v61 = vpop.xlane.xlu0 %854  ;;  %v217_v63 = vld [vmem:[%s6017_s0 + $0x650] sm:$0xff] }
 0x210   :  { %6138 = vst [vmem:[#allocation117_spill] sm:$0xff] %v4131_v15 }
 0x211   :  { %6139 = vst [vmem:[#allocation118_spill] sm:$0xff] %v4136_v61 }
 0x213   :  { %995 = vadd.xlane.f32.xlu2 %v994_v7  ;;  %992 = vadd.xlane.f32.xlu1 %v991_v22  ;;  %v1000_v7 = vsel %vm393_vm0, %v217_v63, 0.0  ;;  %v997_v22 = vsel %vm393_vm0, %v216_v26, 0.0  ;;  %v219_v63 = vld [vmem:[%s6017_s0 + $0x660] sm:$0xff] }
 0x214   :  { %989 = vadd.xlane.f32.xlu0 %v988_v25  ;;  %v221_v25 = vld [vmem:[%s6017_s0 + $0x670] sm:$0xff] }
 0x215   :  { %v1012_v26 = vsel %vm393_vm0, %v221_v25, 0.0 }
 0x216   :  { %v4147_v15 = vpop.xlane.xlu2 %869  ;;  %v4149_v61 = vpop.xlane.xlu1 %866 }
 0x217   :  { %6140 = vst [vmem:[#allocation119_spill] sm:$0xff] %v4147_v15  ;;  %v4154_v52 = vpop.xlane.xlu0 %863  ;;  %v220_v15 = vld [vmem:[%s6017_s0 + $0x668] sm:$0xff] }
 0x218   :  { %6141 = vst [vmem:[#allocation120_spill] sm:$0xff] %v4149_v61 }
 0x219   :  { %6142 = vst [vmem:[#allocation121_spill] sm:$0xff] %v4154_v52 }
 0x21b   :  { %1004 = vadd.xlane.f32.xlu2 %v1003_v24  ;;  %1001 = vadd.xlane.f32.xlu1 %v1000_v7  ;;  %v1009_v24 = vsel %vm393_vm0, %v220_v15, 0.0  ;;  %v1006_v7 = vsel %vm393_vm0, %v219_v63, 0.0  ;;  %v222_v15 = vld [vmem:[%s6017_s0 + $0x678] sm:$0xff] }
 0x21c   :  { %998 = vadd.xlane.f32.xlu0 %v997_v22  ;;  %v224_v22 = vld [vmem:[%s6017_s0 + $0x688] sm:$0xff] }
 0x21d   :  { %v1021_v63 = vsel %vm393_vm0, %v224_v22, 0.0 }
 0x21e   :  { %v4165_v61 = vpop.xlane.xlu2 %878  ;;  %v4167_v52 = vpop.xlane.xlu1 %875 }
 0x21f   :  { %6143 = vst [vmem:[#allocation122_spill] sm:$0xff] %v4165_v61  ;;  %v4172_v50 = vpop.xlane.xlu0 %872 }
 0x220   :  { %6144 = vst [vmem:[#allocation123_spill] sm:$0xff] %v4167_v52  ;;  %v223_v52 = vld [vmem:[%s6017_s0 + $0x680] sm:$0xff] }
 0x221   :  { %6145 = vst [vmem:[#allocation124_spill] sm:$0xff] %v4172_v50 }
 0x223   :  { %1013 = vadd.xlane.f32.xlu2 %v1012_v26  ;;  %1010 = vadd.xlane.f32.xlu1 %v1009_v24  ;;  %v1018_v26 = vsel %vm393_vm0, %v223_v52, 0.0  ;;  %v1015_v24 = vsel %vm393_vm0, %v222_v15, 0.0  ;;  %v225_v52 = vld [vmem:[%s6017_s0 + $0x690] sm:$0xff] }
 0x224   :  { %1007 = vadd.xlane.f32.xlu0 %v1006_v7  ;;  %v227_v7 = vld [vmem:[%s6017_s0 + $0x6a0] sm:$0xff] }
 0x225   :  { %v1030_v15 = vsel %vm393_vm0, %v227_v7, 0.0 }
 0x226   :  { %v4183_v61 = vpop.xlane.xlu2 %887  ;;  %v4185_v50 = vpop.xlane.xlu1 %884 }
 0x227   :  { %6146 = vst [vmem:[#allocation125_spill] sm:$0xff] %v4183_v61  ;;  %v4190_v25 = vpop.xlane.xlu0 %881  ;;  %v226_v61 = vld [vmem:[%s6017_s0 + $0x698] sm:$0xff] }
 0x228   :  { %6147 = vst [vmem:[#allocation126_spill] sm:$0xff] %v4185_v50 }
 0x229   :  { %6148 = vst [vmem:[#allocation127_spill] sm:$0xff] %v4190_v25 }
 0x22b   :  { %1022 = vadd.xlane.f32.xlu2 %v1021_v63  ;;  %1019 = vadd.xlane.f32.xlu1 %v1018_v26  ;;  %v1027_v63 = vsel %vm393_vm0, %v226_v61, 0.0  ;;  %v1024_v26 = vsel %vm393_vm0, %v225_v52, 0.0  ;;  %v228_v61 = vld [vmem:[%s6017_s0 + $0x6a8] sm:$0xff] }
 0x22c   :  { %1016 = vadd.xlane.f32.xlu0 %v1015_v24  ;;  %v230_v24 = vld [vmem:[%s6017_s0 + $0x6b8] sm:$0xff] }
 0x22d   :  { %v1039_v52 = vsel %vm393_vm0, %v230_v24, 0.0 }
 0x22e   :  { %v4201_v50 = vpop.xlane.xlu2 %896  ;;  %v4203_v25 = vpop.xlane.xlu1 %893 }
 0x22f   :  { %6149 = vst [vmem:[#allocation128_spill] sm:$0xff] %v4201_v50  ;;  %v4208_v22 = vpop.xlane.xlu0 %890  ;;  %v229_v50 = vld [vmem:[%s6017_s0 + $0x6b0] sm:$0xff] }
 0x230   :  { %6150 = vst [vmem:[#allocation129_spill] sm:$0xff] %v4203_v25 }
 0x231   :  { %6151 = vst [vmem:[#allocation130_spill] sm:$0xff] %v4208_v22 }
 0x233   :  { %1031 = vadd.xlane.f32.xlu2 %v1030_v15  ;;  %1028 = vadd.xlane.f32.xlu1 %v1027_v63  ;;  %v1036_v15 = vsel %vm393_vm0, %v229_v50, 0.0  ;;  %v1033_v63 = vsel %vm393_vm0, %v228_v61, 0.0  ;;  %v231_v50 = vld [vmem:[%s6017_s0 + $0x6c0] sm:$0xff] }
 0x234   :  { %1025 = vadd.xlane.f32.xlu0 %v1024_v26  ;;  %v233_v26 = vld [vmem:[%s6017_s0 + $0x6d0] sm:$0xff] }
 0x235   :  { %v1048_v61 = vsel %vm393_vm0, %v233_v26, 0.0 }
 0x236   :  { %v4219_v25 = vpop.xlane.xlu2 %905  ;;  %v4221_v22 = vpop.xlane.xlu1 %902 }
 0x237   :  { %6152 = vst [vmem:[#allocation131_spill] sm:$0xff] %v4219_v25  ;;  %v4226_v7 = vpop.xlane.xlu0 %899  ;;  %v232_v25 = vld [vmem:[%s6017_s0 + $0x6c8] sm:$0xff] }
 0x238   :  { %6153 = vst [vmem:[#allocation132_spill] sm:$0xff] %v4221_v22 }
 0x239   :  { %6154 = vst [vmem:[#allocation133_spill] sm:$0xff] %v4226_v7 }
 0x23b   :  { %1040 = vadd.xlane.f32.xlu2 %v1039_v52  ;;  %1037 = vadd.xlane.f32.xlu1 %v1036_v15  ;;  %v1045_v52 = vsel %vm393_vm0, %v232_v25, 0.0  ;;  %v1042_v15 = vsel %vm393_vm0, %v231_v50, 0.0  ;;  %v234_v25 = vld [vmem:[%s6017_s0 + $0x6d8] sm:$0xff] }
 0x23c   :  { %1034 = vadd.xlane.f32.xlu0 %v1033_v63  ;;  %v236_v63 = vld [vmem:[%s6017_s0 + $0x6e8] sm:$0xff] }
 0x23d   :  { %v1057_v50 = vsel %vm393_vm0, %v236_v63, 0.0 }
 0x23e   :  { %v4237_v22 = vpop.xlane.xlu2 %914  ;;  %v4239_v7 = vpop.xlane.xlu1 %911 }
 0x23f   :  { %6155 = vst [vmem:[#allocation134_spill] sm:$0xff] %v4237_v22  ;;  %v4244_v24 = vpop.xlane.xlu0 %908  ;;  %v235_v22 = vld [vmem:[%s6017_s0 + $0x6e0] sm:$0xff] }
 0x240   :  { %6156 = vst [vmem:[#allocation135_spill] sm:$0xff] %v4239_v7 }
 0x241   :  { %6157 = vst [vmem:[#allocation136_spill] sm:$0xff] %v4244_v24 }
 0x243   :  { %1049 = vadd.xlane.f32.xlu2 %v1048_v61  ;;  %1046 = vadd.xlane.f32.xlu1 %v1045_v52  ;;  %v1054_v61 = vsel %vm393_vm0, %v235_v22, 0.0  ;;  %v1051_v52 = vsel %vm393_vm0, %v234_v25, 0.0  ;;  %v237_v22 = vld [vmem:[%s6017_s0 + $0x6f0] sm:$0xff] }
 0x244   :  { %1043 = vadd.xlane.f32.xlu0 %v1042_v15  ;;  %v239_v15 = vld [vmem:[%s6017_s0 + $0x700] sm:$0xff] }
 0x245   :  { %v1066_v25 = vsel %vm393_vm0, %v239_v15, 0.0 }
 0x246   :  { %v4255_v7 = vpop.xlane.xlu2 %923  ;;  %v4257_v24 = vpop.xlane.xlu1 %920 }
 0x247   :  { %6158 = vst [vmem:[#allocation137_spill] sm:$0xff] %v4255_v7  ;;  %v4262_v26 = vpop.xlane.xlu0 %917 }
 0x248   :  { %6159 = vst [vmem:[#allocation138_spill] sm:$0xff] %v4257_v24  ;;  %v238_v24 = vld [vmem:[%s6017_s0 + $0x6f8] sm:$0xff] }
 0x249   :  { %6160 = vst [vmem:[#allocation139_spill] sm:$0xff] %v4262_v26 }
 0x24b   :  { %1058 = vadd.xlane.f32.xlu2 %v1057_v50  ;;  %1055 = vadd.xlane.f32.xlu1 %v1054_v61  ;;  %v1063_v50 = vsel %vm393_vm0, %v238_v24, 0.0  ;;  %v1060_v61 = vsel %vm393_vm0, %v237_v22, 0.0  ;;  %v240_v24 = vld [vmem:[%s6017_s0 + $0x708] sm:$0xff] }
 0x24c   :  { %1052 = vadd.xlane.f32.xlu0 %v1051_v52  ;;  %v242_v52 = vld [vmem:[%s6017_s0 + $0x718] sm:$0xff] }
 0x24d   :  { %v1075_v22 = vsel %vm393_vm0, %v242_v52, 0.0 }
 0x24e   :  { %v4273_v7 = vpop.xlane.xlu2 %932  ;;  %v4275_v26 = vpop.xlane.xlu1 %929 }
 0x24f   :  { %6161 = vst [vmem:[#allocation140_spill] sm:$0xff] %v4273_v7  ;;  %v4280_v63 = vpop.xlane.xlu0 %926  ;;  %v241_v7 = vld [vmem:[%s6017_s0 + $0x710] sm:$0xff] }
 0x250   :  { %6162 = vst [vmem:[#allocation141_spill] sm:$0xff] %v4275_v26 }
 0x251   :  { %6163 = vst [vmem:[#allocation142_spill] sm:$0xff] %v4280_v63 }
 0x253   :  { %1067 = vadd.xlane.f32.xlu2 %v1066_v25  ;;  %1064 = vadd.xlane.f32.xlu1 %v1063_v50  ;;  %v1072_v25 = vsel %vm393_vm0, %v241_v7, 0.0  ;;  %v1069_v50 = vsel %vm393_vm0, %v240_v24, 0.0  ;;  %v243_v7 = vld [vmem:[%s6017_s0 + $0x720] sm:$0xff] }
 0x254   :  { %1061 = vadd.xlane.f32.xlu0 %v1060_v61  ;;  %v245_v61 = vld [vmem:[%s6017_s0 + $0x730] sm:$0xff] }
 0x255   :  { %v1084_v24 = vsel %vm393_vm0, %v245_v61, 0.0 }
 0x256   :  { %v4291_v26 = vpop.xlane.xlu2 %941  ;;  %v4293_v63 = vpop.xlane.xlu1 %938 }
 0x257   :  { %6164 = vst [vmem:[#allocation143_spill] sm:$0xff] %v4291_v26  ;;  %v4298_v15 = vpop.xlane.xlu0 %935  ;;  %v244_v26 = vld [vmem:[%s6017_s0 + $0x728] sm:$0xff] }
 0x258   :  { %6165 = vst [vmem:[#allocation144_spill] sm:$0xff] %v4293_v63 }
 0x259   :  { %6166 = vst [vmem:[#allocation145_spill] sm:$0xff] %v4298_v15 }
 0x25b   :  { %1076 = vadd.xlane.f32.xlu2 %v1075_v22  ;;  %1073 = vadd.xlane.f32.xlu1 %v1072_v25  ;;  %v1081_v22 = vsel %vm393_vm0, %v244_v26, 0.0  ;;  %v1078_v25 = vsel %vm393_vm0, %v243_v7, 0.0  ;;  %v246_v26 = vld [vmem:[%s6017_s0 + $0x738] sm:$0xff]  ;;  %v1922_v7 = vlaneseq }
 0x25c   :  { %1070 = vadd.xlane.f32.xlu0 %v1069_v50  ;;  %v248_v50 = vld [vmem:[%s6017_s0 + $0x748] sm:$0xff] }
 0x25d   :  { %v4339_v32 = vand.u32 127, %v1922_v7 }
 0x25e   :  { %v4309_v63 = vpop.xlane.xlu2 %950  ;;  %v4311_v15 = vpop.xlane.xlu1 %947 }
 0x25f   :  { %6167 = vst [vmem:[#allocation146_spill] sm:$0xff] %v4309_v63  ;;  %v4316_v52 = vpop.xlane.xlu0 %944  ;;  %v247_v63 = vld [vmem:[%s6017_s0 + $0x740] sm:$0xff]  ;;  %v4359_v51 = vadd.s32 4294967280, %v4339_v32  ;;  %v1924_v2 = vperm.slane %v3218_v31, %v4339_v32  ;;  %v4364_v11 = vadd.s32 4294967272, %v4339_v32  ;;  %v4381_v39 = vadd.s32 4294967264, %v4339_v32 }
 0x260   :  { %6168 = vst [vmem:[#allocation147_spill] sm:$0xff] %v4311_v15 }
 0x261   :  { %6169 = vst [vmem:[#allocation148_spill] sm:$0xff] %v4316_v52  ;;  %v1930_v4 = vperm.slane %v3213_v29, %v4359_v51 }
 0x263   :  { %1085 = vadd.xlane.f32.xlu2 %v1084_v24  ;;  %1082 = vadd.xlane.f32.xlu1 %v1081_v22  ;;  %v1093_v24 = vsel %vm393_vm0, %v248_v50, 0.0  ;;  %v1090_v22 = vsel %vm393_vm0, %v247_v63, 0.0 }
 0x264   :  { %1079 = vadd.xlane.f32.xlu0 %v1078_v25  ;;  %v1087_v25 = vsel %vm393_vm0, %v246_v26, 0.0  ;;  %v249_v26 = vld [vmem:[%s6017_s0 + $0x750] sm:$0xff] }
 0x266   :  { %v4327_v15 = vpop.xlane.xlu2 %959  ;;  %v4329_v52 = vpop.xlane.xlu1 %956 }
 0x267   :  { %6170 = vst [vmem:[#allocation149_spill] sm:$0xff] %v4327_v15  ;;  %v4334_v61 = vpop.xlane.xlu0 %953  ;;  %v251_v15 = vld [vmem:[%s6017_s0 + $0x760] sm:$0xff] }
 0x268   :  { %6171 = vst [vmem:[#allocation150_spill] sm:$0xff] %v4329_v52  ;;  %v250_v52 = vld [vmem:[%s6017_s0 + $0x758] sm:$0xff] }
 0x269   :  { %6172 = vst [vmem:[#allocation151_spill] sm:$0xff] %v4334_v61  ;;  %v4348_v61 = vadd.s32 4294967288, %v4339_v32 }
 0x26b   :  { %1094 = vadd.xlane.f32.xlu2 %v1093_v24  ;;  %1091 = vadd.xlane.f32.xlu1 %v1090_v22  ;;  %v1102_v24 = vsel %vm393_vm0, %v251_v15, 0.0  ;;  %v1099_v22 = vsel %vm393_vm0, %v250_v52, 0.0  ;;  %v1926_v44 = vperm.slane %v3236_v40, %v4348_v61  ;;  %v254_v15 = vld [vmem:[%s6017_s0 + $0x778] sm:$0xff]  ;;  %v253_v40 = vld [vmem:[%s6017_s0 + $0x770] sm:$0xff] }
 0x26c   :  { %1088 = vadd.xlane.f32.xlu0 %v1087_v25  ;;  %v1096_v25 = vsel %vm393_vm0, %v249_v26, 0.0 }
 0x26d   :  { %v1928_v52 = vsel %vm1927_vm1, %v1926_v44, %v1924_v2  ;;  %v1934_v2 = vperm.slane %v3231_v38, %v4364_v11  ;;  %v1111_v44 = vsel %vm393_vm0, %v254_v15, 0.0 }
 0x26e   :  { %v969_v50 = vpop.xlane.xlu2 %968  ;;  %v966_v63 = vpop.xlane.xlu1 %965  ;;  %v1932_v48 = vsel %vm1931_vm2, %v1930_v4, %v1928_v52  ;;  %v1938_v4 = vperm.slane %v3211_v28, %v4381_v39  ;;  %v255_v28 = vld [vmem:[%s6017_s0 + $0x780] sm:$0xff] }
 0x26f   :  { %v963_v7 = vpop.xlane.xlu0 %962  ;;  %v2321_v26 = vperm.slane %v966_v63, %v4348_v61  ;;  %v1108_v63 = vsel %vm393_vm0, %v253_v40, 0.0  ;;  %v2323_v29 = vperm.slane %v969_v50, %v4359_v51  ;;  %v1936_v15 = vsel %vm1935_vm3, %v1934_v2, %v1932_v48  ;;  %v256_v48 = vld [vmem:[%s6017_s0 + $0x788] sm:$0xff] }
 0x270   :  { %v4397_v40 = vadd.s32 4294967248, %v4339_v32  ;;  %v4402_v50 = vadd.s32 4294967256, %v4339_v32 }
 0x273   :  { %1103 = vadd.xlane.f32.xlu2 %v1102_v24  ;;  %1100 = vadd.xlane.f32.xlu1 %v1099_v22  ;;  %v2320_v24 = vperm.slane %v963_v7, %v4339_v32  ;;  %v1528_v7 = vld [vmem:[%s6018_s1] sm:$0xff] }
 0x274   :  { %1097 = vadd.xlane.f32.xlu0 %v1096_v25  ;;  %v252_v25 = vld [vmem:[%s6017_s0 + $0x768] sm:$0xff]  ;;  %2731 = vmatpush.xpose.msra.mxu0 %v1528_v7 }
 0x275   :  { %v1105_v13 = vsel %vm393_vm0, %v252_v25, 0.0  ;;  %v2322_v14 = vsel %vm1927_vm1, %v2321_v26, %v2320_v24 }
 0x276   :  { %v978_v31 = vpop.xlane.xlu2 %977  ;;  %v975_v22 = vpop.xlane.xlu1 %974  ;;  %v2324_v26 = vsel %vm1931_vm2, %v2323_v29, %v2322_v14  ;;  %v1940_v14 = vsel %vm1939_vm4, %v1938_v4, %v1936_v15  ;;  %v1117_v29 = vsel %vm393_vm0, %v256_v48, 0.0  ;;  %v1114_v15 = vsel %vm393_vm0, %v255_v28, 0.0  ;;  %v259_v28 = vld [vmem:[%s6017_s0 + $0x7a0] sm:$0xff] }
 0x277   :  { %v972_v34 = vpop.xlane.xlu0 %971  ;;  %v2327_v52 = vperm.slane %v975_v22, %v4381_v39  ;;  %v4417_v22 = vadd.s32 4294967240, %v4339_v32  ;;  %v4431_v4 = vadd.s32 4294967232, %v4339_v32 }
 0x278   :  { %v2325_v38 = vperm.slane %v972_v34, %v4364_v11  ;;  %v257_v34 = vld [vmem:[%s6017_s0 + $0x790] sm:$0xff] }
 0x279   :  { %v1120_v7 = vsel %vm393_vm0, %v257_v34, 0.0  ;;  %v4437_v34 = vadd.s32 4294967224, %v4339_v32 }
 0x27b   :  { %1112 = vadd.xlane.f32.xlu2 %v1111_v44  ;;  %1109 = vadd.xlane.f32.xlu1 %v1108_v63  ;;  %v1946_v44 = vperm.slane %v3254_v49, %v4397_v40  ;;  %v2329_v63 = vperm.slane %v978_v31, %v4402_v50  ;;  %v1950_v49 = vperm.slane %v3249_v47, %v4417_v22  ;;  %v260_v47 = vld [vmem:[%s6017_s0 + $0x7a8] sm:$0xff] }
 0x27c   :  { %1106 = vadd.xlane.f32.xlu0 %v1105_v13  ;;  %v2326_v13 = vsel %vm1935_vm3, %v2325_v38, %v2324_v26  ;;  %v1942_v38 = vperm.slane %v3229_v37, %v4402_v50 }
 0x27d   :  { %v2328_v26 = vsel %vm1939_vm4, %v2327_v52, %v2326_v13 }
 0x27e   :  { %v987_v24 = vpop.xlane.xlu2 %986  ;;  %v984_v25 = vpop.xlane.xlu1 %983  ;;  %v1944_v31 = vsel %vm1943_vm5, %v1942_v38, %v1940_v14  ;;  %v2330_v48 = vsel %vm1943_vm5, %v2329_v63, %v2328_v26  ;;  %v1954_v14 = vperm.slane %v3247_v46, %v4431_v4  ;;  %v4456_v63 = vadd.s32 4294967216, %v4339_v32 }
 0x27f   :  { %v981_v2 = vpop.xlane.xlu0 %980  ;;  %v1948_v37 = vsel %vm1947_vm6, %v1946_v44, %v1944_v31  ;;  %v2333_v52 = vperm.slane %v984_v25, %v4417_v22  ;;  %v258_v25 = vld [vmem:[%s6017_s0 + $0x798] sm:$0xff]  ;;  %v1126_v31 = vsel %vm393_vm0, %v259_v28, 0.0 }
 0x280   :  { %v2331_v16 = vperm.slane %v981_v2, %v4397_v40 }
 0x282   :  { %v2332_v13 = vsel %vm1947_vm6, %v2331_v16, %v2330_v48  ;;  %v1952_v16 = vsel %vm6025_vm7, %v1950_v49, %v1948_v37  ;;  %v1123_v49 = vsel %vm393_vm0, %v258_v25, 0.0  ;;  %v4467_v37 = vadd.s32 4294967208, %v4339_v32 }
 0x283   :  { %1121 = vadd.xlane.f32.xlu2 %v1120_v7  ;;  %1118 = vadd.xlane.f32.xlu1 %v1117_v29  ;;  %v1958_v7 = vperm.slane %v3272_v58, %v4437_v34  ;;  %v2335_v29 = vperm.slane %v987_v24, %v4431_v4  ;;  %v2334_v46 = vsel %vm6025_vm7, %v2333_v52, %v2332_v13  ;;  %v4473_v24 = vadd.s32 4294967200, %v4339_v32 }
 0x284   :  { %1115 = vadd.xlane.f32.xlu0 %v1114_v15  ;;  %v1129_v15 = vsel %vm393_vm0, %v260_v47, 0.0  ;;  %v1956_v48 = vsel %vm6024_vm8, %v1954_v14, %v1952_v16  ;;  %v1962_v58 = vperm.slane %v3267_v56, %v4456_v63  ;;  %v263_v14 = vld [vmem:[%s6017_s0 + $0x7c0] sm:$0xff]  ;;  %v262_v56 = vld [vmem:[%s6017_s0 + $0x7b8] sm:$0xff]  ;;  %v4488_v25 = vadd.s32 4294967192, %v4339_v32 }
 0x285   :  { %v2336_v13 = vsel %vm6024_vm8, %v2335_v29, %v2334_v46  ;;  %v1960_v47 = vsel %vm6022_vm9, %v1958_v7, %v1956_v48  ;;  %v4502_v48 = vadd.s32 4294967184, %v4339_v32 }
 0x286   :  { %v996_v2 = vpop.xlane.xlu2 %995  ;;  %v993_v44 = vpop.xlane.xlu1 %992  ;;  %v1964_v46 = vsel %vm6023_vm10, %v1962_v58, %v1960_v47 }
 0x287   :  { %v990_v38 = vpop.xlane.xlu0 %989  ;;  %v2339_v52 = vperm.slane %v993_v44, %v4456_v63  ;;  %v1966_v44 = vperm.slane %v3265_v55, %v4467_v37  ;;  %v2341_v16 = vperm.slane %v996_v2, %v4467_v37  ;;  %v1138_v2 = vsel %vm393_vm0, %v263_v14, 0.0 }
 0x288   :  { %v2337_v26 = vperm.slane %v990_v38, %v4437_v34  ;;  %v261_v38 = vld [vmem:[%s6017_s0 + $0x7b0] sm:$0xff] }
 0x289   :  { %v1132_v58 = vsel %vm393_vm0, %v261_v38, 0.0  ;;  %v1978_v38 = vperm.slane %v3283_v0, %v4502_v48  ;;  %v264_v0 = vld [vmem:[%s6017_s0 + $0x7c8] sm:$0xff] }
 0x28a   :  { %v2338_v28 = vsel %vm6022_vm9, %v2337_v26, %v2336_v13  ;;  %v1970_v26 = vperm.slane %v3290_v3, %v4473_v24  ;;  %v4505_v13 = vadd.s32 4294967176, %v4339_v32  ;;  %v1974_v3 = vperm.slane %v3285_v1, %v4488_v25  ;;  %v266_v1 = vld [vmem:[%s6017_s0 + $0x7d8] sm:$0xff] }
 0x28b   :  { %1130 = vadd.xlane.f32.xlu2 %v1129_v15  ;;  %1127 = vadd.xlane.f32.xlu1 %v1126_v31  ;;  %v2340_v15 = vsel %vm6023_vm10, %v2339_v52, %v2338_v28  ;;  %v1968_v52 = vsel %vm1967_vm11, %v1966_v44, %v1964_v46  ;;  %v265_v44 = vld [vmem:[%s6017_s0 + $0x7d0] sm:$0xff] }
 0x28c   :  { %1124 = vadd.xlane.f32.xlu0 %v1123_v49  ;;  %v1135_v49 = vsel %vm393_vm0, %v262_v56, 0.0  ;;  %v2342_v28 = vsel %vm1967_vm11, %v2341_v16, %v2340_v15  ;;  %v1972_v14 = vsel %vm6021_vm12, %v1970_v26, %v1968_v52  ;;  %v1982_v16 = vperm.slane %v3308_v12, %v4505_v13 }
 0x28d   :  { %v1141_v12 = vsel %vm393_vm0, %v264_v0, 0.0 }
 0x28e   :  { %v1005_v7 = vpop.xlane.xlu2 %1004  ;;  %v1002_v29 = vpop.xlane.xlu1 %1001 }
 0x28f   :  { %v999_v55 = vpop.xlane.xlu0 %998  ;;  %v2345_v47 = vperm.slane %v1002_v29, %v4488_v25 }
 0x290   :  { %v2343_v31 = vperm.slane %v999_v55, %v4473_v24  ;;  %v2347_v55 = vperm.slane %v1005_v7, %v4502_v48  ;;  %v1976_v7 = vsel %vm1975_vm13, %v1974_v3, %v1972_v14  ;;  %v1986_v14 = vperm.slane %v3301_v9, %v4348_v61  ;;  %v267_v9 = vld [vmem:[%s6017_s0 + $0x7e0] sm:$0xff] }
 0x292   :  { %v2344_v56 = vsel %vm6021_vm12, %v2343_v31, %v2342_v28  ;;  %vm2686_vm12 = vcmask 1041409  }
 0x293   :  { %1139 = vadd.xlane.f32.xlu2 %v1138_v2  ;;  %1136 = vadd.xlane.f32.xlu1 %v1135_v49  ;;  %v2346_v26 = vsel %vm1975_vm13, %v2345_v47, %v2344_v56  ;;  %v1147_v2 = vsel %vm393_vm0, %v266_v1, 0.0  ;;  %v1144_v49 = vsel %vm393_vm0, %v265_v44, 0.0  ;;  %v1985_v56 = vperm.slane %v3303_v10, %v4339_v32  ;;  %v268_v1 = vld [vmem:[%s6017_s0 + $0x7e8] sm:$0xff] }
 0x294   :  { %1133 = vadd.xlane.f32.xlu0 %v1132_v58  ;;  %v1980_v58 = vsel %vm1979_vm14, %v1978_v38, %v1976_v7  ;;  %v2348_v52 = vsel %vm1979_vm14, %v2347_v55, %v2346_v26  ;;  %v1988_v38 = vperm.slane %v3326_v21, %v4359_v51  ;;  %v269_v55 = vld [vmem:[%s6017_s0 + $0x7f0] sm:$0xff]  ;;  %v1990_v21 = vperm.slane %v3321_v19, %v4364_v11 }
 0x295   :  { %v1984_v28 = vsel %vm1983_vm15, %v1982_v16, %v1980_v58  ;;  %v1987_v0 = vsel %vm1927_vm1, %v1986_v14, %v1985_v56  ;;  %v1156_v7 = vsel %vm393_vm0, %v269_v55, 0.0  ;;  %v1153_v26 = vsel %vm393_vm0, %v268_v1, 0.0 }
 0x296   :  { %v1014_v29 = vpop.xlane.xlu2 %1013  ;;  %v1011_v46 = vpop.xlane.xlu1 %1010  ;;  %v1992_v19 = vperm.slane %v3319_v18, %v4381_v39  ;;  %v271_v18 = vld [vmem:[%s6017_s0 + $0x800] sm:$0xff]  ;;  %v1996_v1 = vperm.slane %v3339_v30, %v4397_v40 }
 0x297   :  { %v1008_v15 = vpop.xlane.xlu0 %1007 }
 0x298   :  { %v2349_v31 = vperm.slane %v1008_v15, %v4505_v13  ;;  %v1529_v15 = vld [vmem:[%s6018_s1 + $0x8] sm:$0xff] }
 0x299   :  { %2751 = vmatpush.xpose.msra.mxu1 %v1529_v15  ;;  %v1998_v15 = vperm.slane %v3337_v27, %v4417_v22  ;;  %v274_v27 = vld [vmem:[%s6017_s0 + $0x818] sm:$0xff] }
 0x29a   :  { %v2350_v3 = vsel %vm1983_vm15, %v2349_v31, %v2348_v52  ;;  %v1989_v31 = vsel %vm1931_vm2, %v1988_v38, %v1987_v0 }
 0x29b   :  { %1148 = vadd.xlane.f32.xlu2 %v1147_v2  ;;  %1145 = vadd.xlane.f32.xlu1 %v1144_v49  ;;  %v2687_v47 = vsel %vm2686_vm12, %v2350_v3, %v1984_v28  ;;  %v2352_v2 = vperm.slane %v1014_v29, %v4348_v61  ;;  %v2351_v49 = vperm.slane %v1011_v46, %v4339_v32  ;;  %v272_v3 = vld [vmem:[%s6017_s0 + $0x808] sm:$0xff] }
 0x29c   :  { %1142 = vadd.xlane.f32.xlu0 %v1141_v12  ;;  %2732 = vmatmul.f32.vlgmr.msra.gmra.mxu0 %v2687_v47  ;;  %v1150_v12 = vsel %vm393_vm0, %v267_v9, 0.0  ;;  %v1991_v52 = vsel %vm1935_vm3, %v1990_v21, %v1989_v31  ;;  %v1994_v28 = vperm.slane %v3344_v33, %v4402_v50  ;;  %v270_v33 = vld [vmem:[%s6017_s0 + $0x7f8] sm:$0xff]  ;;  %v1165_v9 = vsel %vm393_vm0, %v272_v3, 0.0 }
 0x29d   :  { %v2353_v29 = vsel %vm1927_vm1, %v2352_v2, %v2351_v49  ;;  %v1993_v38 = vsel %vm1939_vm4, %v1992_v19, %v1991_v52  ;;  %v2000_v2 = vperm.slane %v3362_v45, %v4431_v4  ;;  %v273_v52 = vld [vmem:[%s6017_s0 + $0x810] sm:$0xff] }
 0x29e   :  { %v1023_v44 = vpop.xlane.xlu2 %1022  ;;  %v1020_v16 = vpop.xlane.xlu1 %1019  ;;  %v1995_v0 = vsel %vm1943_vm5, %v1994_v28, %v1993_v38  ;;  %v2002_v28 = vperm.slane %v3357_v43, %v4437_v34  ;;  %v1168_v38 = vsel %vm393_vm0, %v273_v52, 0.0  ;;  %v2004_v43 = vperm.slane %v3355_v42, %v4456_v63  ;;  %v277_v42 = vld [vmem:[%s6017_s0 + $0x830] sm:$0xff] }
 0x29f   :  { %v1017_v10 = vpop.xlane.xlu0 %1016  ;;  %v2356_v46 = vperm.slane %v1020_v16, %v4364_v11  ;;  %v2358_v16 = vperm.slane %v1023_v44, %v4381_v39  ;;  %v1997_v30 = vsel %vm1947_vm6, %v1996_v1, %v1995_v0  ;;  %v2010_v52 = vperm.slane %v3373_v54, %v4488_v25  ;;  %v280_v54 = vld [vmem:[%s6017_s0 + $0x848] sm:$0xff] }
 0x2a0   :  { %v2354_v58 = vperm.slane %v1017_v10, %v4359_v51  ;;  %v1162_v10 = vsel %vm393_vm0, %v271_v18, 0.0  ;;  %v1999_v45 = vsel %vm6025_vm7, %v1998_v15, %v1997_v30 }
 0x2a2   :  { %v2355_v47 = vsel %vm1931_vm2, %v2354_v58, %v2353_v29 }
 0x2a3   :  { %1157 = vadd.xlane.f32.xlu2 %v1156_v7  ;;  %1154 = vadd.xlane.f32.xlu1 %v1153_v26  ;;  %v2357_v21 = vsel %vm1935_vm3, %v2356_v46, %v2355_v47  ;;  %v1159_v26 = vsel %vm393_vm0, %v270_v33, 0.0  ;;  %v2001_v33 = vsel %vm6024_vm8, %v2000_v2, %v1999_v45  ;;  %v2012_v45 = vperm.slane %v3398_v8, %v4502_v48 }
 0x2a4   :  { %1151 = vadd.xlane.f32.xlu0 %v1150_v12  ;;  %v2359_v31 = vsel %vm1939_vm4, %v2358_v16, %v2357_v21  ;;  %v275_v12 = vld [vmem:[%s6017_s0 + $0x820] sm:$0xff]  ;;  %v2003_v1 = vsel %vm6022_vm9, %v2002_v28, %v2001_v33  ;;  %v2014_v8 = vperm.slane %v3393_v6, %v4505_v13 }
 0x2a5   :  { %v1174_v47 = vsel %vm393_vm0, %v275_v12, 0.0  ;;  %v2005_v15 = vsel %vm6023_vm10, %v2004_v43, %v2003_v1  ;;  %v1189_v1 = vsel %vm393_vm0, %v280_v54, 0.0 }
 0x2a6   :  { %v1032_v14 = vpop.xlane.xlu2 %1031  ;;  %v1029_v56 = vpop.xlane.xlu1 %1028 }
 0x2a7   :  { %v1026_v55 = vpop.xlane.xlu0 %1025  ;;  %v2362_v44 = vperm.slane %v1029_v56, %v4397_v40  ;;  %v2364_v29 = vperm.slane %v1032_v14, %v4417_v22  ;;  %v1171_v56 = vsel %vm393_vm0, %v274_v27, 0.0 }
 0x2a8   :  { %v2360_v7 = vperm.slane %v1026_v55, %v4402_v50 }
 0x2aa   :  { %v2361_v49 = vsel %vm1943_vm5, %v2360_v7, %v2359_v31 }
 0x2ab   :  { %1166 = vadd.xlane.f32.xlu2 %v1165_v9  ;;  %1163 = vadd.xlane.f32.xlu1 %v1162_v10  ;;  %v2363_v3 = vsel %vm1947_vm6, %v2362_v44, %v2361_v49  ;;  %v2006_v9 = vperm.slane %v3380_v60, %v4467_v37  ;;  %v278_v10 = vld [vmem:[%s6017_s0 + $0x838] sm:$0xff]  ;;  %v2008_v44 = vperm.slane %v3375_v57, %v4473_v24  ;;  %v1180_v49 = vsel %vm393_vm0, %v277_v42, 0.0 }
 0x2ac   :  { %1160 = vadd.xlane.f32.xlu0 %v1159_v26  ;;  %v2365_v14 = vsel %vm6025_vm7, %v2364_v29, %v2363_v3  ;;  %v276_v26 = vld [vmem:[%s6017_s0 + $0x828] sm:$0xff]  ;;  %v1183_v2 = vsel %vm393_vm0, %v278_v10, 0.0 }
 0x2ad   :  { %v2007_v12 = vsel %vm1967_vm11, %v2006_v9, %v2005_v15  ;;  %v1177_v27 = vsel %vm393_vm0, %v276_v26, 0.0  ;;  %v284_v26 = vld [vmem:[%s6017_s0 + $0x868] sm:$0xff]  ;;  %v283_v15 = vld [vmem:[%s6017_s0 + $0x860] sm:$0xff] }
 0x2ae   :  { %v1041_v58 = vpop.xlane.xlu2 %1040  ;;  %v1038_v19 = vpop.xlane.xlu1 %1037 }
 0x2af   :  { %v1035_v46 = vpop.xlane.xlu0 %1034  ;;  %v2368_v55 = vperm.slane %v1038_v19, %v4437_v34  ;;  %v2370_v0 = vperm.slane %v1041_v58, %v4456_v63 }
 0x2b0   :  { %v2366_v18 = vperm.slane %v1035_v46, %v4431_v4  ;;  %v281_v46 = vld [vmem:[%s6017_s0 + $0x850] sm:$0xff] }
 0x2b2   :  { %v2367_v16 = vsel %vm6024_vm8, %v2366_v18, %v2365_v14  ;;  %v1192_v14 = vsel %vm393_vm0, %v281_v46, 0.0 }
 0x2b3   :  { %1175 = vadd.xlane.f32.xlu2 %v1174_v47  ;;  %1172 = vadd.xlane.f32.xlu1 %v1171_v56  ;;  %v2369_v60 = vsel %vm6022_vm9, %v2368_v55, %v2367_v16  ;;  %vm6173_vm9 = vcmask 851712   ;;  %v279_v56 = vld [vmem:[%s6017_s0 + $0x840] sm:$0xff] }
 0x2b4   :  { %1169 = vadd.xlane.f32.xlu0 %v1168_v38  ;;  %v2371_v19 = vsel %vm6023_vm10, %v2370_v0, %v2369_v60  ;;  %v2009_v57 = vsel %vm6173_vm9, %v2008_v44, %v2007_v12  ;;  %vm6174_vm10 = vmmov %vm6173_vm9  ;;  %v1186_v9 = vsel %vm393_vm0, %v279_v56, 0.0  ;;  %v282_v44 = vld [vmem:[%s6017_s0 + $0x858] sm:$0xff]  ;;  %v1198_v12 = vsel %vm393_vm0, %v283_v15, 0.0  ;;  %v288_v15 = vld [vmem:[%s6017_s0 + $0x888] sm:$0xff] }
 0x2b5   :  { %v2011_v43 = vsel %vm1975_vm13, %v2010_v52, %v2009_v57  ;;  %v1530_v52 = vld [vmem:[%s6018_s1 + $0x10] sm:$0xff]  ;;  %vm6177_vm9 = vcmask 654912  }
 0x2b6   :  { %v1050_v21 = vpop.xlane.xlu2 %1049  ;;  %v1047_v7 = vpop.xlane.xlu1 %1046  ;;  %v2013_v16 = vsel %vm1979_vm14, %v2012_v45, %v2011_v43  ;;  %2771 = vmatpush.xpose.msra.mxu2 %v1530_v52 }
 0x2b7   :  { %v1044_v30 = vpop.xlane.xlu0 %1043  ;;  %v2374_v58 = vperm.slane %v1047_v7, %v4473_v24  ;;  %v2376_v29 = vperm.slane %v1050_v21, %v4488_v25  ;;  %v2015_v6 = vsel %vm1983_vm15, %v2014_v8, %v2013_v16  ;;  %v2017_v7 = vperm.slane %v3416_v23, %v4348_v61 }
 0x2b8   :  { %v2372_v31 = vperm.slane %v1044_v30, %v4467_v37  ;;  %v2019_v23 = vperm.slane %v3411_v20, %v4359_v51 }
 0x2ba   :  { %v2373_v28 = vsel %vm1967_vm11, %v2372_v31, %v2371_v19  ;;  %v2016_v31 = vperm.slane %v3391_v5, %v4339_v32  ;;  %v2021_v5 = vperm.slane %v3409_v17, %v4364_v11  ;;  %v286_v17 = vld [vmem:[%s6017_s0 + $0x878] sm:$0xff] }
 0x2bb   :  { %1184 = vadd.xlane.f32.xlu2 %v1183_v2  ;;  %1181 = vadd.xlane.f32.xlu1 %v1180_v49  ;;  %v2375_v3 = vsel %vm6174_vm10, %v2374_v58, %v2373_v28  ;;  %v1201_v49 = vsel %vm393_vm0, %v284_v26, 0.0  ;;  %v1195_v58 = vsel %vm393_vm0, %v282_v44, 0.0  ;;  %v2023_v28 = vperm.slane %v3434_v41, %v4381_v39  ;;  %v285_v41 = vld [vmem:[%s6017_s0 + $0x870] sm:$0xff] }
 0x2bc   :  { %1178 = vadd.xlane.f32.xlu0 %v1177_v27  ;;  %v2377_v10 = vsel %vm1975_vm13, %v2376_v29, %v2375_v3  ;;  %v2018_v27 = vsel %vm1927_vm1, %v2017_v7, %v2016_v31  ;;  %v287_v29 = vld [vmem:[%s6017_s0 + $0x880] sm:$0xff]  ;;  %v1207_v43 = vsel %vm393_vm0, %v286_v17, 0.0  ;;  %vm6178_vm10 = vcmask 720512  }
 0x2bd   :  { %v2020_v20 = vsel %vm1931_vm2, %v2019_v23, %v2018_v27 }
 0x2be   :  { %v1059_v18 = vpop.xlane.xlu2 %1058  ;;  %v1056_v47 = vpop.xlane.xlu1 %1055 }
 0x2bf   :  { %v2380_v33 = vperm.slane %v1056_v47, %v4505_v13  ;;  %v1053_v38 = vpop.xlane.xlu0 %1052  ;;  %v2382_v57 = vperm.slane %v1059_v18, %v4339_v32  ;;  %v2025_v18 = vperm.slane %v3429_v36, %v4402_v50  ;;  %v2022_v47 = vsel %vm1935_vm3, %v2021_v5, %v2020_v20 }
 0x2c0   :  { %v2378_v55 = vperm.slane %v1053_v38, %v4502_v48  ;;  %v2024_v8 = vsel %vm1939_vm4, %v2023_v28, %v2022_v47  ;;  %v1210_v38 = vsel %vm393_vm0, %v287_v29, 0.0  ;;  %v2027_v36 = vperm.slane %v3427_v35, %v4397_v40  ;;  %v289_v35 = vld [vmem:[%s6017_s0 + $0x890] sm:$0xff] }
 0x2c1   :  { %v2026_v16 = vsel %vm1943_vm5, %v2025_v18, %v2024_v8  ;;  %v293_v28 = vld [vmem:[%s6017_s0 + $0x8b0] sm:$0xff] }
 0x2c2   :  { %v2379_v42 = vsel %vm1979_vm14, %v2378_v55, %v2377_v10  ;;  %v1228_v8 = vsel %vm393_vm0, %v293_v28, 0.0 }
 0x2c3   :  { %1193 = vadd.xlane.f32.xlu2 %v1192_v14  ;;  %1190 = vadd.xlane.f32.xlu1 %v1189_v1  ;;  %v2381_v0 = vsel %vm1983_vm15, %v2380_v33, %v2379_v42  ;;  %v1204_v1 = vsel %vm393_vm0, %v285_v41, 0.0 }
 0x2c4   :  { %1187 = vadd.xlane.f32.xlu0 %v1186_v9  ;;  %v2688_v21 = vsel %vm2686_vm12, %v2381_v0, %v2015_v6  ;;  %v2029_v9 = vperm.slane %v3452_v62, %v4417_v22  ;;  %v290_v0 = vld [vmem:[%s6017_s0 + $0x898] sm:$0xff]  ;;  %v2031_v62 = vperm.slane %v3447_v59, %v4431_v4  ;;  %v1216_v59 = vsel %vm393_vm0, %v289_v35, 0.0 }
 0x2c5   :  { %2752 = vmatmul.f32.vlgmr.msra.gmra.mxu1 %v2688_v21  ;;  %v2028_v21 = vsel %vm1947_vm6, %v2027_v36, %v2026_v16  ;;  %v1219_v23 = vsel %vm393_vm0, %v290_v0, 0.0 }
 0x2c6   :  { %v1068_v60 = vpop.xlane.xlu2 %1067  ;;  %v1065_v30 = vpop.xlane.xlu1 %1064 }
 0x2c7   :  { %v1062_v2 = vpop.xlane.xlu0 %1061  ;;  %v2385_v45 = vperm.slane %v1065_v30, %v4359_v51  ;;  %v2387_v33 = vperm.slane %v1068_v60, %v4364_v11  ;;  %v2030_v60 = vsel %vm6025_vm7, %v2029_v9, %v2028_v21  ;;  %v295_v21 = vld [vmem:[%s6017_s0 + $0x8c0] sm:$0xff] }
 0x2c8   :  { %v2383_v19 = vperm.slane %v1062_v2, %v4348_v61  ;;  %v2032_v27 = vsel %vm6024_vm8, %v2031_v62, %v2030_v60  ;;  %v296_v62 = vld [vmem:[%s6017_s0 + $0x8c8] sm:$0xff] }
 0x2ca   :  { %v2384_v46 = vsel %vm1927_vm1, %v2383_v19, %v2382_v57  ;;  %v6176_v57 = vld [vmem:[#allocation6_spill] sm:$0xff] }
 0x2cb   :  { %1202 = vadd.xlane.f32.xlu2 %v1201_v49  ;;  %1199 = vadd.xlane.f32.xlu1 %v1198_v12  ;;  %v2386_v55 = vsel %vm1931_vm2, %v2385_v45, %v2384_v46  ;;  %v1213_v49 = vsel %vm393_vm0, %v288_v15, 0.0  ;;  %v2033_v12 = vperm.slane %v3445_v53, %v4437_v34  ;;  %v292_v53 = vld [vmem:[%s6017_s0 + $0x8a8] sm:$0xff]  ;;  %v2037_v45 = vperm.slane %v6176_v57, %v4467_v37 }
 0x2cc   :  { %1196 = vadd.xlane.f32.xlu0 %v1195_v58  ;;  %v2388_v42 = vsel %vm1935_vm3, %v2387_v33, %v2386_v55  ;;  %v6175_v58 = vld [vmem:[#allocation7_spill] sm:$0xff]  ;;  %v1225_v33 = vsel %vm393_vm0, %v292_v53, 0.0 }
 0x2cd   :  { %v2035_v19 = vperm.slane %v6175_v58, %v4456_v63  ;;  %v2034_v29 = vsel %vm6177_vm9, %v2033_v12, %v2032_v27  ;;  %v1237_v12 = vsel %vm393_vm0, %v296_v62, 0.0  ;;  %v1234_v27 = vsel %vm393_vm0, %v295_v21, 0.0 }
 0x2ce   :  { %v1077_v54 = vpop.xlane.xlu2 %1076  ;;  %v1074_v3 = vpop.xlane.xlu1 %1073 }
 0x2cf   :  { %v1071_v56 = vpop.xlane.xlu0 %1070  ;;  %v2391_v10 = vperm.slane %v1074_v3, %v4402_v50  ;;  %v2393_v30 = vperm.slane %v1077_v54, %v4397_v40  ;;  %v291_v3 = vld [vmem:[%s6017_s0 + $0x8a0] sm:$0xff]  ;;  %v2036_v41 = vsel %vm6178_vm10, %v2035_v19, %v2034_v29  ;;  %v298_v29 = vld [vmem:[%s6017_s0 + $0x8d8] sm:$0xff] }
 0x2d0   :  { %v2389_v14 = vperm.slane %v1071_v56, %v4381_v39  ;;  %v1222_v55 = vsel %vm393_vm0, %v291_v3, 0.0 }
 0x2d2   :  { %v2390_v6 = vsel %vm1939_vm4, %v2389_v14, %v2388_v42  ;;  %v2038_v14 = vsel %vm1967_vm11, %v2037_v45, %v2036_v41  ;;  %v6181_v42 = vld [vmem:[#allocation9_spill] sm:$0xff] }
 0x2d3   :  { %1211 = vadd.xlane.f32.xlu2 %v1210_v38  ;;  %1208 = vadd.xlane.f32.xlu1 %v1207_v43  ;;  %v2392_v31 = vsel %vm1943_vm5, %v2391_v10, %v2390_v6  ;;  %v6179_v38 = vld [vmem:[#allocation5_spill] sm:$0xff]  ;;  %v2043_v6 = vperm.slane %v6181_v42, %v4502_v48 }
 0x2d4   :  { %1205 = vadd.xlane.f32.xlu0 %v1204_v1  ;;  %v2394_v5 = vsel %vm1947_vm6, %v2393_v30, %v2392_v31  ;;  %v2039_v43 = vperm.slane %v6179_v38, %v4473_v24  ;;  %v6180_v1 = vld [vmem:[#allocation10_spill] sm:$0xff]  ;;  %v294_v30 = vld [vmem:[%s6017_s0 + $0x8b8] sm:$0xff]  ;;  %v299_v45 = vld [vmem:[%s6017_s0 + $0x8e0] sm:$0xff] }
 0x2d5   :  { %v2041_v36 = vperm.slane %v6180_v1, %v4488_v25  ;;  %v1231_v19 = vsel %vm393_vm0, %v294_v30, 0.0  ;;  %v1246_v41 = vsel %vm393_vm0, %v299_v45, 0.0 }
 0x2d6   :  { %v1086_v7 = vpop.xlane.xlu2 %1085  ;;  %v1083_v26 = vpop.xlane.xlu1 %1082 }
 0x2d7   :  { %v1080_v44 = vpop.xlane.xlu0 %1079  ;;  %v2397_v52 = vperm.slane %v1083_v26, %v4431_v4  ;;  %v2399_v17 = vperm.slane %v1086_v7, %v4437_v34 }
 0x2d8   :  { %v2395_v2 = vperm.slane %v1080_v44, %v4417_v22  ;;  %v6183_v44 = vld [vmem:[#allocation8_spill] sm:$0xff] }
 0x2d9   :  { %v2045_v31 = vperm.slane %v6183_v44, %v4505_v13 }
 0x2da   :  { %v2396_v20 = vsel %vm6025_vm7, %v2395_v2, %v2394_v5 }
 0x2db   :  { %1220 = vadd.xlane.f32.xlu2 %v1219_v23  ;;  %1217 = vadd.xlane.f32.xlu1 %v1216_v59  ;;  %v2398_v18 = vsel %vm6024_vm8, %v2397_v52, %v2396_v20  ;;  %vm6182_vm8 = vcmask 851712  }
 0x2dc   :  { %1214 = vadd.xlane.f32.xlu0 %v1213_v49  ;;  %v2400_v9 = vsel %vm6177_vm9, %v2399_v17, %v2398_v18  ;;  %v2040_v0 = vsel %vm6182_vm8, %v2039_v43, %v2038_v14  ;;  %v1243_v18 = vsel %vm393_vm0, %v298_v29, 0.0  ;;  %v302_v43 = vld [vmem:[%s6017_s0 + $0x8f8] sm:$0xff]  ;;  %vm6194_vm9 = vcmask 589312  }
 0x2dd   :  { %v2042_v7 = vsel %vm1975_vm13, %v2041_v36, %v2040_v0  ;;  %v1255_v21 = vsel %vm393_vm0, %v302_v43, 0.0  ;;  %v6190_v29 = vld [vmem:[#allocation19_spill] sm:$0xff] }
 0x2de   :  { %v1095_v46 = vpop.xlane.xlu2 %1094  ;;  %v1092_v54 = vpop.xlane.xlu1 %1091  ;;  %v2044_v52 = vsel %vm1979_vm14, %v2043_v6, %v2042_v7 }
 0x2df   :  { %v1089_v47 = vpop.xlane.xlu0 %1088  ;;  %v2403_v16 = vperm.slane %v1092_v54, %v4467_v37  ;;  %v2405_v35 = vperm.slane %v1095_v46, %v4473_v24  ;;  %v2046_v28 = vsel %vm1983_vm15, %v2045_v31, %v2044_v52  ;;  %v297_v54 = vld [vmem:[%s6017_s0 + $0x8d0] sm:$0xff] }
 0x2e0   :  { %v2401_v56 = vperm.slane %v1089_v47, %v4456_v63  ;;  %v1240_v47 = vsel %vm393_vm0, %v297_v54, 0.0  ;;  %v6188_v31 = vld [vmem:[#allocation15_spill] sm:$0xff] }
 0x2e2   :  { %v2402_v10 = vsel %vm6178_vm10, %v2401_v56, %v2400_v9  ;;  %v6184_v56 = vld [vmem:[#allocation12_spill] sm:$0xff]  ;;  %v300_v9 = vld [vmem:[%s6017_s0 + $0x8e8] sm:$0xff]  ;;  %vm6196_vm10 = vmmov %vm6194_vm9 }
 0x2e3   :  { %1229 = vadd.xlane.f32.xlu2 %v1228_v8  ;;  %1226 = vadd.xlane.f32.xlu1 %v1225_v33  ;;  %v2404_v26 = vsel %vm1967_vm11, %v2403_v16, %v2402_v10  ;;  %v2048_v8 = vperm.slane %v6184_v56, %v4348_v61  ;;  %v6185_v33 = vld [vmem:[#allocation13_spill] sm:$0xff]  ;;  %v6186_v10 = vld [vmem:[#allocation11_spill] sm:$0xff]  ;;  %v6191_v56 = vld [vmem:[#allocation18_spill] sm:$0xff] }
 0x2e4   :  { %1223 = vadd.xlane.f32.xlu0 %v1222_v55  ;;  %v2406_v58 = vsel %vm6182_vm8, %v2405_v35, %v2404_v26  ;;  %v2047_v38 = vperm.slane %v6185_v33, %v4339_v32  ;;  %v301_v55 = vld [vmem:[%s6017_s0 + $0x8f0] sm:$0xff]  ;;  %v2050_v42 = vperm.slane %v6186_v10, %v4359_v51  ;;  %v6187_v35 = vld [vmem:[#allocation16_spill] sm:$0xff]  ;;  %vm6197_vm8 = vcmask 654912  }
 0x2e5   :  { %v2052_v62 = vperm.slane %v6187_v35, %v4364_v11  ;;  %v1252_v7 = vsel %vm393_vm0, %v301_v55, 0.0  ;;  %v1531_v26 = vld [vmem:[%s6018_s1 + $0x18] sm:$0xff]  ;;  %v6193_v35 = vld [vmem:[#allocation22_spill] sm:$0xff] }
 0x2e6   :  { %v1104_v15 = vpop.xlane.xlu2 %1103  ;;  %v1101_v60 = vpop.xlane.xlu1 %1100  ;;  %v2049_v0 = vsel %vm1927_vm1, %v2048_v8, %v2047_v38  ;;  %2791 = vmatpush.xpose.msra.mxu3 %v1531_v26  ;;  %v2060_v8 = vperm.slane %v6191_v56, %v4417_v22  ;;  %v6203_v56 = vld [vmem:[#allocation24_spill] sm:$0xff] }
 0x2e7   :  { %v2409_v2 = vperm.slane %v1101_v60, %v4502_v48  ;;  %v1098_v23 = vpop.xlane.xlu0 %1097  ;;  %v2411_v59 = vperm.slane %v1104_v15, %v4505_v13  ;;  %v1249_v60 = vsel %vm393_vm0, %v300_v9, 0.0 }
 0x2e8   :  { %v2407_v49 = vperm.slane %v1098_v23, %v4488_v25  ;;  %v2051_v23 = vsel %vm1931_vm2, %v2050_v42, %v2049_v0 }
 0x2ea   :  { %v2408_v5 = vsel %vm1975_vm13, %v2407_v49, %v2406_v58  ;;  %v304_v58 = vld [vmem:[%s6017_s0 + $0x908] sm:$0xff] }
 0x2eb   :  { %1238 = vadd.xlane.f32.xlu2 %v1237_v12  ;;  %1235 = vadd.xlane.f32.xlu1 %v1234_v27  ;;  %v2410_v20 = vsel %vm1979_vm14, %v2409_v2, %v2408_v5  ;;  %v2054_v2 = vperm.slane %v6188_v31, %v4381_v39  ;;  %v305_v27 = vld [vmem:[%s6017_s0 + $0x910] sm:$0xff] }
 0x2ec   :  { %1232 = vadd.xlane.f32.xlu0 %v1231_v19  ;;  %v2412_v53 = vsel %vm1983_vm15, %v2411_v59, %v2410_v20  ;;  %v2053_v59 = vsel %vm1935_vm3, %v2052_v62, %v2051_v23  ;;  %v303_v20 = vld [vmem:[%s6017_s0 + $0x900] sm:$0xff]  ;;  %v1264_v54 = vsel %vm393_vm0, %v305_v27, 0.0  ;;  %v2064_v62 = vperm.slane %v6193_v35, %v4437_v34 }
 0x2ed   :  { %v2689_v57 = vsel %vm2686_vm12, %v2412_v53, %v2046_v28  ;;  %v6189_v28 = vld [vmem:[#allocation14_spill] sm:$0xff] }
 0x2ee   :  { %2772 = vmatmul.f32.vlgmr.msra.gmra.mxu2 %v2689_v57  ;;  %v1113_v17 = vpop.xlane.xlu2 %1112  ;;  %v1110_v46 = vpop.xlane.xlu1 %1109  ;;  %v2056_v53 = vperm.slane %v6189_v28, %v4402_v50  ;;  %v2055_v57 = vsel %vm1939_vm4, %v2054_v2, %v2053_v59  ;;  %v6195_v2 = vld [vmem:[#allocation21_spill] sm:$0xff] }
 0x2ef   :  { %v1107_v3 = vpop.xlane.xlu0 %1106  ;;  %v2414_v14 = vperm.slane %v1110_v46, %v4348_v61  ;;  %v2416_v15 = vperm.slane %v1113_v17, %v4359_v51  ;;  %v2058_v17 = vperm.slane %v6190_v29, %v4397_v40  ;;  %v2066_v23 = vperm.slane %v6195_v2, %v4456_v63  ;;  %v6201_v29 = vld [vmem:[#allocation25_spill] sm:$0xff] }
 0x2f0   :  { %v2413_v1 = vperm.slane %v1107_v3, %v4339_v32  ;;  %v1261_v3 = vsel %vm393_vm0, %v304_v58, 0.0  ;;  %v2057_v33 = vsel %vm1943_vm5, %v2056_v53, %v2055_v57  ;;  %v311_v58 = vld [vmem:[%s6017_s0 + $0x940] sm:$0xff]  ;;  %v309_v57 = vld [vmem:[%s6017_s0 + $0x930] sm:$0xff] }
 0x2f1   :  { %v2059_v38 = vsel %vm1947_vm6, %v2058_v17, %v2057_v33  ;;  %v2070_v17 = vperm.slane %v6201_v29, %v4473_v24 }
 0x2f2   :  { %v2415_v30 = vsel %vm1927_vm1, %v2414_v14, %v2413_v1  ;;  %v308_v1 = vld [vmem:[%s6017_s0 + $0x928] sm:$0xff]  ;;  %v2061_v0 = vsel %vm6025_vm7, %v2060_v8, %v2059_v38  ;;  %v2072_v8 = vperm.slane %v6203_v56, %v4488_v25 }
 0x2f3   :  { %1247 = vadd.xlane.f32.xlu2 %v1246_v41  ;;  %1244 = vadd.xlane.f32.xlu1 %v1243_v18  ;;  %v2417_v12 = vsel %vm1931_vm2, %v2416_v15, %v2415_v30 }
 0x2f4   :  { %1241 = vadd.xlane.f32.xlu0 %v1240_v47  ;;  %v1258_v47 = vsel %vm393_vm0, %v303_v20, 0.0 }
 0x2f6   :  { %v1122_v36 = vpop.xlane.xlu2 %1121  ;;  %v1119_v16 = vpop.xlane.xlu1 %1118 }
 0x2f7   :  { %v1116_v6 = vpop.xlane.xlu0 %1115  ;;  %v2420_v49 = vperm.slane %v1119_v16, %v4381_v39  ;;  %v2422_v46 = vperm.slane %v1122_v36, %v4402_v50  ;;  %v307_v36 = vld [vmem:[%s6017_s0 + $0x920] sm:$0xff] }
 0x2f8   :  { %v2418_v44 = vperm.slane %v1116_v6, %v4364_v11  ;;  %v6192_v16 = vld [vmem:[#allocation17_spill] sm:$0xff]  ;;  %v306_v6 = vld [vmem:[%s6017_s0 + $0x918] sm:$0xff]  ;;  %v1270_v30 = vsel %vm393_vm0, %v307_v36, 0.0 }
 0x2f9   :  { %v2062_v9 = vperm.slane %v6192_v16, %v4431_v4 }
 0x2fa   :  { %v2419_v19 = vsel %vm1935_vm3, %v2418_v44, %v2417_v12  ;;  %v1267_v44 = vsel %vm393_vm0, %v306_v6, 0.0 }
 0x2fb   :  { %1256 = vadd.xlane.f32.xlu2 %v1255_v21  ;;  %1253 = vadd.xlane.f32.xlu1 %v1252_v7  ;;  %v2421_v41 = vsel %vm1939_vm4, %v2420_v49, %v2419_v19  ;;  %v2063_v31 = vsel %vm6194_vm9, %v2062_v9, %v2061_v0  ;;  %v310_v19 = vld [vmem:[%s6017_s0 + $0x938] sm:$0xff] }
 0x2fc   :  { %1250 = vadd.xlane.f32.xlu0 %v1249_v60  ;;  %v2423_v55 = vsel %vm1943_vm5, %v2422_v46, %v2421_v41  ;;  %v1273_v60 = vsel %vm393_vm0, %v308_v1, 0.0  ;;  %v2065_v12 = vsel %vm6197_vm8, %v2064_v62, %v2063_v31  ;;  %v1282_v41 = vsel %vm393_vm0, %v311_v58, 0.0  ;;  %v6206_v1 = vld [vmem:[#allocation23_spill] sm:$0xff]  ;;  %v312_v62 = vld [vmem:[%s6017_s0 + $0x948] sm:$0xff] }
 0x2fd   :  { %v2074_v36 = vperm.slane %v6206_v1, %v4502_v48  ;;  %v314_v9 = vld [vmem:[%s6017_s0 + $0x958] sm:$0xff]  ;;  %v6213_v1 = vld [vmem:[#allocation34_spill] sm:$0xff] }
 0x2fe   :  { %v1131_v52 = vpop.xlane.xlu2 %1130  ;;  %v1128_v5 = vpop.xlane.xlu1 %1127  ;;  %v6209_v58 = vld [vmem:[#allocation27_spill] sm:$0xff] }
 0x2ff   :  { %v1125_v45 = vpop.xlane.xlu0 %1124  ;;  %v2426_v43 = vperm.slane %v1128_v5, %v4417_v22  ;;  %v2428_v21 = vperm.slane %v1131_v52, %v4431_v4  ;;  %v6199_v52 = vld [vmem:[#allocation20_spill] sm:$0xff] }
 0x300   :  { %v2424_v18 = vperm.slane %v1125_v45, %v4397_v40  ;;  %v2068_v5 = vperm.slane %v6199_v52, %v4467_v37  ;;  %v6210_v52 = vld [vmem:[#allocation31_spill] sm:$0xff] }
 0x302   :  { %v2425_v14 = vsel %vm1947_vm6, %v2424_v18, %v2423_v55  ;;  %v1279_v18 = vsel %vm393_vm0, %v310_v19, 0.0  ;;  %v2078_v19 = vperm.slane %v6209_v58, %v4339_v32 }
 0x303   :  { %1265 = vadd.xlane.f32.xlu2 %v1264_v54  ;;  %1262 = vadd.xlane.f32.xlu1 %v1261_v3  ;;  %v2427_v26 = vsel %vm6025_vm7, %v2426_v43, %v2425_v14  ;;  %vm6198_vm7 = vmmov %vm6197_vm8 }
 0x304   :  { %1259 = vadd.xlane.f32.xlu0 %v1258_v47  ;;  %v2429_v49 = vsel %vm6196_vm10, %v2428_v21, %v2427_v26  ;;  %v1276_v47 = vsel %vm393_vm0, %v309_v57, 0.0  ;;  %vm6204_vm10 = vcmask 851712  }
 0x305   :  { %vm6205_vm8 = vmmov %vm6204_vm10 }
 0x306   :  { %v1140_v10 = vpop.xlane.xlu2 %1139  ;;  %v1137_v42 = vpop.xlane.xlu1 %1136 }
 0x307   :  { %v1134_v7 = vpop.xlane.xlu0 %1133  ;;  %v2432_v59 = vperm.slane %v1137_v42, %v4456_v63  ;;  %v2434_v20 = vperm.slane %v1140_v10, %v4467_v37  ;;  %v313_v10 = vld [vmem:[%s6017_s0 + $0x950] sm:$0xff]  ;;  %v6207_v42 = vld [vmem:[#allocation28_spill] sm:$0xff] }
 0x308   :  { %v2430_v15 = vperm.slane %v1134_v7, %v4437_v34  ;;  %v2076_v6 = vperm.slane %v6207_v42, %v4505_v13  ;;  %v319_v42 = vld [vmem:[%s6017_s0 + $0x980] sm:$0xff] }
 0x30a   :  { %v2431_v27 = vsel %vm6198_vm7, %v2430_v15, %v2429_v49  ;;  %vm6200_vm7 = vcmask 720512  }
 0x30b   :  { %1274 = vadd.xlane.f32.xlu2 %v1273_v60  ;;  %1271 = vadd.xlane.f32.xlu1 %v1270_v30  ;;  %v2067_v45 = vsel %vm6200_vm7, %v2066_v23, %v2065_v12  ;;  %vm6202_vm9 = vmmov %vm6200_vm7  ;;  %v1291_v60 = vsel %vm393_vm0, %v314_v9, 0.0  ;;  %v1288_v30 = vsel %vm393_vm0, %v313_v10, 0.0  ;;  %v6208_v12 = vld [vmem:[#allocation26_spill] sm:$0xff]  ;;  %vm6218_vm7 = vcmask 523712  }
 0x30c   :  { %1268 = vadd.xlane.f32.xlu0 %v1267_v44  ;;  %v2433_v46 = vsel %vm6202_vm9, %v2432_v59, %v2431_v27  ;;  %v2069_v33 = vsel %vm1967_vm11, %v2068_v5, %v2067_v45  ;;  %v1285_v44 = vsel %vm393_vm0, %v312_v62, 0.0  ;;  %v2079_v27 = vperm.slane %v6208_v12, %v4348_v61  ;;  %v315_v45 = vld [vmem:[%s6017_s0 + $0x960] sm:$0xff]  ;;  %v320_v10 = vld [vmem:[%s6017_s0 + $0x988] sm:$0xff]  ;;  %v318_v62 = vld [vmem:[%s6017_s0 + $0x978] sm:$0xff] }
 0x30d   :  { %v2435_v43 = vsel %vm1967_vm11, %v2434_v20, %v2433_v46  ;;  %v2071_v55 = vsel %vm6204_vm10, %v2070_v17, %v2069_v33  ;;  %v2081_v5 = vperm.slane %v6210_v52, %v4359_v51  ;;  %v317_v20 = vld [vmem:[%s6017_s0 + $0x970] sm:$0xff]  ;;  %v1532_v33 = vld [vmem:[%s6018_s1 + $0x20] sm:$0xff]  ;;  %vm6219_vm9 = vcmask 589312   ;;  %vm6221_vm10 = vmmov %vm6218_vm7 }
 0x30e   :  { %v1149_v28 = vpop.xlane.xlu2 %1148  ;;  %v1146_v53 = vpop.xlane.xlu1 %1145  ;;  %v2073_v21 = vsel %vm1975_vm13, %v2072_v8, %v2071_v55  ;;  %v2080_v17 = vsel %vm1927_vm1, %v2079_v27, %v2078_v19  ;;  %v6211_v46 = vld [vmem:[#allocation30_spill] sm:$0xff]  ;;  %v1294_v8 = vsel %vm393_vm0, %v315_v45, 0.0  ;;  %2811 = vmatpush.xpose.msrb.mxu0 %v1532_v33  ;;  %v6216_v52 = vld [vmem:[#allocation37_spill] sm:$0xff] }
 0x30f   :  { %v1143_v54 = vpop.xlane.xlu0 %1142  ;;  %v2438_v38 = vperm.slane %v1146_v53, %v4488_v25  ;;  %v2440_v16 = vperm.slane %v1149_v28, %v4502_v48  ;;  %v2075_v31 = vsel %vm1979_vm14, %v2074_v36, %v2073_v21  ;;  %v316_v28 = vld [vmem:[%s6017_s0 + $0x968] sm:$0xff]  ;;  %v2087_v36 = vperm.slane %v6213_v1, %v4402_v50 }
 0x310   :  { %v2436_v3 = vperm.slane %v1143_v54, %v4473_v24  ;;  %v2077_v23 = vsel %vm1983_vm15, %v2076_v6, %v2075_v31  ;;  %v2083_v54 = vperm.slane %v6211_v46, %v4364_v11 }
 0x312   :  { %v2437_v14 = vsel %vm6205_vm8, %v2436_v3, %v2435_v43  ;;  %v1300_v3 = vsel %vm393_vm0, %v317_v20, 0.0  ;;  %v6212_v43 = vld [vmem:[#allocation29_spill] sm:$0xff]  ;;  %vm6222_vm8 = vcmask 654912  }
 0x313   :  { %1283 = vadd.xlane.f32.xlu2 %v1282_v41  ;;  %1280 = vadd.xlane.f32.xlu1 %v1279_v18  ;;  %v2439_v7 = vsel %vm1975_vm13, %v2438_v38, %v2437_v14  ;;  %v1297_v41 = vsel %vm393_vm0, %v316_v28, 0.0  ;;  %v2082_v18 = vsel %vm1931_vm2, %v2081_v5, %v2080_v17  ;;  %v2085_v55 = vperm.slane %v6212_v43, %v4381_v39  ;;  %v323_v28 = vld [vmem:[%s6017_s0 + $0x9a0] sm:$0xff]  ;;  %v6220_v43 = vld [vmem:[#allocation35_spill] sm:$0xff] }
 0x314   :  { %1277 = vadd.xlane.f32.xlu0 %v1276_v47  ;;  %v2441_v2 = vsel %vm1979_vm14, %v2440_v16, %v2439_v7  ;;  %v2084_v14 = vsel %vm1935_vm3, %v2083_v54, %v2082_v18  ;;  %v2093_v5 = vperm.slane %v6216_v52, %v4431_v4  ;;  %v6217_v17 = vld [vmem:[#allocation36_spill] sm:$0xff] }
 0x315   :  { %v2086_v21 = vsel %vm1939_vm4, %v2085_v55, %v2084_v14  ;;  %v2095_v46 = vperm.slane %v6217_v17, %v4437_v34  ;;  %v2097_v55 = vperm.slane %v6220_v43, %v4456_v63 }
 0x316   :  { %v1158_v0 = vpop.xlane.xlu2 %1157  ;;  %v1155_v35 = vpop.xlane.xlu1 %1154  ;;  %v2088_v31 = vsel %vm1943_vm5, %v2087_v36, %v2086_v21  ;;  %v324_v21 = vld [vmem:[%s6017_s0 + $0x9a8] sm:$0xff] }
 0x317   :  { %v1152_v26 = vpop.xlane.xlu0 %1151  ;;  %v2445_v47 = vperm.slane %v1158_v0, %v4348_v61  ;;  %v2444_v56 = vperm.slane %v1155_v35, %v4339_v32 }
 0x318   :  { %v2442_v15 = vperm.slane %v1152_v26, %v4505_v13  ;;  %v6214_v26 = vld [vmem:[#allocation33_spill] sm:$0xff] }
 0x319   :  { %v2446_v16 = vsel %vm1927_vm1, %v2445_v47, %v2444_v56  ;;  %v1318_v56 = vsel %vm393_vm0, %v323_v28, 0.0 }
 0x31a   :  { %v2443_v59 = vsel %vm1983_vm15, %v2442_v15, %v2441_v2  ;;  %v2089_v15 = vperm.slane %v6214_v26, %v4397_v40 }
 0x31b   :  { %1292 = vadd.xlane.f32.xlu2 %v1291_v60  ;;  %1289 = vadd.xlane.f32.xlu1 %v1288_v30  ;;  %v2690_v49 = vsel %vm2686_vm12, %v2443_v59, %v2077_v23  ;;  %v1309_v30 = vsel %vm393_vm0, %v320_v10, 0.0  ;;  %v1303_v59 = vsel %vm393_vm0, %v318_v62, 0.0 }
 0x31c   :  { %1286 = vadd.xlane.f32.xlu0 %v1285_v44  ;;  %2792 = vmatmul.f32.vlgmr.msra.gmra.mxu3 %v2690_v49  ;;  %v1306_v44 = vsel %vm393_vm0, %v319_v42, 0.0  ;;  %v6215_v49 = vld [vmem:[#allocation32_spill] sm:$0xff]  ;;  %v2090_v27 = vsel %vm1947_vm6, %v2089_v15, %v2088_v31 }
 0x31d   :  { %v2091_v12 = vperm.slane %v6215_v49, %v4417_v22  ;;  %v326_v42 = vld [vmem:[%s6017_s0 + $0x9b8] sm:$0xff] }
 0x31e   :  { %v1167_v53 = vpop.xlane.xlu2 %1166  ;;  %v1164_v57 = vpop.xlane.xlu1 %1163  ;;  %v1327_v31 = vsel %vm393_vm0, %v326_v42, 0.0  ;;  %v333_v42 = vld [vmem:[%s6017_s0 + $0x9f0] sm:$0xff] }
 0x31f   :  { %v1161_v29 = vpop.xlane.xlu0 %1160  ;;  %v2449_v9 = vperm.slane %v1164_v57, %v4364_v11  ;;  %v2451_v60 = vperm.slane %v1167_v53, %v4381_v39  ;;  %v322_v53 = vld [vmem:[%s6017_s0 + $0x998] sm:$0xff]  ;;  %v2092_v54 = vsel %vm6218_vm7, %v2091_v12, %v2090_v27  ;;  %vm6223_vm7 = vmmov %vm6219_vm9  ;;  %v6229_v27 = vld [vmem:[#allocation38_spill] sm:$0xff] }
 0x320   :  { %v2447_v38 = vperm.slane %v1161_v29, %v4359_v51  ;;  %v321_v29 = vld [vmem:[%s6017_s0 + $0x990] sm:$0xff]  ;;  %v2094_v33 = vsel %vm6219_vm9, %v2093_v5, %v2092_v54  ;;  %vm6225_vm9 = vcmask 720512  }
 0x321   :  { %v2096_v36 = vsel %vm6222_vm8, %v2095_v46, %v2094_v33  ;;  %v6231_v5 = vld [vmem:[#allocation43_spill] sm:$0xff]  ;;  %v327_v46 = vld [vmem:[%s6017_s0 + $0x9c0] sm:$0xff]  ;;  %v6233_v54 = vld [vmem:[#allocation42_spill] sm:$0xff] }
 0x322   :  { %v2448_v6 = vsel %vm1931_vm2, %v2447_v38, %v2446_v16  ;;  %v1312_v38 = vsel %vm393_vm0, %v321_v29, 0.0 }
 0x323   :  { %1301 = vadd.xlane.f32.xlu2 %v1300_v3  ;;  %1298 = vadd.xlane.f32.xlu1 %v1297_v41  ;;  %v2450_v2 = vsel %vm1935_vm3, %v2449_v9, %v2448_v6  ;;  %v6224_v9 = vld [vmem:[#allocation40_spill] sm:$0xff]  ;;  %v325_v6 = vld [vmem:[%s6017_s0 + $0x9b0] sm:$0xff] }
 0x324   :  { %1295 = vadd.xlane.f32.xlu0 %v1294_v8  ;;  %v2452_v19 = vsel %vm1939_vm4, %v2451_v60, %v2450_v2  ;;  %v1315_v8 = vsel %vm393_vm0, %v322_v53, 0.0  ;;  %v2099_v10 = vperm.slane %v6224_v9, %v4467_v37  ;;  %v6227_v60 = vld [vmem:[#allocation39_spill] sm:$0xff]  ;;  %v1324_v2 = vsel %vm393_vm0, %v325_v6, 0.0  ;;  %v6234_v9 = vld [vmem:[#allocation46_spill] sm:$0xff] }
 0x325   :  { %v365_v53 = vld [vmem:[%s6017_s0 + $0xaf0] sm:$0xff]  ;;  %v332_v6 = vld [vmem:[%s6017_s0 + $0x9e8] sm:$0xff] }
 0x326   :  { %v1176_v0 = vpop.xlane.xlu2 %1175  ;;  %v1173_v35 = vpop.xlane.xlu1 %1172 }
 0x327   :  { %v1170_v7 = vpop.xlane.xlu0 %1169  ;;  %v2455_v58 = vperm.slane %v1173_v35, %v4397_v40  ;;  %v2457_v3 = vperm.slane %v1176_v0, %v4417_v22 }
 0x328   :  { %v2453_v23 = vperm.slane %v1170_v7, %v4402_v50  ;;  %v2098_v7 = vsel %vm6225_vm9, %v2097_v55, %v2096_v36  ;;  %v1330_v55 = vsel %vm393_vm0, %v327_v46, 0.0 }
 0x32a   :  { %v2454_v20 = vsel %vm1943_vm5, %v2453_v23, %v2452_v19  ;;  %v2100_v23 = vsel %vm1967_vm11, %v2099_v10, %v2098_v7  ;;  %v2110_v10 = vperm.slane %v6234_v9, %v4348_v61 }
 0x32b   :  { %1310 = vadd.xlane.f32.xlu2 %v1309_v30  ;;  %1307 = vadd.xlane.f32.xlu1 %v1306_v44  ;;  %v2456_v18 = vsel %vm1947_vm6, %v2455_v58, %v2454_v20  ;;  %v2101_v30 = vperm.slane %v6227_v60, %v4473_v24  ;;  %v2103_v58 = vperm.slane %v6229_v27, %v4488_v25 }
 0x32c   :  { %1304 = vadd.xlane.f32.xlu0 %v1303_v59  ;;  %v2458_v1 = vsel %vm6221_vm10, %v2457_v3, %v2456_v18  ;;  %vm6226_vm10 = vmmov %vm6222_vm8  ;;  %v1321_v59 = vsel %vm393_vm0, %v324_v21, 0.0  ;;  %v2105_v20 = vperm.slane %v6231_v5, %v4502_v48  ;;  %v2107_v3 = vperm.slane %v6233_v54, %v4505_v13  ;;  %v6235_v21 = vld [vmem:[#allocation41_spill] sm:$0xff] }
 0x32d   :  { %vm6228_vm8 = vmmov %vm6225_vm9  ;;  %v2109_v7 = vperm.slane %v6235_v21, %v4339_v32 }
 0x32e   :  { %v1185_v57 = vpop.xlane.xlu2 %1184  ;;  %v1182_v45 = vpop.xlane.xlu1 %1181 }
 0x32f   :  { %v1179_v41 = vpop.xlane.xlu0 %1178  ;;  %v2461_v14 = vperm.slane %v1182_v45, %v4437_v34  ;;  %v2463_v0 = vperm.slane %v1185_v57, %v4456_v63  ;;  %v364_v57 = vld [vmem:[%s6017_s0 + $0xae8] sm:$0xff] }
 0x330   :  { %v2459_v47 = vperm.slane %v1179_v41, %v4431_v4  ;;  %v1441_v33 = vsel %vm393_vm0, %v364_v57, 0.0 }
 0x332   :  { %v2460_v16 = vsel %vm6223_vm7, %v2459_v47, %v2458_v1  ;;  %vm6230_vm7 = vcmask 851712  }
 0x333   :  { %1319 = vadd.xlane.f32.xlu2 %v1318_v56  ;;  %1316 = vadd.xlane.f32.xlu1 %v1315_v8  ;;  %v2462_v26 = vsel %vm6226_vm10, %v2461_v14, %v2460_v16  ;;  %v2102_v52 = vsel %vm6230_vm7, %v2101_v30, %v2100_v23  ;;  %vm6232_vm9 = vmmov %vm6230_vm7  ;;  %v1444_v8 = vsel %vm393_vm0, %v365_v53, 0.0  ;;  %v1348_v30 = vsel %vm393_vm0, %v333_v42, 0.0  ;;  %v349_v42 = vld [vmem:[%s6017_s0 + $0xa70] sm:$0xff] }
 0x334   :  { %1313 = vadd.xlane.f32.xlu0 %v1312_v38  ;;  %v2464_v12 = vsel %vm6228_vm8, %v2463_v0, %v2462_v26  ;;  %v2104_v47 = vsel %vm1975_vm13, %v2103_v58, %v2102_v52  ;;  %v6238_v58 = vld [vmem:[#allocation49_spill] sm:$0xff]  ;;  %vm6243_vm10 = vcmask 523712   ;;  %vm6245_vm8 = vcmask 589312  }
 0x335   :  { %v2106_v38 = vsel %vm1979_vm14, %v2105_v20, %v2104_v47  ;;  %v368_v20 = vld [vmem:[%s6017_s0 + $0xb08] sm:$0xff]  ;;  %vm6247_vm7 = vmmov %vm6243_vm10 }
 0x336   :  { %v1194_v35 = vpop.xlane.xlu2 %1193  ;;  %v1191_v62 = vpop.xlane.xlu1 %1190  ;;  %v2108_v1 = vsel %vm1983_vm15, %v2107_v3, %v2106_v38  ;;  %v1453_v47 = vsel %vm393_vm0, %v368_v20, 0.0 }
 0x337   :  { %v1188_v15 = vpop.xlane.xlu0 %1187  ;;  %v2467_v49 = vperm.slane %v1191_v62, %v4473_v24  ;;  %v2469_v28 = vperm.slane %v1194_v35, %v4488_v25  ;;  %v366_v62 = vld [vmem:[%s6017_s0 + $0xaf8] sm:$0xff] }
 0x338   :  { %v2465_v44 = vperm.slane %v1188_v15, %v4467_v37  ;;  %v6236_v15 = vld [vmem:[#allocation45_spill] sm:$0xff] }
 0x339   :  { %v2112_v60 = vperm.slane %v6236_v15, %v4359_v51 }
 0x33a   :  { %v2466_v19 = vsel %vm1967_vm11, %v2465_v44, %v2464_v12  ;;  %v1345_v44 = vsel %vm393_vm0, %v332_v6, 0.0  ;;  %v348_v6 = vld [vmem:[%s6017_s0 + $0xa68] sm:$0xff] }
 0x33b   :  { %1328 = vadd.xlane.f32.xlu2 %v1327_v31  ;;  %1325 = vadd.xlane.f32.xlu1 %v1324_v2  ;;  %v2468_v45 = vsel %vm6232_vm9, %v2467_v49, %v2466_v19  ;;  %v2111_v31 = vsel %vm1927_vm1, %v2110_v10, %v2109_v7  ;;  %v1447_v2 = vsel %vm393_vm0, %v366_v62, 0.0  ;;  %v6237_v49 = vld [vmem:[#allocation44_spill] sm:$0xff]  ;;  %v2116_v19 = vperm.slane %v6238_v58, %v4381_v39  ;;  %v6246_v58 = vld [vmem:[#allocation55_spill] sm:$0xff] }
 0x33c   :  { %1322 = vadd.xlane.f32.xlu0 %v1321_v59  ;;  %v2470_v43 = vsel %vm1975_vm13, %v2469_v28, %v2468_v45  ;;  %v1533_v59 = vld [vmem:[%s6018_s1 + $0x28] sm:$0xff]  ;;  %v2114_v12 = vperm.slane %v6237_v49, %v4364_v11  ;;  %v2113_v27 = vsel %vm1931_vm2, %v2112_v60, %v2111_v31  ;;  %v334_v28 = vld [vmem:[%s6017_s0 + $0x9f8] sm:$0xff]  ;;  %vm6249_vm9 = vcmask 654912  }
 0x33d   :  { %2831 = vmatpush.xpose.msrb.mxu1 %v1533_v59  ;;  %v6244_v49 = vld [vmem:[#allocation50_spill] sm:$0xff] }
 0x33e   :  { %v1203_v29 = vpop.xlane.xlu2 %1202  ;;  %v1200_v17 = vpop.xlane.xlu1 %1199  ;;  %v2115_v54 = vsel %vm1935_vm3, %v2114_v12, %v2113_v27  ;;  %v2126_v12 = vperm.slane %v6244_v49, %v4437_v34 }
 0x33f   :  { %v2473_v41 = vperm.slane %v1200_v17, %v4505_v13  ;;  %v1197_v18 = vpop.xlane.xlu0 %1196  ;;  %v2475_v52 = vperm.slane %v1203_v29, %v4339_v32  ;;  %v367_v29 = vld [vmem:[%s6017_s0 + $0xb00] sm:$0xff] }
 0x340   :  { %v2471_v56 = vperm.slane %v1197_v18, %v4502_v48  ;;  %v6239_v17 = vld [vmem:[#allocation48_spill] sm:$0xff]  ;;  %v1450_v38 = vsel %vm393_vm0, %v367_v29, 0.0 }
 0x341   :  { %v2118_v46 = vperm.slane %v6239_v17, %v4402_v50 }
 0x342   :  { %v2472_v14 = vsel %vm1979_vm14, %v2471_v56, %v2470_v43  ;;  %v1351_v56 = vsel %vm393_vm0, %v334_v28, 0.0  ;;  %v6240_v43 = vld [vmem:[#allocation47_spill] sm:$0xff]  ;;  %v336_v28 = vld [vmem:[%s6017_s0 + $0xa08] sm:$0xff] }
 0x343   :  { %1445 = vadd.xlane.f32.xlu2 %v1444_v8  ;;  %1442 = vadd.xlane.f32.xlu1 %v1441_v33  ;;  %v2474_v36 = vsel %vm1983_vm15, %v2473_v41, %v2472_v14  ;;  %v2117_v41 = vsel %vm1939_vm4, %v2116_v19, %v2115_v54  ;;  %v2128_v19 = vperm.slane %v6246_v58, %v4456_v63 }
 0x344   :  { %1331 = vadd.xlane.f32.xlu0 %v1330_v55  ;;  %v2691_v16 = vsel %vm2686_vm12, %v2474_v36, %v2108_v1  ;;  %v2120_v55 = vperm.slane %v6240_v43, %v4397_v40  ;;  %v2119_v14 = vsel %vm1943_vm5, %v2118_v46, %v2117_v41  ;;  %v6241_v1 = vld [vmem:[#allocation52_spill] sm:$0xff] }
 0x345   :  { %2812 = vmatmul.f32.vlgmr.msrb.gmra.mxu0 %v2691_v16  ;;  %v2122_v36 = vperm.slane %v6241_v1, %v4417_v22  ;;  %v6252_v1 = vld [vmem:[#allocation58_spill] sm:$0xff] }
 0x346   :  { %v1212_v0 = vpop.xlane.xlu2 %1211  ;;  %v1209_v35 = vpop.xlane.xlu1 %1208  ;;  %v2121_v62 = vsel %vm1947_vm6, %v2120_v55, %v2119_v14 }
 0x347   :  { %v1206_v26 = vpop.xlane.xlu0 %1205  ;;  %v2478_v5 = vperm.slane %v1209_v35, %v4359_v51  ;;  %v2480_v18 = vperm.slane %v1212_v0, %v4364_v11  ;;  %v6242_v0 = vld [vmem:[#allocation51_spill] sm:$0xff]  ;;  %v2123_v15 = vsel %vm6243_vm10, %v2122_v36, %v2121_v62  ;;  %vm6250_vm10 = vcmask 720512   ;;  %v380_v62 = vld [vmem:[%s6017_s0 + $0xb68] sm:$0xff] }
 0x348   :  { %v2476_v23 = vperm.slane %v1206_v26, %v4348_v61  ;;  %v2124_v35 = vperm.slane %v6242_v0, %v4431_v4  ;;  %v335_v26 = vld [vmem:[%s6017_s0 + $0xa00] sm:$0xff]  ;;  %v2134_v36 = vperm.slane %v6252_v1, %v4488_v25 }
 0x349   :  { %v1354_v59 = vsel %vm393_vm0, %v335_v26, 0.0 }
 0x34a   :  { %v2477_v53 = vsel %vm1927_vm1, %v2476_v23, %v2475_v52  ;;  %v1393_v23 = vsel %vm393_vm0, %v348_v6, 0.0  ;;  %v2125_v27 = vsel %vm6245_vm8, %v2124_v35, %v2123_v15 }
 0x34b   :  { %1349 = vadd.xlane.f32.xlu2 %v1348_v30  ;;  %1346 = vadd.xlane.f32.xlu1 %v1345_v44  ;;  %v2479_v8 = vsel %vm1931_vm2, %v2478_v5, %v2477_v53  ;;  %v328_v53 = vld [vmem:[%s6017_s0 + $0x9c8] sm:$0xff]  ;;  %v2127_v29 = vsel %vm6249_vm9, %v2126_v12, %v2125_v27  ;;  %v1489_v12 = vsel %vm393_vm0, %v380_v62, 0.0 }
 0x34c   :  { %1448 = vadd.xlane.f32.xlu0 %v1447_v2  ;;  %v2481_v9 = vsel %vm1935_vm3, %v2480_v18, %v2479_v8  ;;  %v1396_v2 = vsel %vm393_vm0, %v349_v42, 0.0  ;;  %v2129_v41 = vsel %vm6250_vm10, %v2128_v19, %v2127_v29  ;;  %v1357_v8 = vsel %vm393_vm0, %v336_v28, 0.0  ;;  %v6255_v42 = vld [vmem:[#allocation57_spill] sm:$0xff]  ;;  %v329_v29 = vld [vmem:[%s6017_s0 + $0x9d0] sm:$0xff] }
 0x34d   :  { %v2136_v6 = vperm.slane %v6255_v42, %v4502_v48 }
 0x34e   :  { %v1221_v57 = vpop.xlane.xlu2 %1220  ;;  %v1218_v45 = vpop.xlane.xlu1 %1217 }
 0x34f   :  { %v1215_v3 = vpop.xlane.xlu0 %1214  ;;  %v2484_v16 = vperm.slane %v1218_v45, %v4402_v50  ;;  %v2486_v60 = vperm.slane %v1221_v57, %v4397_v40  ;;  %v6248_v57 = vld [vmem:[#allocation54_spill] sm:$0xff] }
 0x350   :  { %v2482_v33 = vperm.slane %v1215_v3, %v4381_v39  ;;  %v2130_v45 = vperm.slane %v6248_v57, %v4467_v37  ;;  %v369_v3 = vld [vmem:[%s6017_s0 + $0xb10] sm:$0xff] }
 0x351   :  { %v1456_v55 = vsel %vm393_vm0, %v369_v3, 0.0 }
 0x352   :  { %v2483_v10 = vsel %vm1939_vm4, %v2482_v33, %v2481_v9  ;;  %v1333_v33 = vsel %vm393_vm0, %v328_v53, 0.0  ;;  %v2131_v14 = vsel %vm1967_vm11, %v2130_v45, %v2129_v41  ;;  %v337_v45 = vld [vmem:[%s6017_s0 + $0xa10] sm:$0xff] }
 0x353   :  { %1454 = vadd.xlane.f32.xlu2 %v1453_v47  ;;  %1352 = vadd.xlane.f32.xlu1 %v1351_v56  ;;  %v2485_v44 = vsel %vm1943_vm5, %v2484_v16, %v2483_v10  ;;  %v1360_v41 = vsel %vm393_vm0, %v337_v45, 0.0 }
 0x354   :  { %1451 = vadd.xlane.f32.xlu0 %v1450_v38  ;;  %v2487_v5 = vsel %vm1947_vm6, %v2486_v60, %v2485_v44  ;;  %v6251_v38 = vld [vmem:[#allocation53_spill] sm:$0xff]  ;;  %v6257_v44 = vld [vmem:[#allocation56_spill] sm:$0xff] }
 0x355   :  { %v2132_v43 = vperm.slane %v6251_v38, %v4473_v24 }
 0x356   :  { %v1230_v21 = vpop.xlane.xlu2 %1229  ;;  %v1227_v7 = vpop.xlane.xlu1 %1226 }
 0x357   :  { %v1224_v30 = vpop.xlane.xlu0 %1223  ;;  %v2490_v52 = vperm.slane %v1227_v7, %v4431_v4  ;;  %v2492_v17 = vperm.slane %v1230_v21, %v4437_v34  ;;  %v370_v21 = vld [vmem:[%s6017_s0 + $0xb18] sm:$0xff] }
 0x358   :  { %v2488_v31 = vperm.slane %v1224_v30, %v4417_v22  ;;  %v350_v30 = vld [vmem:[%s6017_s0 + $0xa78] sm:$0xff]  ;;  %v1459_v27 = vsel %vm393_vm0, %v370_v21, 0.0 }
 0x359   :  { %v1399_v19 = vsel %vm393_vm0, %v350_v30, 0.0 }
 0x35a   :  { %v2489_v20 = vsel %vm6247_vm7, %v2488_v31, %v2487_v5  ;;  %vm6253_vm7 = vmmov %vm6249_vm9  ;;  %v2138_v31 = vperm.slane %v6257_v44, %v4505_v13 }
 0x35b   :  { %1397 = vadd.xlane.f32.xlu2 %v1396_v2  ;;  %1394 = vadd.xlane.f32.xlu1 %v1393_v23  ;;  %v2491_v18 = vsel %vm6245_vm8, %v2490_v52, %v2489_v20  ;;  %vm6254_vm9 = vmmov %vm6250_vm10  ;;  %vm6256_vm10 = vcmask 851712  }
 0x35c   :  { %1355 = vadd.xlane.f32.xlu0 %v1354_v59  ;;  %v2493_v9 = vsel %vm6253_vm7, %v2492_v17, %v2491_v18  ;;  %v2133_v0 = vsel %vm6256_vm10, %v2132_v43, %v2131_v14  ;;  %vm6258_vm8 = vmmov %vm6256_vm10  ;;  %v1336_v18 = vsel %vm393_vm0, %v329_v29, 0.0  ;;  %v382_v43 = vld [vmem:[%s6017_s0 + $0xb78] sm:$0xff]  ;;  %vm6268_vm7 = vcmask 523712  }
 0x35d   :  { %v2135_v7 = vsel %vm1975_vm13, %v2134_v36, %v2133_v0  ;;  %v1495_v21 = vsel %vm393_vm0, %v382_v43, 0.0  ;;  %v6265_v29 = vld [vmem:[#allocation67_spill] sm:$0xff]  ;;  %vm6271_vm10 = vcmask 589312  }
 0x35e   :  { %v1239_v46 = vpop.xlane.xlu2 %1238  ;;  %v1236_v54 = vpop.xlane.xlu1 %1235  ;;  %v2137_v52 = vsel %vm1979_vm14, %v2136_v6, %v2135_v7 }
 0x35f   :  { %v1233_v47 = vpop.xlane.xlu0 %1232  ;;  %v2496_v16 = vperm.slane %v1236_v54, %v4467_v37  ;;  %v2498_v35 = vperm.slane %v1239_v46, %v4473_v24  ;;  %v2139_v28 = vsel %vm1983_vm15, %v2138_v31, %v2137_v52  ;;  %v381_v54 = vld [vmem:[%s6017_s0 + $0xb70] sm:$0xff] }
 0x360   :  { %v2494_v56 = vperm.slane %v1233_v47, %v4456_v63  ;;  %v1492_v47 = vsel %vm393_vm0, %v381_v54, 0.0  ;;  %v6263_v31 = vld [vmem:[#allocation63_spill] sm:$0xff] }
 0x362   :  { %v2495_v10 = vsel %vm6254_vm9, %v2494_v56, %v2493_v9  ;;  %v6259_v56 = vld [vmem:[#allocation60_spill] sm:$0xff]  ;;  %vm6270_vm9 = vmmov %vm6268_vm7 }
 0x363   :  { %1358 = vadd.xlane.f32.xlu2 %v1357_v8  ;;  %1334 = vadd.xlane.f32.xlu1 %v1333_v33  ;;  %v2497_v26 = vsel %vm1967_vm11, %v2496_v16, %v2495_v10  ;;  %v2141_v8 = vperm.slane %v6259_v56, %v4348_v61  ;;  %v6260_v33 = vld [vmem:[#allocation61_spill] sm:$0xff]  ;;  %v6261_v10 = vld [vmem:[#allocation59_spill] sm:$0xff]  ;;  %v6266_v56 = vld [vmem:[#allocation66_spill] sm:$0xff] }
 0x364   :  { %1457 = vadd.xlane.f32.xlu0 %v1456_v55  ;;  %v2499_v58 = vsel %vm6258_vm8, %v2498_v35, %v2497_v26  ;;  %v2140_v38 = vperm.slane %v6260_v33, %v4339_v32  ;;  %v371_v55 = vld [vmem:[%s6017_s0 + $0xb20] sm:$0xff]  ;;  %v2143_v42 = vperm.slane %v6261_v10, %v4359_v51  ;;  %v1534_v26 = vld [vmem:[%s6018_s1 + $0x30] sm:$0xff]  ;;  %vm6273_vm8 = vmmov %vm6271_vm10 }
 0x365   :  { %v351_v9 = vld [vmem:[%s6017_s0 + $0xa80] sm:$0xff]  ;;  %v1462_v7 = vsel %vm393_vm0, %v371_v55, 0.0  ;;  %2851 = vmatpush.xpose.msrb.mxu2 %v1534_v26 }
 0x366   :  { %v1248_v15 = vpop.xlane.xlu2 %1247  ;;  %v1245_v60 = vpop.xlane.xlu1 %1244  ;;  %v2142_v0 = vsel %vm1927_vm1, %v2141_v8, %v2140_v38  ;;  %v6262_v35 = vld [vmem:[#allocation64_spill] sm:$0xff]  ;;  %v2153_v8 = vperm.slane %v6266_v56, %v4417_v22 }
 0x367   :  { %v2502_v2 = vperm.slane %v1245_v60, %v4502_v48  ;;  %v1242_v23 = vpop.xlane.xlu0 %1241  ;;  %v2504_v59 = vperm.slane %v1248_v15, %v4505_v13  ;;  %v2145_v62 = vperm.slane %v6262_v35, %v4364_v11  ;;  %v1402_v60 = vsel %vm393_vm0, %v351_v9, 0.0  ;;  %v6269_v35 = vld [vmem:[#allocation70_spill] sm:$0xff]  ;;  %v6280_v56 = vld [vmem:[#allocation72_spill] sm:$0xff] }
 0x368   :  { %v2500_v49 = vperm.slane %v1242_v23, %v4488_v25  ;;  %v2144_v23 = vsel %vm1931_vm2, %v2143_v42, %v2142_v0 }
 0x36a   :  { %v2501_v5 = vsel %vm1975_vm13, %v2500_v49, %v2499_v58  ;;  %v338_v58 = vld [vmem:[%s6017_s0 + $0xa18] sm:$0xff] }
 0x36b   :  { %1490 = vadd.xlane.f32.xlu2 %v1489_v12  ;;  %1460 = vadd.xlane.f32.xlu1 %v1459_v27  ;;  %v2503_v20 = vsel %vm1979_vm14, %v2502_v2, %v2501_v5  ;;  %v2147_v2 = vperm.slane %v6263_v31, %v4381_v39  ;;  %v352_v27 = vld [vmem:[%s6017_s0 + $0xa88] sm:$0xff] }
 0x36c   :  { %1400 = vadd.xlane.f32.xlu0 %v1399_v19  ;;  %v2505_v53 = vsel %vm1983_vm15, %v2504_v59, %v2503_v20  ;;  %v2146_v59 = vsel %vm1935_vm3, %v2145_v62, %v2144_v23  ;;  %v330_v20 = vld [vmem:[%s6017_s0 + $0x9d8] sm:$0xff]  ;;  %v1405_v54 = vsel %vm393_vm0, %v352_v27, 0.0  ;;  %v2157_v62 = vperm.slane %v6269_v35, %v4437_v34 }
 0x36d   :  { %v2692_v57 = vsel %vm2686_vm12, %v2505_v53, %v2139_v28  ;;  %v6264_v28 = vld [vmem:[#allocation62_spill] sm:$0xff] }
 0x36e   :  { %2832 = vmatmul.f32.vlgmr.msrb.gmra.mxu1 %v2692_v57  ;;  %v1257_v17 = vpop.xlane.xlu2 %1256  ;;  %v1254_v46 = vpop.xlane.xlu1 %1253  ;;  %v2149_v53 = vperm.slane %v6264_v28, %v4402_v50  ;;  %v2148_v57 = vsel %vm1939_vm4, %v2147_v2, %v2146_v59  ;;  %v6272_v2 = vld [vmem:[#allocation69_spill] sm:$0xff] }
 0x36f   :  { %v1251_v3 = vpop.xlane.xlu0 %1250  ;;  %v2507_v14 = vperm.slane %v1254_v46, %v4348_v61  ;;  %v2509_v15 = vperm.slane %v1257_v17, %v4359_v51  ;;  %v2151_v17 = vperm.slane %v6265_v29, %v4397_v40  ;;  %v2159_v23 = vperm.slane %v6272_v2, %v4456_v63  ;;  %v6278_v29 = vld [vmem:[#allocation73_spill] sm:$0xff] }
 0x370   :  { %v2506_v1 = vperm.slane %v1251_v3, %v4339_v32  ;;  %v1363_v3 = vsel %vm393_vm0, %v338_v58, 0.0  ;;  %v2150_v33 = vsel %vm1943_vm5, %v2149_v53, %v2148_v57  ;;  %v373_v58 = vld [vmem:[%s6017_s0 + $0xb30] sm:$0xff]  ;;  %v339_v57 = vld [vmem:[%s6017_s0 + $0xa20] sm:$0xff] }
 0x371   :  { %v2152_v38 = vsel %vm1947_vm6, %v2151_v17, %v2150_v33  ;;  %v2163_v17 = vperm.slane %v6278_v29, %v4473_v24 }
 0x372   :  { %v2508_v30 = vsel %vm1927_vm1, %v2507_v14, %v2506_v1  ;;  %v331_v1 = vld [vmem:[%s6017_s0 + $0x9e0] sm:$0xff]  ;;  %v2154_v0 = vsel %vm6268_vm7, %v2153_v8, %v2152_v38  ;;  %vm6274_vm7 = vcmask 654912   ;;  %v2165_v8 = vperm.slane %v6280_v56, %v4488_v25 }
 0x373   :  { %1361 = vadd.xlane.f32.xlu2 %v1360_v41  ;;  %1337 = vadd.xlane.f32.xlu1 %v1336_v18  ;;  %v2510_v12 = vsel %vm1931_vm2, %v2509_v15, %v2508_v30  ;;  %v375_v56 = vld [vmem:[%s6017_s0 + $0xb40] sm:$0xff] }
 0x374   :  { %1493 = vadd.xlane.f32.xlu0 %v1492_v47  ;;  %v1339_v47 = vsel %vm393_vm0, %v330_v20, 0.0 }
 0x376   :  { %v1266_v36 = vpop.xlane.xlu2 %1265  ;;  %v1263_v16 = vpop.xlane.xlu1 %1262 }
 0x377   :  { %v1260_v6 = vpop.xlane.xlu0 %1259  ;;  %v2513_v49 = vperm.slane %v1263_v16, %v4381_v39  ;;  %v2515_v46 = vperm.slane %v1266_v36, %v4402_v50  ;;  %v383_v36 = vld [vmem:[%s6017_s0 + $0xb80] sm:$0xff] }
 0x378   :  { %v2511_v44 = vperm.slane %v1260_v6, %v4364_v11  ;;  %v6267_v16 = vld [vmem:[#allocation65_spill] sm:$0xff]  ;;  %v1498_v30 = vsel %vm393_vm0, %v383_v36, 0.0 }
 0x379   :  { %v2155_v9 = vperm.slane %v6267_v16, %v4431_v4  ;;  %v372_v6 = vld [vmem:[%s6017_s0 + $0xb28] sm:$0xff] }
 0x37a   :  { %v2512_v19 = vsel %vm1935_vm3, %v2511_v44, %v2510_v12  ;;  %v1465_v44 = vsel %vm393_vm0, %v372_v6, 0.0 }
 0x37b   :  { %1496 = vadd.xlane.f32.xlu2 %v1495_v21  ;;  %1463 = vadd.xlane.f32.xlu1 %v1462_v7  ;;  %v2514_v41 = vsel %vm1939_vm4, %v2513_v49, %v2512_v19  ;;  %v2156_v31 = vsel %vm6271_vm10, %v2155_v9, %v2154_v0  ;;  %v353_v19 = vld [vmem:[%s6017_s0 + $0xa90] sm:$0xff]  ;;  %vm6277_vm10 = vcmask 720512   ;;  %v354_v9 = vld [vmem:[%s6017_s0 + $0xa98] sm:$0xff] }
 0x37c   :  { %1403 = vadd.xlane.f32.xlu0 %v1402_v60  ;;  %v2516_v55 = vsel %vm1943_vm5, %v2515_v46, %v2514_v41  ;;  %v1342_v60 = vsel %vm393_vm0, %v331_v1, 0.0  ;;  %v2158_v12 = vsel %vm6274_vm7, %v2157_v62, %v2156_v31  ;;  %v1468_v41 = vsel %vm393_vm0, %v373_v58, 0.0  ;;  %v6283_v1 = vld [vmem:[#allocation71_spill] sm:$0xff] }
 0x37d   :  { %v2167_v36 = vperm.slane %v6283_v1, %v4502_v48 }
 0x37e   :  { %v1275_v52 = vpop.xlane.xlu2 %1274  ;;  %v1272_v5 = vpop.xlane.xlu1 %1271 }
 0x37f   :  { %v1269_v45 = vpop.xlane.xlu0 %1268  ;;  %v2519_v43 = vperm.slane %v1272_v5, %v4417_v22  ;;  %v2521_v21 = vperm.slane %v1275_v52, %v4431_v4  ;;  %v6276_v52 = vld [vmem:[#allocation68_spill] sm:$0xff] }
 0x380   :  { %v2517_v18 = vperm.slane %v1269_v45, %v4397_v40  ;;  %v2161_v5 = vperm.slane %v6276_v52, %v4467_v37  ;;  %v2160_v45 = vsel %vm6277_vm10, %v2159_v23, %v2158_v12  ;;  %v385_v52 = vld [vmem:[%s6017_s0 + $0xb90] sm:$0xff] }
 0x382   :  { %v2518_v14 = vsel %vm1947_vm6, %v2517_v18, %v2516_v55  ;;  %v1408_v18 = vsel %vm393_vm0, %v353_v19, 0.0  ;;  %v2162_v33 = vsel %vm1967_vm11, %v2161_v5, %v2160_v45  ;;  %v341_v19 = vld [vmem:[%s6017_s0 + $0xa30] sm:$0xff] }
 0x383   :  { %1406 = vadd.xlane.f32.xlu2 %v1405_v54  ;;  %1364 = vadd.xlane.f32.xlu1 %v1363_v3  ;;  %v2520_v26 = vsel %vm6270_vm9, %v2519_v43, %v2518_v14  ;;  %vm6275_vm9 = vmmov %vm6274_vm7  ;;  %vm6281_vm7 = vcmask 851712  }
 0x384   :  { %1340 = vadd.xlane.f32.xlu0 %v1339_v47  ;;  %v2522_v49 = vsel %vm6273_vm8, %v2521_v21, %v2520_v26  ;;  %vm6279_vm8 = vmmov %vm6277_vm10  ;;  %v1366_v47 = vsel %vm393_vm0, %v339_v57, 0.0  ;;  %v2164_v55 = vsel %vm6281_vm7, %v2163_v17, %v2162_v33  ;;  %v384_v21 = vld [vmem:[%s6017_s0 + $0xb88] sm:$0xff]  ;;  %v1372_v17 = vsel %vm393_vm0, %v341_v19, 0.0 }
 0x385   :  { %v1501_v23 = vsel %vm393_vm0, %v384_v21, 0.0  ;;  %vm6285_vm10 = vcmask 523712  }
 0x386   :  { %v1284_v10 = vpop.xlane.xlu2 %1283  ;;  %v1281_v42 = vpop.xlane.xlu1 %1280 }
 0x387   :  { %v1278_v7 = vpop.xlane.xlu0 %1277  ;;  %v2525_v59 = vperm.slane %v1281_v42, %v4456_v63  ;;  %v2527_v20 = vperm.slane %v1284_v10, %v4467_v37  ;;  %v340_v10 = vld [vmem:[%s6017_s0 + $0xa28] sm:$0xff]  ;;  %v6284_v42 = vld [vmem:[#allocation76_spill] sm:$0xff] }
 0x388   :  { %v2523_v15 = vperm.slane %v1278_v7, %v4437_v34  ;;  %v2169_v6 = vperm.slane %v6284_v42, %v4505_v13  ;;  %v2166_v7 = vsel %vm1975_vm13, %v2165_v8, %v2164_v55  ;;  %v1369_v31 = vsel %vm393_vm0, %v340_v10, 0.0 }
 0x38a   :  { %v2524_v27 = vsel %vm6275_vm9, %v2523_v15, %v2522_v49  ;;  %vm6282_vm9 = vmmov %vm6281_vm7  ;;  %vm6287_vm7 = vcmask 654912  }
 0x38b   :  { %1343 = vadd.xlane.f32.xlu2 %v1342_v60  ;;  %1499 = vadd.xlane.f32.xlu1 %v1498_v30  ;;  %v2526_v46 = vsel %vm6279_vm8, %v2525_v59, %v2524_v27  ;;  %v2168_v59 = vsel %vm1979_vm14, %v2167_v36, %v2166_v7  ;;  %v342_v7 = vld [vmem:[%s6017_s0 + $0xa38] sm:$0xff]  ;;  %vm6286_vm8 = vcmask 589312  }
 0x38c   :  { %1466 = vadd.xlane.f32.xlu0 %v1465_v44  ;;  %v2528_v43 = vsel %vm1967_vm11, %v2527_v20, %v2526_v46  ;;  %v1411_v44 = vsel %vm393_vm0, %v354_v9, 0.0  ;;  %v2170_v12 = vsel %vm1983_vm15, %v2169_v6, %v2168_v59  ;;  %v1504_v46 = vsel %vm393_vm0, %v385_v52, 0.0  ;;  %v387_v52 = vld [vmem:[%s6017_s0 + $0xba0] sm:$0xff] }
 0x38e   :  { %v1293_v28 = vpop.xlane.xlu2 %1292  ;;  %v1290_v53 = vpop.xlane.xlu1 %1289 }
 0x38f   :  { %v1287_v54 = vpop.xlane.xlu0 %1286  ;;  %v2531_v38 = vperm.slane %v1290_v53, %v4488_v25  ;;  %v2533_v16 = vperm.slane %v1293_v28, %v4502_v48  ;;  %v374_v28 = vld [vmem:[%s6017_s0 + $0xb38] sm:$0xff] }
 0x390   :  { %v2529_v3 = vperm.slane %v1287_v54, %v4473_v24  ;;  %v1471_v54 = vsel %vm393_vm0, %v374_v28, 0.0 }
 0x392   :  { %v2530_v14 = vsel %vm6282_vm9, %v2529_v3, %v2528_v43  ;;  %vm6288_vm9 = vcmask 720512  }
 0x393   :  { %1469 = vadd.xlane.f32.xlu2 %v1468_v41  ;;  %1409 = vadd.xlane.f32.xlu1 %v1408_v18  ;;  %v2532_v0 = vsel %vm1975_vm13, %v2531_v38, %v2530_v14  ;;  %v355_v38 = vld [vmem:[%s6017_s0 + $0xaa0] sm:$0xff] }
 0x394   :  { %1367 = vadd.xlane.f32.xlu0 %v1366_v47  ;;  %v2534_v49 = vsel %vm1979_vm14, %v2533_v16, %v2532_v0  ;;  %v386_v47 = vld [vmem:[%s6017_s0 + $0xb98] sm:$0xff]  ;;  %v1474_v16 = vsel %vm393_vm0, %v375_v56, 0.0  ;;  %v1414_v9 = vsel %vm393_vm0, %v355_v38, 0.0  ;;  %v376_v0 = vld [vmem:[%s6017_s0 + $0xb48] sm:$0xff] }
 0x395   :  { %v1507_v36 = vsel %vm393_vm0, %v386_v47, 0.0  ;;  %v377_v47 = vld [vmem:[%s6017_s0 + $0xb50] sm:$0xff] }
 0x396   :  { %v1302_v35 = vpop.xlane.xlu2 %1301  ;;  %v1299_v62 = vpop.xlane.xlu1 %1298 }
 0x397   :  { %v2538_v26 = vperm.slane %v1302_v35, %v4348_v61  ;;  %v2537_v15 = vperm.slane %v1299_v62, %v4339_v32  ;;  %v1296_v60 = vpop.xlane.xlu0 %1295  ;;  %v356_v35 = vld [vmem:[%s6017_s0 + $0xaa8] sm:$0xff] }
 0x398   :  { %v2535_v30 = vperm.slane %v1296_v60, %v4505_v13 }
 0x399   :  { %v2539_v2 = vsel %vm1927_vm1, %v2538_v26, %v2537_v15 }
 0x39a   :  { %v2536_v27 = vsel %vm1983_vm15, %v2535_v30, %v2534_v49 }
 0x39b   :  { %1412 = vadd.xlane.f32.xlu2 %v1411_v44  ;;  %1370 = vadd.xlane.f32.xlu1 %v1369_v31  ;;  %v2693_v58 = vsel %vm2686_vm12, %v2536_v27, %v2170_v12  ;;  %v1477_v44 = vsel %vm393_vm0, %v376_v0, 0.0  ;;  %v1417_v31 = vsel %vm393_vm0, %v356_v35, 0.0  ;;  %v357_v12 = vld [vmem:[%s6017_s0 + $0xab0] sm:$0xff]  ;;  %v343_v27 = vld [vmem:[%s6017_s0 + $0xa40] sm:$0xff] }
 0x39c   :  { %1502 = vadd.xlane.f32.xlu0 %v1501_v23  ;;  %2852 = vmatmul.f32.vlgmr.msrb.gmra.mxu2 %v2693_v58 }
 0x39e   :  { %v1311_v5 = vpop.xlane.xlu2 %1310  ;;  %v1308_v20 = vpop.xlane.xlu1 %1307 }
 0x39f   :  { %v2542_v53 = vperm.slane %v1308_v20, %v4364_v11  ;;  %v1305_v57 = vpop.xlane.xlu0 %1304  ;;  %v2544_v45 = vperm.slane %v1311_v5, %v4381_v39 }
 0x3a0   :  { %v2540_v29 = vperm.slane %v1305_v57, %v4359_v51  ;;  %v1420_v57 = vsel %vm393_vm0, %v357_v12, 0.0 }
 0x3a2   :  { %v2541_v3 = vsel %vm1931_vm2, %v2540_v29, %v2539_v2  ;;  %v1375_v2 = vsel %vm393_vm0, %v342_v7, 0.0 }
 0x3a3   :  { %v2543_v41 = vsel %vm1935_vm3, %v2542_v53, %v2541_v3  ;;  %1373 = vadd.xlane.f32.xlu2 %v1372_v17  ;;  %1505 = vadd.xlane.f32.xlu1 %v1504_v46  ;;  %v1510_v17 = vsel %vm393_vm0, %v387_v52, 0.0  ;;  %v388_v3 = vld [vmem:[%s6017_s0 + $0xba8] sm:$0xff] }
 0x3a4   :  { %1472 = vadd.xlane.f32.xlu0 %v1471_v54  ;;  %v2545_v18 = vsel %vm1939_vm4, %v2544_v45, %v2543_v41  ;;  %v1378_v45 = vsel %vm393_vm0, %v343_v27, 0.0  ;;  %v344_v54 = vld [vmem:[%s6017_s0 + $0xa48] sm:$0xff] }
 0x3a6   :  { %v1320_v8 = vpop.xlane.xlu2 %1319  ;;  %v1317_v33 = vpop.xlane.xlu1 %1316 }
 0x3a7   :  { %v2548_v43 = vperm.slane %v1317_v33, %v4397_v40  ;;  %v1314_v55 = vpop.xlane.xlu0 %1313  ;;  %v2550_v14 = vperm.slane %v1320_v8, %v4417_v22 }
 0x3a8   :  { %v2546_v1 = vperm.slane %v1314_v55, %v4402_v50  ;;  %v1513_v55 = vsel %vm393_vm0, %v388_v3, 0.0 }
 0x3aa   :  { %v2547_v10 = vsel %vm1943_vm5, %v2546_v1, %v2545_v18  ;;  %v1480_v1 = vsel %vm393_vm0, %v377_v47, 0.0 }
 0x3ab   :  { %v2549_v42 = vsel %vm1947_vm6, %v2548_v43, %v2547_v10  ;;  %1508 = vadd.xlane.f32.xlu2 %v1507_v36  ;;  %1475 = vadd.xlane.f32.xlu1 %v1474_v16  ;;  %v1381_v43 = vsel %vm393_vm0, %v344_v54, 0.0  ;;  %v389_v16 = vld [vmem:[%s6017_s0 + $0xbb0] sm:$0xff]  ;;  %v390_v54 = vld [vmem:[%s6017_s0 + $0xbb8] sm:$0xff] }
 0x3ac   :  { %1415 = vadd.xlane.f32.xlu0 %v1414_v9  ;;  %v2551_v6 = vsel %vm6285_vm10, %v2550_v14, %v2549_v42  ;;  %v378_v9 = vld [vmem:[%s6017_s0 + $0xb58] sm:$0xff]  ;;  %v1516_v7 = vsel %vm393_vm0, %v389_v16, 0.0 }
 0x3ae   :  { %v1329_v62 = vpop.xlane.xlu2 %1328  ;;  %v1326_v21 = vpop.xlane.xlu1 %1325 }
 0x3af   :  { %v2554_v26 = vperm.slane %v1326_v21, %v4437_v34  ;;  %v1323_v15 = vpop.xlane.xlu0 %1322  ;;  %v2556_v60 = vperm.slane %v1329_v62, %v4456_v63 }
 0x3b0   :  { %v2552_v30 = vperm.slane %v1323_v15, %v4431_v4 }
 0x3b2   :  { %v2553_v23 = vsel %vm6286_vm8, %v2552_v30, %v2551_v6  ;;  %v358_v6 = vld [vmem:[%s6017_s0 + $0xab8] sm:$0xff] }
 0x3b3   :  { %v2555_v59 = vsel %vm6287_vm7, %v2554_v26, %v2553_v23  ;;  %1478 = vadd.xlane.f32.xlu2 %v1477_v44  ;;  %1418 = vadd.xlane.f32.xlu1 %v1417_v31  ;;  %v1483_v26 = vsel %vm393_vm0, %v378_v9, 0.0  ;;  %v379_v31 = vld [vmem:[%s6017_s0 + $0xb60] sm:$0xff]  ;;  %v361_v9 = vld [vmem:[%s6017_s0 + $0xad0] sm:$0xff] }
 0x3b4   :  { %1376 = vadd.xlane.f32.xlu0 %v1375_v2  ;;  %v2557_v49 = vsel %vm6288_vm9, %v2556_v60, %v2555_v59  ;;  %v1423_v60 = vsel %vm393_vm0, %v358_v6, 0.0  ;;  %v359_v2 = vld [vmem:[%s6017_s0 + $0xac0] sm:$0xff]  ;;  %v1486_v52 = vsel %vm393_vm0, %v379_v31, 0.0 }
 0x3b6   :  { %v1446_v58 = vpop.xlane.xlu2 %1445  ;;  %v1443_v19 = vpop.xlane.xlu1 %1442 }
 0x3b7   :  { %v2631_v5 = vperm.slane %v1446_v58, %v4348_v61  ;;  %v2630_v20 = vperm.slane %v1443_v19, %v4339_v32  ;;  %v1332_v28 = vpop.xlane.xlu0 %1331 }
 0x3b8   :  { %v2558_v53 = vperm.slane %v1332_v28, %v4467_v37 }
 0x3b9   :  { %v2632_v29 = vsel %vm1927_vm1, %v2631_v5, %v2630_v20  ;;  %v1426_v5 = vsel %vm393_vm0, %v359_v2, 0.0 }
 0x3ba   :  { %v5490_v46 = vsel %vm1967_vm11, %v2558_v53, %v2557_v49  ;;  %v345_v49 = vld [vmem:[%s6017_s0 + $0xa50] sm:$0xff] }
 0x3bb   :  { %1421 = vadd.xlane.f32.xlu2 %v1420_v57  ;;  %1379 = vadd.xlane.f32.xlu1 %v1378_v45  ;;  %v1384_v28 = vsel %vm393_vm0, %v345_v49, 0.0  ;;  %v360_v57 = vld [vmem:[%s6017_s0 + $0xac8] sm:$0xff]  ;;  %v346_v45 = vld [vmem:[%s6017_s0 + $0xa58] sm:$0xff] }
 0x3bc   :  { %1511 = vadd.xlane.f32.xlu0 %v1510_v17  ;;  %v1429_v47 = vsel %vm393_vm0, %v360_v57, 0.0  ;;  %v6293_v49 = vld [vmem:[#allocation77_spill] sm:$0xff] }
 0x3bd   :  { %v6295_v57 = vld [vmem:[#allocation81_spill] sm:$0xff] }
 0x3be   :  { %v1350_v41 = vpop.xlane.xlu2 %1349  ;;  %v1347_v18 = vpop.xlane.xlu1 %1346 }
 0x3bf   :  { %v2569_v56 = vperm.slane %v1350_v41, %v4348_v61  ;;  %v2568_v8 = vperm.slane %v1347_v18, %v4339_v32  ;;  %v1449_v33 = vpop.xlane.xlu0 %1448 }
 0x3c0   :  { %v2633_v38 = vperm.slane %v1449_v33, %v4359_v51  ;;  %v1519_v33 = vsel %vm393_vm0, %v390_v54, 0.0 }
 0x3c1   :  { %v2570_v14 = vsel %vm1927_vm1, %v2569_v56, %v2568_v8  ;;  %v1387_v56 = vsel %vm393_vm0, %v346_v45, 0.0  ;;  %v2182_v45 = vperm.slane %v6295_v57, %v4397_v40 }
 0x3c2   :  { %v2634_v36 = vsel %vm1931_vm2, %v2633_v38, %v2632_v29 }
 0x3c3   :  { %1382 = vadd.xlane.f32.xlu2 %v1381_v43  ;;  %1514 = vadd.xlane.f32.xlu1 %v1513_v55  ;;  %v6289_v43 = vld [vmem:[#allocation74_spill] sm:$0xff] }
 0x3c4   :  { %1481 = vadd.xlane.f32.xlu0 %v1480_v1  ;;  %v2172_v55 = vperm.slane %v6289_v43, %v4348_v61 }
 0x3c6   :  { %v1455_v10 = vpop.xlane.xlu2 %1454  ;;  %v1353_v42 = vpop.xlane.xlu1 %1352 }
 0x3c7   :  { %v2637_v0 = vperm.slane %v1455_v10, %v4381_v39  ;;  %v2571_v35 = vperm.slane %v1353_v42, %v4359_v51  ;;  %v1452_v62 = vpop.xlane.xlu0 %1451  ;;  %v347_v10 = vld [vmem:[%s6017_s0 + $0xa60] sm:$0xff] }
 0x3c8   :  { %v2635_v21 = vperm.slane %v1452_v62, %v4364_v11 }
 0x3c9   :  { %v2572_v15 = vsel %vm1931_vm2, %v2571_v35, %v2570_v14  ;;  %v6290_v14 = vld [vmem:[#allocation75_spill] sm:$0xff] }
 0x3ca   :  { %v2636_v30 = vsel %vm1935_vm3, %v2635_v21, %v2634_v36  ;;  %v2171_v1 = vperm.slane %v6290_v14, %v4339_v32  ;;  %v6291_v36 = vld [vmem:[#allocation79_spill] sm:$0xff]  ;;  %v6296_v14 = vld [vmem:[#allocation80_spill] sm:$0xff] }
 0x3cb   :  { %1517 = vadd.xlane.f32.xlu2 %v1516_v7  ;;  %1484 = vadd.xlane.f32.xlu1 %v1483_v26  ;;  %v2638_v44 = vsel %vm1939_vm4, %v2637_v0, %v2636_v30  ;;  %v2174_v16 = vperm.slane %v6291_v36, %v4359_v51  ;;  %v391_v0 = vld [vmem:[%s6017_s0 + $0xbc0] sm:$0xff]  ;;  %v6292_v7 = vld [vmem:[#allocation78_spill] sm:$0xff]  ;;  %v1390_v30 = vsel %vm393_vm0, %v347_v10, 0.0 }
 0x3cc   :  { %1424 = vadd.xlane.f32.xlu0 %v1423_v60  ;;  %v2173_v35 = vsel %vm1927_vm1, %v2172_v55, %v2171_v1  ;;  %v2176_v26 = vperm.slane %v6292_v7, %v4364_v11  ;;  %v1432_v60 = vsel %vm393_vm0, %v361_v9, 0.0  ;;  %v2184_v1 = vperm.slane %v6296_v14, %v4417_v22 }
 0x3cd   :  { %v2175_v31 = vsel %vm1931_vm2, %v2174_v16, %v2173_v35  ;;  %v6297_v16 = vld [vmem:[#allocation85_spill] sm:$0xff] }
 0x3ce   :  { %v1398_v23 = vpop.xlane.xlu2 %1397  ;;  %v1395_v59 = vpop.xlane.xlu1 %1394  ;;  %v2186_v9 = vperm.slane %v6297_v16, %v4431_v4 }
 0x3cf   :  { %v2600_v12 = vperm.slane %v1398_v23, %v4348_v61  ;;  %v2599_v27 = vperm.slane %v1395_v59, %v4339_v32  ;;  %v1356_v58 = vpop.xlane.xlu0 %1355  ;;  %v1522_v23 = vsel %vm393_vm0, %v391_v0, 0.0 }
 0x3d0   :  { %v2573_v19 = vperm.slane %v1356_v58, %v4364_v11  ;;  %v6294_v58 = vld [vmem:[#allocation82_spill] sm:$0xff] }
 0x3d1   :  { %v2601_v20 = vsel %vm1927_vm1, %v2600_v12, %v2599_v27  ;;  %v2178_v12 = vperm.slane %v6293_v49, %v4381_v39  ;;  %v2177_v27 = vsel %vm1935_vm3, %v2176_v26, %v2175_v31  ;;  %v6302_v49 = vld [vmem:[#allocation88_spill] sm:$0xff] }
 0x3d2   :  { %v2574_v53 = vsel %vm1935_vm3, %v2573_v19, %v2572_v15  ;;  %v2180_v19 = vperm.slane %v6294_v58, %v4402_v50 }
 0x3d3   :  { %1487 = vadd.xlane.f32.xlu2 %v1486_v52  ;;  %1427 = vadd.xlane.f32.xlu1 %v1426_v5  ;;  %v362_v52 = vld [vmem:[%s6017_s0 + $0xad8] sm:$0xff]  ;;  %v363_v5 = vld [vmem:[%s6017_s0 + $0xae0] sm:$0xff] }
 0x3d4   :  { %1385 = vadd.xlane.f32.xlu0 %v1384_v28 }
 0x3d6   :  { %v1359_v29 = vpop.xlane.xlu2 %1358  ;;  %v5550_v17 = vpop.xlane.xlu1 %1334 }
 0x3d7   :  { %v2575_v3 = vperm.slane %v1359_v29, %v4381_v39  ;;  %v1458_v41 = vpop.xlane.xlu0 %1457  ;;  %v2179_v29 = vsel %vm1939_vm4, %v2178_v12, %v2177_v27  ;;  %v2192_v12 = vperm.slane %v6302_v49, %v4467_v37  ;;  %v6303_v27 = vld [vmem:[#allocation87_spill] sm:$0xff] }
 0x3d8   :  { %v2639_v18 = vperm.slane %v1458_v41, %v4402_v50  ;;  %v2194_v58 = vperm.slane %v6303_v27, %v4473_v24 }
 0x3d9   :  { %v2576_v8 = vsel %vm1939_vm4, %v2575_v3, %v2574_v53  ;;  %v392_v53 = vld [vmem:[%s6017_s0 + $0xbc8] sm:$0xff] }
 0x3da   :  { %v2640_v38 = vsel %vm1943_vm5, %v2639_v18, %v2638_v44  ;;  %v1535_v44 = vld [vmem:[%s6018_s1 + $0x38] sm:$0xff]  ;;  %v1525_v43 = vsel %vm393_vm0, %v392_v53, 0.0 }
 0x3db   :  { %1430 = vadd.xlane.f32.xlu2 %v1429_v47  ;;  %1388 = vadd.xlane.f32.xlu1 %v1387_v56  ;;  %v1435_v47 = vsel %vm393_vm0, %v362_v52, 0.0  ;;  %v1438_v56 = vsel %vm393_vm0, %v363_v5, 0.0  ;;  %vm6299_vm0 = vmmov %vm6286_vm8 }
 0x3dc   :  { %1520 = vadd.xlane.f32.xlu0 %v1519_v33  ;;  %2871 = vmatpush.xpose.msrb.mxu3 %v1535_v44  ;;  %v2181_v33 = vsel %vm1943_vm5, %v2180_v19, %v2179_v29  ;;  %vm6300_vm8 = vmmov %vm6285_vm10 }
 0x3dd   :  { %v2183_v36 = vsel %vm1947_vm6, %v2182_v45, %v2181_v33 }
 0x3de   :  { %v1491_v42 = vpop.xlane.xlu2 %1490  ;;  %v1461_v6 = vpop.xlane.xlu1 %1460  ;;  %v2185_v0 = vsel %vm6285_vm10, %v2184_v1, %v2183_v36  ;;  %vm6305_vm10 = vcmask 851712  }
 0x3df   :  { %v2641_v62 = vperm.slane %v1461_v6, %v4397_v40  ;;  %v1401_v21 = vpop.xlane.xlu0 %1400  ;;  %v2661_v41 = vperm.slane %v1491_v42, %v4339_v32  ;;  %v6298_v6 = vld [vmem:[#allocation84_spill] sm:$0xff]  ;;  %v2187_v7 = vsel %vm6299_vm0, %v2186_v9, %v2185_v0  ;;  %vm6308_vm0 = vmmov %vm6305_vm10 }
 0x3e0   :  { %v2602_v15 = vperm.slane %v1401_v21, %v4359_v51 }
 0x3e1   :  { %v2642_v2 = vsel %vm1947_vm6, %v2641_v62, %v2640_v38 }
 0x3e2   :  { %v2603_v59 = vsel %vm1931_vm2, %v2602_v15, %v2601_v20 }
 0x3e3   :  { %1433 = vadd.xlane.f32.xlu2 %v1432_v60  ;;  %1391 = vadd.xlane.f32.xlu1 %v1390_v30  ;;  %v6301_v30 = vld [vmem:[#allocation83_spill] sm:$0xff] }
 0x3e4   :  { %1523 = vadd.xlane.f32.xlu0 %v1522_v23  ;;  %v2190_v44 = vperm.slane %v6301_v30, %v4456_v63 }
 0x3e6   :  { %v1362_v20 = vpop.xlane.xlu2 %1361  ;;  %v1338_v28 = vpop.xlane.xlu1 %1337 }
 0x3e7   :  { %v2577_v54 = vperm.slane %v1362_v20, %v4402_v50  ;;  %v1494_v3 = vpop.xlane.xlu0 %1493 }
 0x3e8   :  { %v2662_v18 = vperm.slane %v1494_v3, %v4348_v61 }
 0x3e9   :  { %v2578_v38 = vsel %vm1943_vm5, %v2577_v54, %v2576_v8  ;;  %v2188_v8 = vperm.slane %v6298_v6, %v4437_v34 }
 0x3ea   :  { %v2663_v55 = vsel %vm1927_vm1, %v2662_v18, %v2661_v41  ;;  %v6306_v41 = vld [vmem:[#allocation91_spill] sm:$0xff] }
 0x3eb   :  { %1436 = vadd.xlane.f32.xlu1 %v1435_v47  ;;  %1439 = vadd.xlane.f32.xlu2 %v1438_v56  ;;  %v2189_v23 = vsel %vm6287_vm7, %v2188_v8, %v2187_v7  ;;  %v2198_v18 = vperm.slane %v6306_v41, %v4502_v48  ;;  %v2560_v47 = vperm.slane %v5550_v17, %v4473_v24  ;;  %vm6310_vm7 = vcmask 523712  }
 0x3ec   :  { %1526 = vadd.xlane.f32.xlu0 %v1525_v43  ;;  %v2191_v19 = vsel %vm6288_vm9, %v2190_v44, %v2189_v23  ;;  %v2562_v56 = vperm.slane %v1338_v28, %v4488_v25  ;;  %v6307_v43 = vld [vmem:[#allocation90_spill] sm:$0xff] }
 0x3ed   :  { %v2193_v20 = vsel %vm1967_vm11, %v2192_v12, %v2191_v19 }
 0x3ee   :  { %v1497_v10 = vpop.xlane.xlu2 %1496  ;;  %v1464_v42 = vpop.xlane.xlu1 %1463  ;;  %v2195_v3 = vsel %vm6305_vm10, %v2194_v58, %v2193_v20  ;;  %vm6332_vm10 = vmmov %vm6310_vm7 }
 0x3ef   :  { %v2664_v35 = vperm.slane %v1497_v10, %v4359_v51  ;;  %v2643_v62 = vperm.slane %v1464_v42, %v4417_v22  ;;  %v1404_v21 = vpop.xlane.xlu0 %1403 }
 0x3f0   :  { %v2604_v26 = vperm.slane %v1404_v21, %v4364_v11 }
 0x3f1   :  { %v2665_v15 = vsel %vm1931_vm2, %v2664_v35, %v2663_v55  ;;  %v2644_v60 = vsel %vm6300_vm8, %v2643_v62, %v2642_v2  ;;  %v2200_v55 = vperm.slane %v6307_v43, %v4505_v13  ;;  %vm6309_vm8 = vcmask 589312  }
 0x3f2   :  { %v2605_v31 = vsel %vm1935_vm3, %v2604_v26, %v2603_v59  ;;  %v6304_v59 = vld [vmem:[#allocation86_spill] sm:$0xff]  ;;  %vm6311_vm9 = vmmov %vm6309_vm8 }
 0x3f3   :  { %v2196_v45 = vperm.slane %v6304_v59, %v4488_v25 }
 0x3f5   :  { %v2197_v14 = vsel %vm1975_vm13, %v2196_v45, %v2195_v3  ;;  %v6312_v3 = vld [vmem:[#allocation122_spill] sm:$0xff] }
 0x3f6   :  { %v1407_v52 = vpop.xlane.xlu2 %1406  ;;  %v1365_v5 = vpop.xlane.xlu1 %1364  ;;  %v2199_v16 = vsel %vm1979_vm14, %v2198_v18, %v2197_v14  ;;  %v2265_v41 = vperm.slane %v6312_v3, %v4348_v61  ;;  %v6313_v18 = vld [vmem:[#allocation123_spill] sm:$0xff]  ;;  %v6315_v14 = vld [vmem:[#allocation94_spill] sm:$0xff] }
 0x3f7   :  { %v2606_v2 = vperm.slane %v1407_v52, %v4381_v39  ;;  %v2579_v53 = vperm.slane %v1365_v5, %v4397_v40  ;;  %v1341_v57 = vpop.xlane.xlu0 %1340  ;;  %v2201_v0 = vsel %vm1983_vm15, %v2200_v55, %v2199_v16  ;;  %v6316_v16 = vld [vmem:[#allocation89_spill] sm:$0xff] }
 0x3f8   :  { %v2564_v33 = vperm.slane %v1341_v57, %v4502_v48 }
 0x3f9   :  { %v2607_v29 = vsel %vm1939_vm4, %v2606_v2, %v2605_v31  ;;  %v2580_v54 = vsel %vm1947_vm6, %v2579_v53, %v2578_v38  ;;  %v2561_v38 = vsel %vm6308_vm0, %v2560_v47, %v5490_v46  ;;  %v2264_v47 = vperm.slane %v6313_v18, %v4339_v32  ;;  %vm6335_vm0 = vmmov %vm6309_vm8 }
 0x3fa   :  { %v2563_v9 = vsel %vm1975_vm13, %v2562_v56, %v2561_v38  ;;  %v6314_v56 = vld [vmem:[#allocation127_spill] sm:$0xff]  ;;  %v2203_v38 = vperm.slane %v6315_v14, %v4348_v61 }
 0x3fb   :  { %v2565_v42 = vsel %vm1979_vm14, %v2564_v33, %v2563_v9  ;;  %v2267_v33 = vperm.slane %v6314_v56, %v4359_v51  ;;  %v2202_v9 = vperm.slane %v6316_v16, %v4339_v32  ;;  %v6325_v56 = vld [vmem:[#allocation128_spill] sm:$0xff]  ;;  %v6326_v14 = vld [vmem:[#allocation95_spill] sm:$0xff]  ;;  %v6327_v16 = vld [vmem:[#allocation133_spill] sm:$0xff] }
 0x3fe   :  { %v1344_v1 = vpop.xlane.xlu2 %1343  ;;  %v1500_v36 = vpop.xlane.xlu1 %1499 }
 0x3ff   :  { %v2566_v17 = vperm.slane %v1344_v1, %v4505_v13  ;;  %v2666_v28 = vperm.slane %v1500_v36, %v4364_v11  ;;  %v1467_v10 = vpop.xlane.xlu0 %1466  ;;  %v1538_v36 = vld [vmem:[%s6018_s1 + $0x50] sm:$0xff] }
 0x400   :  { %v2645_v6 = vperm.slane %v1467_v10, %v4431_v4  ;;  %2931 = vmatpush.xpose.msra.mxu2 %v1538_v36 }
 0x401   :  { %v2667_v8 = vsel %vm1935_vm3, %v2666_v28, %v2665_v15  ;;  %v2567_v46 = vsel %vm1983_vm15, %v2566_v17, %v2565_v42  ;;  %v2266_v17 = vsel %vm1927_vm1, %v2265_v41, %v2264_v47  ;;  %v6317_v28 = vld [vmem:[#allocation126_spill] sm:$0xff]  ;;  %v6318_v42 = vld [vmem:[#allocation93_spill] sm:$0xff] }
 0x402   :  { %v5669_v35 = vsel %vm6309_vm8, %v2645_v6, %v2644_v60  ;;  %v2694_v62 = vsel %vm2686_vm12, %v2567_v46, %v2201_v0  ;;  %v2269_v10 = vperm.slane %v6317_v28, %v4364_v11  ;;  %v2205_v6 = vperm.slane %v6318_v42, %v4359_v51  ;;  %v6319_v46 = vld [vmem:[#allocation125_spill] sm:$0xff]  ;;  %v6328_v28 = vld [vmem:[#allocation100_spill] sm:$0xff]  ;;  %vm6336_vm8 = vmmov %vm6310_vm7 }
 0x403   :  { %2872 = vmatmul.f32.vlgmr.msrb.gmra.mxu3 %v2694_v62  ;;  %v2204_v0 = vsel %vm1927_vm1, %v2203_v38, %v2202_v9  ;;  %v2271_v62 = vperm.slane %v6319_v46, %v4381_v39  ;;  %v2213_v38 = vperm.slane %v6326_v14, %v4397_v40  ;;  %v2279_v9 = vperm.slane %v6327_v16, %v4431_v4  ;;  %v6329_v42 = vld [vmem:[#allocation108_spill] sm:$0xff] }
 0x406   :  { %v5672_v21 = vpop.xlane.xlu2 %1469  ;;  %v1410_v7 = vpop.xlane.xlu1 %1409 }
 0x407   :  { %v2608_v26 = vperm.slane %v1410_v7, %v4402_v50  ;;  %v1368_v30 = vpop.xlane.xlu0 %1367  ;;  %v6320_v7 = vld [vmem:[#allocation92_spill] sm:$0xff] }
 0x408   :  { %v2581_v44 = vperm.slane %v1368_v30, %v4417_v22 }
 0x409   :  { %v2609_v15 = vsel %vm1943_vm5, %v2608_v26, %v2607_v29  ;;  %v2207_v26 = vperm.slane %v6320_v7, %v4364_v11  ;;  %v6331_v7 = vld [vmem:[#allocation132_spill] sm:$0xff] }
 0x40a   :  { %v2582_v31 = vsel %vm6310_vm7, %v2581_v44, %v2580_v54  ;;  %v6321_v44 = vld [vmem:[#allocation130_spill] sm:$0xff]  ;;  %vm6340_vm7 = vcmask 654912  }
 0x40e   :  { %v1413_v23 = vpop.xlane.xlu2 %1412  ;;  %v1371_v49 = vpop.xlane.xlu1 %1370 }
 0x40f   :  { %v2610_v60 = vperm.slane %v1413_v23, %v4397_v40  ;;  %v2583_v12 = vperm.slane %v1371_v49, %v4431_v4  ;;  %v1503_v27 = vpop.xlane.xlu0 %1502  ;;  %v6322_v23 = vld [vmem:[#allocation97_spill] sm:$0xff] }
 0x410   :  { %v2668_v58 = vperm.slane %v1503_v27, %v4381_v39  ;;  %v2209_v49 = vperm.slane %v6322_v23, %v4381_v39 }
 0x411   :  { %v5682_v19 = vsel %vm1947_vm6, %v2610_v60, %v2609_v15  ;;  %v5685_v52 = vsel %vm6311_vm9, %v2583_v12, %v2582_v31  ;;  %v2273_v15 = vperm.slane %v6321_v44, %v4402_v50  ;;  %v2206_v31 = vsel %vm1931_vm2, %v2205_v6, %v2204_v0 }
 0x412   :  { %v2669_v5 = vsel %vm1939_vm4, %v2668_v58, %v2667_v8  ;;  %v2268_v8 = vsel %vm1931_vm2, %v2267_v33, %v2266_v17  ;;  %v6323_v58 = vld [vmem:[#allocation129_spill] sm:$0xff]  ;;  %v2208_v41 = vsel %vm1935_vm3, %v2207_v26, %v2206_v31  ;;  %v2277_v33 = vperm.slane %v6325_v56, %v4417_v22 }
 0x413   :  { %v2270_v30 = vsel %vm1935_vm3, %v2269_v10, %v2268_v8  ;;  %v2210_v47 = vsel %vm1939_vm4, %v2209_v49, %v2208_v41  ;;  %v2215_v10 = vperm.slane %v6328_v28, %v4417_v22  ;;  %v2234_v6 = vperm.slane %v6329_v42, %v4348_v61  ;;  %v6330_v8 = vld [vmem:[#allocation109_spill] sm:$0xff]  ;;  %v6334_v49 = vld [vmem:[#allocation107_spill] sm:$0xff]  ;;  %v6337_v41 = vld [vmem:[#allocation112_spill] sm:$0xff] }
 0x414   :  { %v2233_v0 = vperm.slane %v6330_v8, %v4339_v32  ;;  %v2281_v26 = vperm.slane %v6331_v7, %v4437_v34  ;;  %vm2710_vm9 = vcmask 850944   ;;  %v6344_v8 = vld [vmem:[#allocation103_spill] sm:$0xff] }
 0x416   :  { %v5688_v20 = vpop.xlane.xlu2 %1373  ;;  %v1506_v2 = vpop.xlane.xlu1 %1505 }
 0x417   :  { %v2670_v53 = vperm.slane %v1506_v2, %v4402_v50  ;;  %v5691_v57 = vpop.xlane.xlu0 %1472  ;;  %v2272_v2 = vsel %vm1939_vm4, %v2271_v62, %v2270_v30 }
 0x418   :  { %v2274_v18 = vsel %vm1943_vm5, %v2273_v15, %v2272_v2  ;;  %v6333_v15 = vld [vmem:[#allocation99_spill] sm:$0xff]  ;;  %v1536_v2 = vld [vmem:[%s6018_s1 + $0x40] sm:$0xff] }
 0x419   :  { %v5694_v59 = vsel %vm1943_vm5, %v2670_v53, %v2669_v5  ;;  %v2275_v5 = vperm.slane %v6323_v58, %v4397_v40  ;;  %v6324_v53 = vld [vmem:[#allocation96_spill] sm:$0xff]  ;;  %v2217_v31 = vperm.slane %v6333_v15, %v4431_v4  ;;  %v2236_v58 = vperm.slane %v6334_v49, %v4359_v51  ;;  %2891 = vmatpush.xpose.msra.mxu0 %v1536_v2 }
 0x41a   :  { %v2211_v3 = vperm.slane %v6324_v53, %v4402_v50 }
 0x41b   :  { %v2276_v36 = vsel %vm1947_vm6, %v2275_v5, %v2274_v18  ;;  %v2238_v18 = vperm.slane %v6337_v41, %v4364_v11  ;;  %v6349_v41 = vld [vmem:[#allocation102_spill] sm:$0xff] }
 0x41c   :  { %v2212_v17 = vsel %vm1943_vm5, %v2211_v3, %v2210_v47  ;;  %v2278_v30 = vsel %vm6332_vm10, %v2277_v33, %v2276_v36  ;;  %v2235_v3 = vsel %vm1927_vm1, %v2234_v6, %v2233_v0  ;;  %v6338_v47 = vld [vmem:[#allocation131_spill] sm:$0xff]  ;;  %v6339_v33 = vld [vmem:[#allocation98_spill] sm:$0xff]  ;;  %v6341_v36 = vld [vmem:[#allocation136_spill] sm:$0xff]  ;;  %v2221_v0 = vperm.slane %v6344_v8, %v4456_v63 }
 0x41d   :  { %v2214_v23 = vsel %vm1947_vm6, %v2213_v38, %v2212_v17  ;;  %v2280_v5 = vsel %vm6335_vm0, %v2279_v9, %v2278_v30  ;;  %v2283_v56 = vperm.slane %v6338_v47, %v4456_v63  ;;  %v2219_v14 = vperm.slane %v6339_v33, %v4437_v34  ;;  %v1539_v9 = vld [vmem:[%s6018_s1 + $0x58] sm:$0xff]  ;;  %v1537_v17 = vld [vmem:[%s6018_s1 + $0x48] sm:$0xff]  ;;  %vm6342_vm10 = vmmov %vm6335_vm0 }
 0x41e   :  { %v5696_v45 = vpop.xlane.xlu2 %1508  ;;  %v5698_v29 = vpop.xlane.xlu1 %1475  ;;  %v2216_v53 = vsel %vm6336_vm8, %v2215_v10, %v2214_v23  ;;  %v2282_v38 = vsel %vm6340_vm7, %v2281_v26, %v2280_v5  ;;  %v2285_v16 = vperm.slane %v6341_v36, %v4467_v37  ;;  %v6343_v10 = vld [vmem:[#allocation111_spill] sm:$0xff]  ;;  %v2237_v6 = vsel %vm1931_vm2, %v2236_v58, %v2235_v3  ;;  %2974 = vmatpush.xpose.msk.msra.mxu3 %vm2710_vm9, %v1539_v9  ;;  %vm6347_vm8 = vmmov %vm6340_vm7  ;;  %v6348_v58 = vld [vmem:[#allocation110_spill] sm:$0xff] }
 0x41f   :  { %v5700_v54 = vpop.xlane.xlu0 %1415  ;;  %v2218_v28 = vsel %vm6342_vm10, %v2217_v31, %v2216_v53  ;;  %v2240_v42 = vperm.slane %v6343_v10, %v4381_v39  ;;  %2911 = vmatpush.xpose.msra.mxu1 %v1537_v17  ;;  %v2239_v7 = vsel %vm1935_vm3, %v2238_v18, %v2237_v6  ;;  %v6345_v26 = vld [vmem:[#allocation135_spill] sm:$0xff]  ;;  %vm6346_vm0 = vcmask 720512   ;;  %v6355_v10 = vld [vmem:[#allocation137_spill] sm:$0xff] }
 0x420   :  { %v2287_v30 = vperm.slane %v6345_v26, %v4473_v24  ;;  %v2284_v15 = vsel %vm6346_vm0, %v2283_v56, %v2282_v38  ;;  %v2220_v49 = vsel %vm6347_vm8, %v2219_v14, %v2218_v28  ;;  %v2242_v5 = vperm.slane %v6348_v58, %v4402_v50  ;;  %v6350_v56 = vld [vmem:[#allocation142_spill] sm:$0xff]  ;;  %vm6351_vm7 = vmmov %vm6346_vm0  ;;  %v6352_v36 = vld [vmem:[#allocation115_spill] sm:$0xff] }
 0x421   :  { %v2286_v2 = vsel %vm1967_vm11, %v2285_v16, %v2284_v15  ;;  %v2647_v53 = vperm.slane %v5672_v21, %v4437_v34  ;;  %v2223_v18 = vperm.slane %v6349_v41, %v4467_v37  ;;  %v2241_v47 = vsel %vm1939_vm4, %v2240_v42, %v2239_v7  ;;  %v6353_v21 = vld [vmem:[#allocation134_spill] sm:$0xff]  ;;  %vm6358_vm0 = vmmov %vm6347_vm8 }
 0x422   :  { %v2296_v33 = vperm.slane %v6350_v56, %v4348_v61  ;;  %v2649_v14 = vperm.slane %v5691_v57, %v4456_v63  ;;  %v2222_v38 = vsel %vm6351_vm7, %v2221_v0, %v2220_v49  ;;  %v2244_v16 = vperm.slane %v6352_v36, %v4397_v40  ;;  %v6356_v61 = vld [vmem:[#allocation139_spill] sm:$0xff]  ;;  %v6357_v0 = vld [vmem:[#allocation141_spill] sm:$0xff]  ;;  %vm6360_vm8 = vmmov %vm6351_vm7 }
 0x423   :  { %v2289_v9 = vperm.slane %v6353_v21, %v4488_v25  ;;  %v2651_v17 = vperm.slane %v5698_v29, %v4467_v37  ;;  %vm6354_vm10 = vcmask 851712   ;;  %v2295_v42 = vperm.slane %v6355_v10, %v4339_v32 }
 0x424   :  { %v2288_v28 = vsel %vm6354_vm10, %v2287_v30, %v2286_v2  ;;  %v2291_v6 = vperm.slane %v6356_v61, %v4502_v48  ;;  %v2243_v8 = vsel %vm1943_vm5, %v2242_v5, %v2241_v47  ;;  %v2298_v7 = vperm.slane %v6357_v0, %v4359_v51  ;;  %v6359_v30 = vld [vmem:[#allocation114_spill] sm:$0xff]  ;;  %v6363_v47 = vld [vmem:[#allocation140_spill] sm:$0xff] }
 0x425   :  { %v2648_v26 = vsel %vm6358_vm0, %v2647_v53, %v5669_v35  ;;  %v2246_v32 = vperm.slane %v6359_v30, %v4417_v22  ;;  %v2297_v15 = vsel %vm1927_vm1, %v2296_v33, %v2295_v42  ;;  %v2245_v58 = vsel %vm1947_vm6, %v2244_v16, %v2243_v8  ;;  %v6361_v5 = vld [vmem:[#allocation138_spill] sm:$0xff]  ;;  %vm6364_vm1 = vmmov %vm6354_vm10  ;;  %v6365_v16 = vld [vmem:[#allocation145_spill] sm:$0xff] }
 0x426   :  { %v5708_v43 = vpop.xlane.xlu2 %1478  ;;  %v5710_v55 = vpop.xlane.xlu1 %1418  ;;  %v2650_v49 = vsel %vm6360_vm8, %v2649_v14, %v2648_v26  ;;  %v2293_v51 = vperm.slane %v6361_v5, %v4505_v13  ;;  %v2290_v2 = vsel %vm1975_vm13, %v2289_v9, %v2288_v28  ;;  %v2300_v56 = vperm.slane %v6363_v47, %v4364_v11  ;;  %v6367_v42 = vld [vmem:[#allocation118_spill] sm:$0xff]  ;;  %vm6373_vm10 = vmmov %vm6358_vm0  ;;  %v6374_v5 = vld [vmem:[#allocation105_spill] sm:$0xff] }
 0x427   :  { %v5714_v1 = vpop.xlane.xlu0 %1376  ;;  %v2653_v57 = vperm.slane %v5708_v43, %v4473_v24  ;;  %v2652_v35 = vsel %vm1967_vm11, %v2651_v17, %v2650_v49  ;;  %v2292_v41 = vsel %vm1979_vm14, %v2291_v6, %v2290_v2  ;;  %v2299_v36 = vsel %vm1931_vm2, %v2298_v7, %v2297_v15  ;;  %v6368_v6 = vld [vmem:[#allocation101_spill] sm:$0xff]  ;;  %v6369_v7 = vld [vmem:[#allocation106_spill] sm:$0xff]  ;;  %vm6375_vm0 = vmmov %vm6364_vm1 }
 0x428   :  { %v2302_v21 = vperm.slane %v6365_v16, %v4381_v39  ;;  %vm6366_vm7 = vcmask 523712   ;;  %v2250_v11 = vperm.slane %v6367_v42, %v4437_v34  ;;  %v2224_v8 = vsel %vm1967_vm11, %v2223_v18, %v2222_v38  ;;  %v6371_v49 = vld [vmem:[#allocation117_spill] sm:$0xff]  ;;  %v6381_v42 = vld [vmem:[#allocation104_spill] sm:$0xff] }
 0x429   :  { %v2654_v33 = vsel %vm6364_vm1, %v2653_v57, %v2652_v35  ;;  %v2247_v10 = vsel %vm6366_vm7, %v2246_v32, %v2245_v58  ;;  %v2225_v57 = vperm.slane %v6368_v6, %v4473_v24  ;;  %v2294_v39 = vsel %vm1983_vm15, %v2293_v51, %v2292_v41  ;;  %v6377_v41 = vld [vmem:[#allocation116_spill] sm:$0xff]  ;;  %v6382_v6 = vld [vmem:[#allocation147_spill] sm:$0xff] }
 0x42a   :  { %v2227_v26 = vperm.slane %v6369_v7, %v4488_v25  ;;  %v2301_v32 = vsel %vm1935_vm3, %v2300_v56, %v2299_v36  ;;  %vm6372_vm2 = vcmask 589312   ;;  %v2229_v51 = vperm.slane %v6374_v5, %v4502_v48  ;;  %v6378_v56 = vld [vmem:[#allocation148_spill] sm:$0xff]  ;;  %vm6379_vm3 = vmmov %vm6360_vm8  ;;  %v6390_v5 = vld [vmem:[#allocation119_spill] sm:$0xff] }
 0x42b   :  { %v2303_v18 = vsel %vm1939_vm4, %v2302_v21, %v2301_v32  ;;  %v2226_v2 = vsel %vm6375_vm0, %v2225_v57, %v2224_v8  ;;  %v2254_v47 = vperm.slane %v6377_v41, %v4467_v37  ;;  %v6380_v21 = vld [vmem:[#allocation121_spill] sm:$0xff]  ;;  %v2310_v57 = vperm.slane %v6382_v6, %v4431_v4  ;;  %vm6384_vm4 = vmmov %vm6366_vm7 }
 0x42c   :  { %vm6386_vm8 = vmmov %vm6373_vm10 }
 0x42d   :  { %vm6388_vm1 = vmmov %vm6379_vm3 }
 0x42e   :  { %v5738_v60 = vpop.xlane.xlu2 %1421  ;;  %v5740_v12 = vpop.xlane.xlu1 %1379  ;;  %vm6389_vm7 = vmmov %vm6372_vm2 }
 0x42f   :  { %v5742_v27 = vpop.xlane.xlu0 %1511 }
 0x436   :  { %v5766_v46 = vpop.xlane.xlu2 %1382  ;;  %v5768_v62 = vpop.xlane.xlu1 %1514 }
 0x437   :  { %v5773_v44 = vpop.xlane.xlu0 %1481 }
 0x438   :  { %v2655_v29 = vperm.slane %v5773_v44, %v4488_v25  ;;  %v6362_v44 = vld [vmem:[#allocation113_spill] sm:$0xff] }
 0x439   :  { %v2248_v53 = vperm.slane %v6362_v44, %v4431_v4  ;;  %v2228_v44 = vsel %vm1975_vm13, %v2227_v26, %v2226_v2 }
 0x43a   :  { %v2656_v9 = vsel %vm1975_vm13, %v2655_v29, %v2654_v33  ;;  %v6370_v29 = vld [vmem:[#allocation144_spill] sm:$0xff]  ;;  %v2308_v33 = vperm.slane %v6378_v56, %v4417_v22 }
 0x43b   :  { %v2304_v30 = vperm.slane %v6370_v29, %v4402_v50  ;;  %v2249_v58 = vsel %vm6372_vm2, %v2248_v53, %v2247_v10  ;;  %v6376_v50 = vld [vmem:[#allocation143_spill] sm:$0xff]  ;;  %vm6391_vm2 = vmmov %vm6375_vm0 }
 0x43c   :  { %v2251_v38 = vsel %vm6373_vm10, %v2250_v11, %v2249_v58  ;;  %v2306_v35 = vperm.slane %v6376_v50, %v4397_v40  ;;  %v2231_v11 = vperm.slane %v6381_v42, %v4505_v13  ;;  %vm6393_vm10 = vmmov %vm6386_vm8 }
 0x43d   :  { %v2305_v53 = vsel %vm1943_vm5, %v2304_v30, %v2303_v18  ;;  %vm6385_vm5 = vmmov %vm6375_vm0 }
 0x43e   :  { %v5812_v23 = vpop.xlane.xlu2 %1517  ;;  %v1485_v31 = vpop.xlane.xlu1 %1484  ;;  %v2307_v8 = vsel %vm1947_vm6, %v2306_v35, %v2305_v53  ;;  %vm6395_vm0 = vmmov %vm6384_vm4 }
 0x43f   :  { %v5820_v3 = vpop.xlane.xlu0 %1424  ;;  %v2657_v43 = vperm.slane %v1485_v31, %v4502_v48  ;;  %v2309_v29 = vsel %vm6384_vm4, %v2308_v33, %v2307_v8  ;;  %vm6397_vm4 = vmmov %vm6389_vm7 }
 0x440   :  { %v2311_v18 = vsel %vm6389_vm7, %v2310_v57, %v2309_v29  ;;  %v2618_v42 = vperm.slane %v5820_v3, %v4456_v63  ;;  %v6399_v57 = vld [vmem:[#allocation124_spill] sm:$0xff] }
 0x441   :  { %v2658_v61 = vsel %vm1979_vm14, %v2657_v43, %v2656_v9  ;;  %v2252_v43 = vperm.slane %v6371_v49, %v4456_v63  ;;  %v2256_v9 = vperm.slane %v6380_v21, %v4473_v24  ;;  %v2262_v8 = vperm.slane %v6399_v57, %v4505_v13 }
 0x443   :  { %v2253_v16 = vsel %vm6379_vm3, %v2252_v43, %v2251_v38  ;;  %vm6396_vm3 = vmmov %vm6388_vm1 }
 0x444   :  { %v2255_v26 = vsel %vm1967_vm11, %v2254_v47, %v2253_v16  ;;  %v2614_v47 = vperm.slane %v5710_v55, %v4431_v4  ;;  %v2616_v16 = vperm.slane %v5738_v60, %v4437_v34  ;;  %v2674_v55 = vperm.slane %v5742_v27, %v4417_v22 }
 0x445   :  { %v2257_v30 = vsel %vm6385_vm5, %v2256_v9, %v2255_v26  ;;  %v6394_v9 = vld [vmem:[#allocation150_spill] sm:$0xff]  ;;  %v2678_v27 = vperm.slane %v5812_v23, %v4437_v34  ;;  %vm6398_vm5 = vmmov %vm6386_vm8 }
 0x446   :  { %v1488_v31 = vpop.xlane.xlu2 %1487  ;;  %v5866_v14 = vpop.xlane.xlu1 %1427  ;;  %vm6403_vm7 = vmmov %vm6398_vm5 }
 0x447   :  { %v2659_v17 = vperm.slane %v1488_v31, %v4505_v13  ;;  %v1386_v28 = vpop.xlane.xlu0 %1385 }
 0x449   :  { %v2660_v0 = vsel %vm1983_vm15, %v2659_v17, %v2658_v61  ;;  %v2585_v17 = vperm.slane %v5688_v20, %v4437_v34  ;;  %v2587_v61 = vperm.slane %v5714_v1, %v4456_v63  ;;  %v6383_v20 = vld [vmem:[#allocation120_spill] sm:$0xff]  ;;  %v2591_v1 = vperm.slane %v5766_v46, %v4473_v24 }
 0x44a   :  { %v2697_v15 = vsel %vm2686_vm12, %v2660_v0, %v2294_v39  ;;  %v2589_v0 = vperm.slane %v5740_v12, %v4467_v37  ;;  %v2230_v39 = vsel %vm1979_vm14, %v2229_v51, %v2228_v44  ;;  %v2258_v7 = vperm.slane %v6383_v20, %v4488_v25  ;;  %v6387_v12 = vld [vmem:[#allocation146_spill] sm:$0xff]  ;;  %v6392_v44 = vld [vmem:[#allocation151_spill] sm:$0xff] }
 0x44b   :  { %2932 = vmatmul.f32.vlgmr.msra.gmra.mxu2 %v2697_v15  ;;  %v2586_v32 = vsel %vm6386_vm8, %v2585_v17, %v5685_v52  ;;  %v2593_v15 = vperm.slane %v1386_v28, %v4488_v25  ;;  %v2312_v49 = vperm.slane %v6387_v12, %v4437_v34  ;;  %v2232_v46 = vsel %vm1983_vm15, %v2231_v11, %v2230_v39  ;;  %vm6400_vm8 = vmmov %vm6395_vm0 }
 0x44c   :  { %v2588_v43 = vsel %vm6388_vm1, %v2587_v61, %v2586_v32  ;;  %v2260_v51 = vperm.slane %v6390_v5, %v4502_v48  ;;  %v2259_v52 = vsel %vm1975_vm13, %v2258_v7, %v2257_v30  ;;  %v2612_v28 = vperm.slane %v5700_v54, %v4417_v22  ;;  %v2733_v5 = vpop.f32.mrf.mxu0 }
 0x44d   :  { %v2590_v38 = vsel %vm1967_vm11, %v2589_v0, %v2588_v43  ;;  %v2314_v41 = vperm.slane %v6392_v44, %v4456_v63  ;;  %v2672_v54 = vperm.slane %v5696_v45, %v4397_v40  ;;  %v2316_v17 = vperm.slane %v6394_v9, %v4467_v37 }
 0x44e   :  { %v5904_v31 = vpop.xlane.xlu2 %1430  ;;  %v1389_v36 = vpop.xlane.xlu1 %1388  ;;  %v2592_v2 = vsel %vm6391_vm2, %v2591_v1, %v2590_v38  ;;  %v2613_v61 = vsel %vm6395_vm0, %v2612_v28, %v5682_v19  ;;  %v2676_v40 = vperm.slane %v5768_v62, %v4431_v4  ;;  %v2620_v45 = vperm.slane %v5866_v14, %v4467_v37  ;;  %vm6405_vm0 = vmmov %vm6391_vm2 }
 0x44f   :  { %v5911_v10 = vpop.xlane.xlu0 %1520  ;;  %v2595_v58 = vperm.slane %v1389_v36, %v4502_v48  ;;  %v2594_v53 = vsel %vm1975_vm13, %v2593_v15, %v2592_v2  ;;  %v2313_v36 = vsel %vm6393_vm10, %v2312_v49, %v2311_v18  ;;  %v2615_v22 = vsel %vm6397_vm4, %v2614_v47, %v2613_v61  ;;  %vm6404_vm10 = vmmov %vm6388_vm1  ;;  %v2773_v28 = vpop.f32.mrf.mxu2 }
 0x450   :  { %v2315_v6 = vsel %vm6396_vm3, %v2314_v41, %v2313_v36  ;;  %v2622_v3 = vperm.slane %v5904_v31, %v4473_v24  ;;  %v2673_v19 = vsel %vm1947_vm6, %v2672_v54, %v5694_v59  ;;  %v2617_v4 = vsel %vm6398_vm5, %v2616_v16, %v2615_v22  ;;  %v6401_v31 = vld [vmem:[#allocation149_spill] sm:$0xff]  ;;  %vm6402_vm6 = vmmov %vm6397_vm4 }
 0x451   :  { %v2596_v21 = vsel %vm1979_vm14, %v2595_v58, %v2594_v53  ;;  %v2680_v62 = vperm.slane %v5911_v10, %v4456_v63  ;;  %v2675_v0 = vsel %vm6400_vm8, %v2674_v55, %v2673_v19  ;;  %v2619_v34 = vsel %vm6388_vm1, %v2618_v42, %v2617_v4  ;;  %vm6406_vm3 = vmmov %vm6405_vm0 }
 0x452   :  { %v2318_v39 = vperm.slane %v6401_v31, %v4473_v24  ;;  %v2317_v59 = vsel %vm1967_vm11, %v2316_v17, %v2315_v6  ;;  %v2677_v20 = vsel %vm6402_vm6, %v2676_v40, %v2675_v0  ;;  %v2621_v63 = vsel %vm1967_vm11, %v2620_v45, %v2619_v34 }
 0x453   :  { %v2679_v7 = vsel %vm6403_vm7, %v2678_v27, %v2677_v20  ;;  %v2623_v26 = vsel %vm6391_vm2, %v2622_v3, %v2621_v63  ;;  %v2261_v43 = vsel %vm1979_vm14, %v2260_v51, %v2259_v52  ;;  %v2753_v51 = vpop.f32.mrf.mxu1 }
 0x454   :  { %v2681_v30 = vsel %vm6404_vm10, %v2680_v62, %v2679_v7  ;;  %v2813_v44 = vpop.f32.mrf.mxu0 }
 0x456   :  { %v1434_v50 = vpop.xlane.xlu2 %1433  ;;  %v1392_v35 = vpop.xlane.xlu1 %1391 }
 0x457   :  { %v2597_v56 = vperm.slane %v1392_v35, %v4505_v13  ;;  %v1524_v33 = vpop.xlane.xlu0 %1523  ;;  %v2624_v14 = vperm.slane %v1434_v50, %v4488_v25  ;;  %v2793_v50 = vpop.f32.mrf.mxu3 }
 0x458   :  { %v2682_v23 = vperm.slane %v1524_v33, %v4467_v37 }
 0x459   :  { %v2598_v11 = vsel %vm1983_vm15, %v2597_v56, %v2596_v21  ;;  %v2625_v32 = vsel %vm1975_vm13, %v2624_v14, %v2623_v26  ;;  %v2853_v56 = vpop.f32.mrf.mxu2 }
 0x45a   :  { %v2695_v60 = vsel %vm2686_vm12, %v2598_v11, %v2232_v46  ;;  %v2683_v12 = vsel %vm1967_vm11, %v2682_v23, %v2681_v30  ;;  %vm2956_vm11 = vcmask 58368  }
 0x45b   :  { %2892 = vmatmul.f32.vlgmr.msra.gmra.mxu0 %v2695_v60  ;;  %v2833_v47 = vpop.f32.mrf.mxu1 }
 0x45e   :  { %v1437_v10 = vpop.xlane.xlu1 %1436  ;;  %v1440_v25 = vpop.xlane.xlu2 %1439 }
 0x45f   :  { %v2626_v29 = vperm.slane %v1437_v10, %v4502_v48  ;;  %v1527_v1 = vpop.xlane.xlu0 %1526  ;;  %v2628_v37 = vperm.slane %v1440_v25, %v4505_v13  ;;  %v2319_v48 = vsel %vm6406_vm3, %v2318_v39, %v2317_v59  ;;  %v2263_v13 = vsel %vm1983_vm15, %v2262_v8, %v2261_v43 }
 0x460   :  { %v2684_v15 = vperm.slane %v1527_v1, %v4473_v24  ;;  %v2977_v24 = vld [vmem:[%s6019_s2] ss:$0 sm:$0xff]  ;;  %s3004_s2 = smov [#allocation2]  }
 0x461   :  { %v2627_v49 = vsel %vm1979_vm14, %v2626_v29, %v2625_v32  ;;  %v2734_v52 = vadd.f32 %v2977_v24, %v2733_v5  ;;  %s2963_s9 = sshll.u32 %s3004_s2, 4  ;;  %s2964_s9 = int_to_ptr.vmem [resolvable:$true] %s2963_s9 }
 0x462   :  { %v2685_v58 = vsel %vm6405_vm0, %v2684_v15, %v2683_v12  ;;  %v2629_v18 = vsel %vm1983_vm15, %v2628_v37, %v2627_v49 }
 0x463   :  { %v2698_v38 = vsel %vm2686_vm12, %v2685_v58, %v2319_v48  ;;  %v2696_v46 = vsel %vm2686_vm12, %v2629_v18, %v2263_v13  ;;  %v2754_v2 = vadd.f32 %v2753_v51, %v2734_v52 }
 0x464   :  { %2975 = vmatmul.msk.f32.vlgmr.msra.gmra.mxu3 %vm2710_vm9, %v2698_v38  ;;  %2912 = vmatmul.f32.vlgmr.msra.gmra.mxu1 %v2696_v46 }
 0x465   :  { %v2774_v35 = vadd.f32 %v2773_v28, %v2754_v2 }
 0x467   :  { %v2794_v41 = vadd.f32 %v2793_v50, %v2774_v35 }
 0x469   :  { %v2814_v53 = vadd.f32 %v2813_v44, %v2794_v41 }
 0x46b   :  { %v2834_v33 = vadd.f32 %v2833_v47, %v2814_v53 }
 0x46d   :  { %v2854_v54 = vadd.f32 %v2853_v56, %v2834_v33 }
 0x486   :  { %v2873_v36 = vpop.f32.mrf.mxu3 }
 0x487   :  { %v2874_v21 = vadd.f32 %v2873_v36, %v2854_v54 }
 0x4ce   :  { %v2933_v42 = vpop.f32.mrf.mxu2 }
 0x4d8   :  { %v2893_v16 = vpop.f32.mrf.mxu0 }
 0x4d9   :  { %v2894_v9 = vadd.f32 %v2893_v16, %v2874_v21 }
 0x4e1   :  { %v2913_v17 = vpop.f32.mrf.mxu1 }
 0x4e2   :  { %v2914_v55 = vadd.f32 %v2913_v17, %v2894_v9 }
 0x4e4   :  { %v2934_v11 = vadd.f32 %v2933_v42, %v2914_v55 }
 0x4e7   :  { %v2953_v61 = vpop.f32.mrf.mxu3 }
 0x4e8   :  { %v2954_v40 = vadd.f32 %v2953_v61, %v2934_v11 }
 0x4ea   :  { %2957 = vst.msk [vmem:[#allocation2] sm:$0x3] %vm2956_vm11, %v2954_v40 }
 0x4eb   :  { %2968 = dma.vmem_to_hbm [thread:$0]  %s2964_s9, 32, %s2966_s12, [#allocation3]  }
 0x4ec   :  { %3002 = dma.done.wait [#allocation3], 32  }
 0x4ed   :  { %3003 = vsyncadd [#allocation3], 4294967264 }
 0x4ee   :  { %2973 = vsyncpa [#allocation3], 1 }

</bundles_post_ra>
